<compile_context>
chip_gen: v7x
topology: tpu7x:2x2x1
jax: 0.10.0
libtpu: 0.0.40
codegen_flags: <defaults>
</compile_context>

<pallas_src>
import functools

import jax
import jax.numpy as jnp
from jax import lax
from jax.experimental import pallas as pl
from jax.experimental.pallas import tpu as pltpu


# ---------------------------------------------------------------------------
# Fused kernel: conv1+bn1+relu -> conv2+bn2 -> (+ 1x1-conv shortcut+bn) -> relu
# One grid step == one batch element. Intermediate activation stays in VMEM.
# ---------------------------------------------------------------------------
def _basic_block_kernel(x_ref, w1_ref, b1_ref, w2_ref, b2_ref, wsc_ref, bsc_ref,
                        *rest, H, W, Cin, C, with_preact):
    if with_preact:
        out_ref, pre_ref = rest[0], rest[1]
        xpad_ref, hpad_ref, p1_ref, p2_ref = rest[2:]
    else:
        out_ref = rest[0]
        pre_ref = None
        xpad_ref, hpad_ref, p1_ref, p2_ref = rest[1:]

    cdt = xpad_ref.dtype

    # ---- in-VMEM zero padding of the block input (no host-side jnp.pad) ----
    x = x_ref[0]                                           # (H, W, Cin)
    xpad_ref[...] = jnp.zeros_like(xpad_ref)
    xpad_ref[pl.ds(1, H), pl.ds(1, W), :] = x
    xp = xpad_ref[...]                                     # (H+2, W+2, Cin)

    # ---- conv1 (3x3, pad=1) as ONE im2col matmul: (H*W, 9*Cin) @ (9*Cin, C) ----
    t = 0
    for ky in range(3):
        for kx in range(3):
            p1_ref[:, pl.ds(t * Cin, Cin)] = (
                xp[ky:ky + H, kx:kx + W, :].reshape(H * W, Cin))
            t += 1
    h = jnp.dot(p1_ref[...], w1_ref[...], preferred_element_type=jnp.float32)
    h = jnp.maximum(h + b1_ref[...], 0.0)                  # bn1 bias + ReLU (scale folded)

    # ---- keep h in VMEM; re-pad it for conv2 ----
    hpad_ref[...] = jnp.zeros_like(hpad_ref)
    hpad_ref[pl.ds(1, H), pl.ds(1, W), :] = h.astype(cdt).reshape(H, W, C)
    hp = hpad_ref[...]                                     # (H+2, W+2, C)

    # ---- conv2 (3x3, pad=1) as ONE im2col matmul: (H*W, 9*C) @ (9*C, C) ----
    t = 0
    for ky in range(3):
        for kx in range(3):
            p2_ref[:, pl.ds(t * C, C)] = (
                hp[ky:ky + H, kx:kx + W, :].reshape(H * W, C))
            t += 1
    main = jnp.dot(p2_ref[...], w2_ref[...], preferred_element_type=jnp.float32)

    # ---- shortcut: 1x1 conv (+ folded BN) on the original block input ----
    sc = jnp.dot(x.reshape(H * W, Cin), wsc_ref[...],
                 preferred_element_type=jnp.float32)

    preact = main + b2_ref[...] + sc + bsc_ref[...]
    out = jnp.maximum(preact, 0.0)
    out_ref[0] = out.astype(out_ref.dtype)
    if with_preact:
        pre_ref[0] = preact.astype(pre_ref.dtype)


# ---------------------------------------------------------------------------
# Host-side parameter folding (BN scale -> weights, flatten to im2col layout)
# ---------------------------------------------------------------------------
def _fold_bn(gamma, beta, mean, var, eps=1e-5):
    scale = gamma / jnp.sqrt(var + eps)
    bias = beta - mean * scale
    return scale, bias


def _prepare_params(params, compute_dtype):
    s1, b1 = _fold_bn(*params["bn1"])
    s2, b2 = _fold_bn(*params["bn2"])
    ssc, bsc = _fold_bn(*params["bn_sc"])
    w1 = params["w1"] * s1[None, None, None, :]            # (3,3,Cin,C) * scale over Cout
    w2 = params["w2"] * s2[None, None, None, :]
    wsc = params["w_sc"] * ssc[None, :]                    # (Cin, C)
    kh, kw, Cin, C = w1.shape
    w1f = w1.reshape(kh * kw * Cin, C).astype(compute_dtype)     # (9*Cin, C)
    w2f = w2.reshape(kh * kw * C, C).astype(compute_dtype)       # (9*C,   C)
    wscf = wsc.astype(compute_dtype)
    return (w1f, b1.reshape(1, -1).astype(jnp.float32),
            w2f, b2.reshape(1, -1).astype(jnp.float32),
            wscf, bsc.reshape(1, -1).astype(jnp.float32))


# ---------------------------------------------------------------------------
# Wrapper
# ---------------------------------------------------------------------------
def basic_block_forward(x, params, *, is_last=False, compute_dtype=jnp.bfloat16):
    """x: (N, H, W, Cin). stride=1, in_planes != planes -> conv shortcut path."""
    N, H, W, Cin = x.shape
    w1f, b1, w2f, b2, wscf, bsc = _prepare_params(params, compute_dtype)
    C = b1.shape[-1]

    xb = x.astype(compute_dtype)
    kern = functools.partial(_basic_block_kernel, H=H, W=W, Cin=Cin, C=C,
                             with_preact=is_last)

    out_shapes = [jax.ShapeDtypeStruct((N, H * W, C), compute_dtype)]
    out_specs = [pl.BlockSpec((1, H * W, C), lambda n: (n, 0, 0))]
    if is_last:
        out_shapes.append(jax.ShapeDtypeStruct((N, H * W, C), compute_dtype))
        out_specs.append(pl.BlockSpec((1, H * W, C), lambda n: (n, 0, 0)))

    itm = jnp.dtype(compute_dtype).itemsize
    n_out = 2 if is_last else 1
    flops = 2 * N * H * W * (9 * Cin * C + 9 * C * C + Cin * C)
    bytes_accessed = itm * (N * H * W * Cin + n_out * N * H * W * C
                            + 9 * Cin * C + 9 * C * C + Cin * C) + 4 * 3 * C

    results = pl.pallas_call(
        kern,
        out_shape=tuple(out_shapes),
        grid=(N,),
        in_specs=[
            pl.BlockSpec((1, H, W, Cin), lambda n: (n, 0, 0, 0)),   # x
            pl.BlockSpec((9 * Cin, C), lambda n: (0, 0)),           # w1 (im2col, bn1-scaled)
            pl.BlockSpec((1, C), lambda n: (0, 0)),                 # bn1 bias
            pl.BlockSpec((9 * C, C), lambda n: (0, 0)),             # w2 (im2col, bn2-scaled)
            pl.BlockSpec((1, C), lambda n: (0, 0)),                 # bn2 bias
            pl.BlockSpec((Cin, C), lambda n: (0, 0)),               # shortcut 1x1 w (scaled)
            pl.BlockSpec((1, C), lambda n: (0, 0)),                 # shortcut bn bias
        ],
        out_specs=tuple(out_specs),
        scratch_shapes=[
            pltpu.VMEM((H + 2, W + 2, Cin), compute_dtype),         # padded x
            pltpu.VMEM((H + 2, W + 2, C), compute_dtype),           # padded h (stays in VMEM)
            pltpu.VMEM((H * W, 9 * Cin), compute_dtype),            # conv1 im2col patches
            pltpu.VMEM((H * W, 9 * C), compute_dtype),              # conv2 im2col patches
        ],
        compiler_params=pltpu.CompilerParams(
            dimension_semantics=("parallel",),
            vmem_limit_bytes=32 * 1024 * 1024,
        ),
        cost_estimate=pl.CostEstimate(flops=flops, transcendentals=0,
                                      bytes_accessed=bytes_accessed),
    )(xb, w1f, b1, w2f, b2, wscf, bsc)

    if is_last:
        out_flat, pre_flat = results
        return out_flat.reshape(N, H, W, C), pre_flat.reshape(N, H, W, C)
    (out_flat,) = results
    return out_flat.reshape(N, H, W, C)


# ---------------------------------------------------------------------------
# Pure-JAX reference (same bf16 folded weights / same precision path)
# ---------------------------------------------------------------------------
def _ref_forward(x_bf16, w1f, b1, w2f, b2, wscf, bsc):
    dn = ("NHWC", "HWIO", "NHWC")
    Cin = x_bf16.shape[-1]
    C = b1.shape[-1]
    h = lax.conv_general_dilated(x_bf16, w1f.reshape(3, 3, Cin, C), (1, 1),
                                 ((1, 1), (1, 1)), dimension_numbers=dn,
                                 preferred_element_type=jnp.float32)
    h = jnp.maximum(h + b1.reshape(1, 1, 1, C), 0.0).astype(x_bf16.dtype)
    m = lax.conv_general_dilated(h, w2f.reshape(3, 3, C, C), (1, 1),
                                 ((1, 1), (1, 1)), dimension_numbers=dn,
                                 preferred_element_type=jnp.float32)
    sc = lax.conv_general_dilated(x_bf16, wscf[None, None, :, :], (1, 1),
                                  ((0, 0), (0, 0)), dimension_numbers=dn,
                                  preferred_element_type=jnp.float32)
    pre = m + b2.reshape(1, 1, 1, C) + sc + bsc.reshape(1, 1, 1, C)
    return jnp.maximum(pre, 0.0)


if __name__ == "__main__":
    N, H, W = 2, 16, 16
    in_planes, planes = 4, 8          # in_planes != planes -> conv shortcut path

    key = jax.random.PRNGKey(0)
    ks = jax.random.split(key, 12)
    x = jax.random.normal(ks[0], (N, H, W, in_planes), jnp.float32)

    params = {
        "w1": 0.1 * jax.random.normal(ks[1], (3, 3, in_planes, planes), jnp.float32),
        "w2": 0.1 * jax.random.normal(ks[2], (3, 3, planes, planes), jnp.float32),
        "w_sc": 0.1 * jax.random.normal(ks[3], (in_planes, planes), jnp.float32),
        "bn1": (1.0 + 0.1 * jax.random.normal(ks[4], (planes,)),    # gamma
                0.1 * jax.random.normal(ks[5], (planes,)),           # beta
                0.05 * jax.random.normal(ks[6], (planes,)),          # running_mean
                1.0 + 0.1 * jax.random.uniform(ks[7], (planes,))),   # running_var
        "bn2": (1.0 + 0.1 * jax.random.normal(ks[8], (planes,)),
                0.1 * jax.random.normal(ks[9], (planes,)),
                0.05 * jax.random.normal(ks[10], (planes,)),
                1.0 + 0.1 * jax.random.uniform(ks[11], (planes,))),
        "bn_sc": (jnp.ones((planes,)), jnp.zeros((planes,)),
                  jnp.zeros((planes,)), jnp.ones((planes,))),
    }

    # is_last=False path (single output)
    out = basic_block_forward(x, params, is_last=False)
    out = jax.block_until_ready(out)
    assert out.shape == (N, H, W, planes)

    # Reference with the identical bf16 folded parameters / precision path.
    w1f, b1, w2f, b2, wscf, bsc = _prepare_params(params, jnp.bfloat16)
    ref = _ref_forward(x.astype(jnp.bfloat16), w1f, b1, w2f, b2, wscf, bsc)
    assert jnp.allclose(out.astype(jnp.float32), ref, rtol=5e-2, atol=5e-2), \
        "mismatch vs JAX reference"

    # is_last=True path (out, preact)
    out_l, pre_l = basic_block_forward(x, params, is_last=True)
    out_l, pre_l = jax.block_until_ready((out_l, pre_l))
    assert out_l.shape == (N, H, W, planes) and pre_l.shape == (N, H, W, planes)
    assert jnp.allclose(out_l.astype(jnp.float32),
                        jnp.maximum(pre_l.astype(jnp.float32), 0.0), atol=1e-3)
    assert jnp.allclose(out_l.astype(jnp.float32), out.astype(jnp.float32), atol=1e-3)

    print("KERNEL_OK")
</pallas_src>

<mosaic_0001>
module attributes {stable_mosaic.version = 11 : i64} {
  func.func @_basic_block_kernel(%arg0: i32, %arg1: memref<1x16x16x4xbf16, #tpu.memory_space<vmem>>, %arg2: memref<36x8xbf16, #tpu.memory_space<vmem>>, %arg3: memref<1x8xf32, #tpu.memory_space<vmem>>, %arg4: memref<72x8xbf16, #tpu.memory_space<vmem>>, %arg5: memref<1x8xf32, #tpu.memory_space<vmem>>, %arg6: memref<4x8xbf16, #tpu.memory_space<vmem>>, %arg7: memref<1x8xf32, #tpu.memory_space<vmem>>, %arg8: memref<1x256x8xbf16, #tpu.memory_space<vmem>>, %arg9: memref<18x18x4xbf16, #tpu.memory_space<vmem>>, %arg10: memref<18x18x8xbf16, #tpu.memory_space<vmem>>, %arg11: memref<256x36xbf16, #tpu.memory_space<vmem>>, %arg12: memref<256x72xbf16, #tpu.memory_space<vmem>>) attributes {dimension_semantics = [#tpu.dimension_semantics<parallel>], iteration_bounds = array<i64: 2>, scalar_prefetch = 0 : i64, scratch_operands = 4 : i64, tpu.core_type = #tpu.core_type<tc>, window_params = [{transform_indices = @transform_0, window_bounds = array<i64: 1, 16, 16, 4>}, {pipeline_mode = #tpu.pipeline_mode<synchronous>, transform_indices = @transform_1, window_bounds = array<i64: 36, 8>}, {pipeline_mode = #tpu.pipeline_mode<synchronous>, transform_indices = @transform_2, window_bounds = array<i64: 1, 8>}, {pipeline_mode = #tpu.pipeline_mode<synchronous>, transform_indices = @transform_3, window_bounds = array<i64: 72, 8>}, {pipeline_mode = #tpu.pipeline_mode<synchronous>, transform_indices = @transform_4, window_bounds = array<i64: 1, 8>}, {pipeline_mode = #tpu.pipeline_mode<synchronous>, transform_indices = @transform_5, window_bounds = array<i64: 4, 8>}, {pipeline_mode = #tpu.pipeline_mode<synchronous>, transform_indices = @transform_6, window_bounds = array<i64: 1, 8>}, {transform_indices = @transform_7, window_bounds = array<i64: 1, 256, 8>}]} {
    %c0 = arith.constant 0 : index
    %c0_0 = arith.constant 0 : index
    %c0_1 = arith.constant 0 : index
    %c0_2 = arith.constant 0 : index
    %0 = vector.load %arg1[%c0, %c0_0, %c0_1, %c0_2] : memref<1x16x16x4xbf16, #tpu.memory_space<vmem>>, vector<1x16x16x4xbf16>
    %1 = vector.shape_cast %0 : vector<1x16x16x4xbf16> to vector<16x16x4xbf16>
    %cst = arith.constant 0.000000e+00 : bf16
    %2 = vector.broadcast %cst : bf16 to vector<18x18x4xbf16>
    %c0_3 = arith.constant 0 : index
    %c0_4 = arith.constant 0 : index
    %c0_5 = arith.constant 0 : index
    %3 = vector.load %arg9[%c0_3, %c0_4, %c0_5] : memref<18x18x4xbf16, #tpu.memory_space<vmem>>, vector<18x18x4xbf16>
    tpu.vector_store %arg9[%c0_3, %c0_4, %c0_5], %2 {strides = array<i32>} : memref<18x18x4xbf16, #tpu.memory_space<vmem>>, vector<18x18x4xbf16>,
    %c1 = arith.constant 1 : index
    %c1_6 = arith.constant 1 : index
    %c0_7 = arith.constant 0 : index
    %4 = vector.load %arg9[%c1, %c1_6, %c0_7] : memref<18x18x4xbf16, #tpu.memory_space<vmem>>, vector<16x16x4xbf16>
    tpu.vector_store %arg9[%c1, %c1_6, %c0_7], %1 {strides = array<i32>} : memref<18x18x4xbf16, #tpu.memory_space<vmem>>, vector<16x16x4xbf16>,
    %c0_8 = arith.constant 0 : index
    %c0_9 = arith.constant 0 : index
    %c0_10 = arith.constant 0 : index
    %5 = vector.load %arg9[%c0_8, %c0_9, %c0_10] : memref<18x18x4xbf16, #tpu.memory_space<vmem>>, vector<18x18x4xbf16>
    %6 = vector.extract_strided_slice %5 {offsets = [0, 0, 0], sizes = [16, 16, 4], strides = [1, 1, 1]} : vector<18x18x4xbf16> to vector<16x16x4xbf16>
    %7 = vector.shape_cast %6 : vector<16x16x4xbf16> to vector<256x4xbf16>
    %c0_11 = arith.constant 0 : index
    %c0_12 = arith.constant 0 : index
    %8 = vector.load %arg11[%c0_11, %c0_12] : memref<256x36xbf16, #tpu.memory_space<vmem>>, vector<256x4xbf16>
    tpu.vector_store %arg11[%c0_11, %c0_12], %7 {strides = array<i32>} : memref<256x36xbf16, #tpu.memory_space<vmem>>, vector<256x4xbf16>,
    %9 = vector.extract_strided_slice %5 {offsets = [0, 1, 0], sizes = [16, 16, 4], strides = [1, 1, 1]} : vector<18x18x4xbf16> to vector<16x16x4xbf16>
    %10 = vector.shape_cast %9 : vector<16x16x4xbf16> to vector<256x4xbf16>
    %c0_13 = arith.constant 0 : index
    %c4 = arith.constant 4 : index
    %11 = vector.load %arg11[%c0_13, %c4] : memref<256x36xbf16, #tpu.memory_space<vmem>>, vector<256x4xbf16>
    tpu.vector_store %arg11[%c0_13, %c4], %10 {strides = array<i32>} : memref<256x36xbf16, #tpu.memory_space<vmem>>, vector<256x4xbf16>,
    %12 = vector.extract_strided_slice %5 {offsets = [0, 2, 0], sizes = [16, 16, 4], strides = [1, 1, 1]} : vector<18x18x4xbf16> to vector<16x16x4xbf16>
    %13 = vector.shape_cast %12 : vector<16x16x4xbf16> to vector<256x4xbf16>
    %c0_14 = arith.constant 0 : index
    %c8 = arith.constant 8 : index
    %14 = vector.load %arg11[%c0_14, %c8] : memref<256x36xbf16, #tpu.memory_space<vmem>>, vector<256x4xbf16>
    tpu.vector_store %arg11[%c0_14, %c8], %13 {strides = array<i32>} : memref<256x36xbf16, #tpu.memory_space<vmem>>, vector<256x4xbf16>,
    %15 = vector.extract_strided_slice %5 {offsets = [1, 0, 0], sizes = [16, 16, 4], strides = [1, 1, 1]} : vector<18x18x4xbf16> to vector<16x16x4xbf16>
    %16 = vector.shape_cast %15 : vector<16x16x4xbf16> to vector<256x4xbf16>
    %c0_15 = arith.constant 0 : index
    %c12 = arith.constant 12 : index
    %17 = vector.load %arg11[%c0_15, %c12] : memref<256x36xbf16, #tpu.memory_space<vmem>>, vector<256x4xbf16>
    tpu.vector_store %arg11[%c0_15, %c12], %16 {strides = array<i32>} : memref<256x36xbf16, #tpu.memory_space<vmem>>, vector<256x4xbf16>,
    %18 = vector.extract_strided_slice %5 {offsets = [1, 1, 0], sizes = [16, 16, 4], strides = [1, 1, 1]} : vector<18x18x4xbf16> to vector<16x16x4xbf16>
    %19 = vector.shape_cast %18 : vector<16x16x4xbf16> to vector<256x4xbf16>
    %c0_16 = arith.constant 0 : index
    %c16 = arith.constant 16 : index
    %20 = vector.load %arg11[%c0_16, %c16] : memref<256x36xbf16, #tpu.memory_space<vmem>>, vector<256x4xbf16>
    tpu.vector_store %arg11[%c0_16, %c16], %19 {strides = array<i32>} : memref<256x36xbf16, #tpu.memory_space<vmem>>, vector<256x4xbf16>,
    %21 = vector.extract_strided_slice %5 {offsets = [1, 2, 0], sizes = [16, 16, 4], strides = [1, 1, 1]} : vector<18x18x4xbf16> to vector<16x16x4xbf16>
    %22 = vector.shape_cast %21 : vector<16x16x4xbf16> to vector<256x4xbf16>
    %c0_17 = arith.constant 0 : index
    %c20 = arith.constant 20 : index
    %23 = vector.load %arg11[%c0_17, %c20] : memref<256x36xbf16, #tpu.memory_space<vmem>>, vector<256x4xbf16>
    tpu.vector_store %arg11[%c0_17, %c20], %22 {strides = array<i32>} : memref<256x36xbf16, #tpu.memory_space<vmem>>, vector<256x4xbf16>,
    %24 = vector.extract_strided_slice %5 {offsets = [2, 0, 0], sizes = [16, 16, 4], strides = [1, 1, 1]} : vector<18x18x4xbf16> to vector<16x16x4xbf16>
    %25 = vector.shape_cast %24 : vector<16x16x4xbf16> to vector<256x4xbf16>
    %c0_18 = arith.constant 0 : index
    %c24 = arith.constant 24 : index
    %26 = vector.load %arg11[%c0_18, %c24] : memref<256x36xbf16, #tpu.memory_space<vmem>>, vector<256x4xbf16>
    tpu.vector_store %arg11[%c0_18, %c24], %25 {strides = array<i32>} : memref<256x36xbf16, #tpu.memory_space<vmem>>, vector<256x4xbf16>,
    %27 = vector.extract_strided_slice %5 {offsets = [2, 1, 0], sizes = [16, 16, 4], strides = [1, 1, 1]} : vector<18x18x4xbf16> to vector<16x16x4xbf16>
    %28 = vector.shape_cast %27 : vector<16x16x4xbf16> to vector<256x4xbf16>
    %c0_19 = arith.constant 0 : index
    %c28 = arith.constant 28 : index
    %29 = vector.load %arg11[%c0_19, %c28] : memref<256x36xbf16, #tpu.memory_space<vmem>>, vector<256x4xbf16>
    tpu.vector_store %arg11[%c0_19, %c28], %28 {strides = array<i32>} : memref<256x36xbf16, #tpu.memory_space<vmem>>, vector<256x4xbf16>,
    %30 = vector.extract_strided_slice %5 {offsets = [2, 2, 0], sizes = [16, 16, 4], strides = [1, 1, 1]} : vector<18x18x4xbf16> to vector<16x16x4xbf16>
    %31 = vector.shape_cast %30 : vector<16x16x4xbf16> to vector<256x4xbf16>
    %c0_20 = arith.constant 0 : index
    %c32 = arith.constant 32 : index
    %32 = vector.load %arg11[%c0_20, %c32] : memref<256x36xbf16, #tpu.memory_space<vmem>>, vector<256x4xbf16>
    tpu.vector_store %arg11[%c0_20, %c32], %31 {strides = array<i32>} : memref<256x36xbf16, #tpu.memory_space<vmem>>, vector<256x4xbf16>,
    %c0_21 = arith.constant 0 : index
    %c0_22 = arith.constant 0 : index
    %33 = vector.load %arg11[%c0_21, %c0_22] : memref<256x36xbf16, #tpu.memory_space<vmem>>, vector<256x36xbf16>
    %c0_23 = arith.constant 0 : index
    %c0_24 = arith.constant 0 : index
    %34 = vector.load %arg2[%c0_23, %c0_24] : memref<36x8xbf16, #tpu.memory_space<vmem>>, vector<36x8xbf16>
    %cst_25 = arith.constant dense<0.000000e+00> : vector<256x8xf32>
    %35 = tpu.matmul %33, %34, %cst_25 {dimension_numbers = #tpu.dot_dimension_numbers<[1], [0], [0], [1], [0, 0, 1, 1], [], []>} : vector<256x36xbf16>, vector<36x8xbf16>, vector<256x8xf32> -> vector<256x8xf32>
    %c0_26 = arith.constant 0 : index
    %c0_27 = arith.constant 0 : index
    %36 = vector.load %arg3[%c0_26, %c0_27] : memref<1x8xf32, #tpu.memory_space<vmem>>, vector<1x8xf32>
    %37 = vector.broadcast %36 : vector<1x8xf32> to vector<256x8xf32>
    %38 = arith.addf %35, %37 : vector<256x8xf32>
    %cst_28 = arith.constant 0.000000e+00 : f32
    %39 = vector.broadcast %cst_28 : f32 to vector<256x8xf32>
    %40 = arith.maximumf %38, %39 : vector<256x8xf32>
    %cst_29 = arith.constant 0.000000e+00 : bf16
    %41 = vector.broadcast %cst_29 : bf16 to vector<18x18x8xbf16>
    %c0_30 = arith.constant 0 : index
    %c0_31 = arith.constant 0 : index
    %c0_32 = arith.constant 0 : index
    %42 = vector.load %arg10[%c0_30, %c0_31, %c0_32] : memref<18x18x8xbf16, #tpu.memory_space<vmem>>, vector<18x18x8xbf16>
    tpu.vector_store %arg10[%c0_30, %c0_31, %c0_32], %41 {strides = array<i32>} : memref<18x18x8xbf16, #tpu.memory_space<vmem>>, vector<18x18x8xbf16>,
    %43 = arith.truncf %40 : vector<256x8xf32> to vector<256x8xbf16>
    %44 = vector.shape_cast %43 : vector<256x8xbf16> to vector<16x16x8xbf16>
    %c1_33 = arith.constant 1 : index
    %c1_34 = arith.constant 1 : index
    %c0_35 = arith.constant 0 : index
    %45 = vector.load %arg10[%c1_33, %c1_34, %c0_35] : memref<18x18x8xbf16, #tpu.memory_space<vmem>>, vector<16x16x8xbf16>
    tpu.vector_store %arg10[%c1_33, %c1_34, %c0_35], %44 {strides = array<i32>} : memref<18x18x8xbf16, #tpu.memory_space<vmem>>, vector<16x16x8xbf16>,
    %c0_36 = arith.constant 0 : index
    %c0_37 = arith.constant 0 : index
    %c0_38 = arith.constant 0 : index
    %46 = vector.load %arg10[%c0_36, %c0_37, %c0_38] : memref<18x18x8xbf16, #tpu.memory_space<vmem>>, vector<18x18x8xbf16>
    %47 = vector.extract_strided_slice %46 {offsets = [0, 0, 0], sizes = [16, 16, 8], strides = [1, 1, 1]} : vector<18x18x8xbf16> to vector<16x16x8xbf16>
    %48 = vector.shape_cast %47 : vector<16x16x8xbf16> to vector<256x8xbf16>
    %c0_39 = arith.constant 0 : index
    %c0_40 = arith.constant 0 : index
    %49 = vector.load %arg12[%c0_39, %c0_40] : memref<256x72xbf16, #tpu.memory_space<vmem>>, vector<256x8xbf16>
    tpu.vector_store %arg12[%c0_39, %c0_40], %48 {strides = array<i32>} : memref<256x72xbf16, #tpu.memory_space<vmem>>, vector<256x8xbf16>,
    %50 = vector.extract_strided_slice %46 {offsets = [0, 1, 0], sizes = [16, 16, 8], strides = [1, 1, 1]} : vector<18x18x8xbf16> to vector<16x16x8xbf16>
    %51 = vector.shape_cast %50 : vector<16x16x8xbf16> to vector<256x8xbf16>
    %c0_41 = arith.constant 0 : index
    %c8_42 = arith.constant 8 : index
    %52 = vector.load %arg12[%c0_41, %c8_42] : memref<256x72xbf16, #tpu.memory_space<vmem>>, vector<256x8xbf16>
    tpu.vector_store %arg12[%c0_41, %c8_42], %51 {strides = array<i32>} : memref<256x72xbf16, #tpu.memory_space<vmem>>, vector<256x8xbf16>,
    %53 = vector.extract_strided_slice %46 {offsets = [0, 2, 0], sizes = [16, 16, 8], strides = [1, 1, 1]} : vector<18x18x8xbf16> to vector<16x16x8xbf16>
    %54 = vector.shape_cast %53 : vector<16x16x8xbf16> to vector<256x8xbf16>
    %c0_43 = arith.constant 0 : index
    %c16_44 = arith.constant 16 : index
    %55 = vector.load %arg12[%c0_43, %c16_44] : memref<256x72xbf16, #tpu.memory_space<vmem>>, vector<256x8xbf16>
    tpu.vector_store %arg12[%c0_43, %c16_44], %54 {strides = array<i32>} : memref<256x72xbf16, #tpu.memory_space<vmem>>, vector<256x8xbf16>,
    %56 = vector.extract_strided_slice %46 {offsets = [1, 0, 0], sizes = [16, 16, 8], strides = [1, 1, 1]} : vector<18x18x8xbf16> to vector<16x16x8xbf16>
    %57 = vector.shape_cast %56 : vector<16x16x8xbf16> to vector<256x8xbf16>
    %c0_45 = arith.constant 0 : index
    %c24_46 = arith.constant 24 : index
    %58 = vector.load %arg12[%c0_45, %c24_46] : memref<256x72xbf16, #tpu.memory_space<vmem>>, vector<256x8xbf16>
    tpu.vector_store %arg12[%c0_45, %c24_46], %57 {strides = array<i32>} : memref<256x72xbf16, #tpu.memory_space<vmem>>, vector<256x8xbf16>,
    %59 = vector.extract_strided_slice %46 {offsets = [1, 1, 0], sizes = [16, 16, 8], strides = [1, 1, 1]} : vector<18x18x8xbf16> to vector<16x16x8xbf16>
    %60 = vector.shape_cast %59 : vector<16x16x8xbf16> to vector<256x8xbf16>
    %c0_47 = arith.constant 0 : index
    %c32_48 = arith.constant 32 : index
    %61 = vector.load %arg12[%c0_47, %c32_48] : memref<256x72xbf16, #tpu.memory_space<vmem>>, vector<256x8xbf16>
    tpu.vector_store %arg12[%c0_47, %c32_48], %60 {strides = array<i32>} : memref<256x72xbf16, #tpu.memory_space<vmem>>, vector<256x8xbf16>,
    %62 = vector.extract_strided_slice %46 {offsets = [1, 2, 0], sizes = [16, 16, 8], strides = [1, 1, 1]} : vector<18x18x8xbf16> to vector<16x16x8xbf16>
    %63 = vector.shape_cast %62 : vector<16x16x8xbf16> to vector<256x8xbf16>
    %c0_49 = arith.constant 0 : index
    %c40 = arith.constant 40 : index
    %64 = vector.load %arg12[%c0_49, %c40] : memref<256x72xbf16, #tpu.memory_space<vmem>>, vector<256x8xbf16>
    tpu.vector_store %arg12[%c0_49, %c40], %63 {strides = array<i32>} : memref<256x72xbf16, #tpu.memory_space<vmem>>, vector<256x8xbf16>,
    %65 = vector.extract_strided_slice %46 {offsets = [2, 0, 0], sizes = [16, 16, 8], strides = [1, 1, 1]} : vector<18x18x8xbf16> to vector<16x16x8xbf16>
    %66 = vector.shape_cast %65 : vector<16x16x8xbf16> to vector<256x8xbf16>
    %c0_50 = arith.constant 0 : index
    %c48 = arith.constant 48 : index
    %67 = vector.load %arg12[%c0_50, %c48] : memref<256x72xbf16, #tpu.memory_space<vmem>>, vector<256x8xbf16>
    tpu.vector_store %arg12[%c0_50, %c48], %66 {strides = array<i32>} : memref<256x72xbf16, #tpu.memory_space<vmem>>, vector<256x8xbf16>,
    %68 = vector.extract_strided_slice %46 {offsets = [2, 1, 0], sizes = [16, 16, 8], strides = [1, 1, 1]} : vector<18x18x8xbf16> to vector<16x16x8xbf16>
    %69 = vector.shape_cast %68 : vector<16x16x8xbf16> to vector<256x8xbf16>
    %c0_51 = arith.constant 0 : index
    %c56 = arith.constant 56 : index
    %70 = vector.load %arg12[%c0_51, %c56] : memref<256x72xbf16, #tpu.memory_space<vmem>>, vector<256x8xbf16>
    tpu.vector_store %arg12[%c0_51, %c56], %69 {strides = array<i32>} : memref<256x72xbf16, #tpu.memory_space<vmem>>, vector<256x8xbf16>,
    %71 = vector.extract_strided_slice %46 {offsets = [2, 2, 0], sizes = [16, 16, 8], strides = [1, 1, 1]} : vector<18x18x8xbf16> to vector<16x16x8xbf16>
    %72 = vector.shape_cast %71 : vector<16x16x8xbf16> to vector<256x8xbf16>
    %c0_52 = arith.constant 0 : index
    %c64 = arith.constant 64 : index
    %73 = vector.load %arg12[%c0_52, %c64] : memref<256x72xbf16, #tpu.memory_space<vmem>>, vector<256x8xbf16>
    tpu.vector_store %arg12[%c0_52, %c64], %72 {strides = array<i32>} : memref<256x72xbf16, #tpu.memory_space<vmem>>, vector<256x8xbf16>,
    %c0_53 = arith.constant 0 : index
    %c0_54 = arith.constant 0 : index
    %74 = vector.load %arg12[%c0_53, %c0_54] : memref<256x72xbf16, #tpu.memory_space<vmem>>, vector<256x72xbf16>
    %c0_55 = arith.constant 0 : index
    %c0_56 = arith.constant 0 : index
    %75 = vector.load %arg4[%c0_55, %c0_56] : memref<72x8xbf16, #tpu.memory_space<vmem>>, vector<72x8xbf16>
    %cst_57 = arith.constant dense<0.000000e+00> : vector<256x8xf32>
    %76 = tpu.matmul %74, %75, %cst_57 {dimension_numbers = #tpu.dot_dimension_numbers<[1], [0], [0], [1], [0, 0, 1, 1], [], []>} : vector<256x72xbf16>, vector<72x8xbf16>, vector<256x8xf32> -> vector<256x8xf32>
    %77 = vector.shape_cast %1 : vector<16x16x4xbf16> to vector<256x4xbf16>
    %c0_58 = arith.constant 0 : index
    %c0_59 = arith.constant 0 : index
    %78 = vector.load %arg6[%c0_58, %c0_59] : memref<4x8xbf16, #tpu.memory_space<vmem>>, vector<4x8xbf16>
    %cst_60 = arith.constant dense<0.000000e+00> : vector<256x8xf32>
    %79 = tpu.matmul %77, %78, %cst_60 {dimension_numbers = #tpu.dot_dimension_numbers<[1], [0], [0], [1], [0, 0, 1, 1], [], []>} : vector<256x4xbf16>, vector<4x8xbf16>, vector<256x8xf32> -> vector<256x8xf32>
    %c0_61 = arith.constant 0 : index
    %c0_62 = arith.constant 0 : index
    %80 = vector.load %arg5[%c0_61, %c0_62] : memref<1x8xf32, #tpu.memory_space<vmem>>, vector<1x8xf32>
    %81 = vector.broadcast %80 : vector<1x8xf32> to vector<256x8xf32>
    %82 = arith.addf %76, %81 : vector<256x8xf32>
    %83 = arith.addf %82, %79 : vector<256x8xf32>
    %c0_63 = arith.constant 0 : index
    %c0_64 = arith.constant 0 : index
    %84 = vector.load %arg7[%c0_63, %c0_64] : memref<1x8xf32, #tpu.memory_space<vmem>>, vector<1x8xf32>
    %85 = vector.broadcast %84 : vector<1x8xf32> to vector<256x8xf32>
    %86 = arith.addf %83, %85 : vector<256x8xf32>
    %cst_65 = arith.constant 0.000000e+00 : f32
    %87 = vector.broadcast %cst_65 : f32 to vector<256x8xf32>
    %88 = arith.maximumf %86, %87 : vector<256x8xf32>
    %89 = arith.truncf %88 : vector<256x8xf32> to vector<256x8xbf16>
    %c0_66 = arith.constant 0 : index
    %c0_67 = arith.constant 0 : index
    %c0_68 = arith.constant 0 : index
    %90 = vector.load %arg8[%c0_66, %c0_67, %c0_68] : memref<1x256x8xbf16, #tpu.memory_space<vmem>>, vector<1x256x8xbf16>
    %91 = vector.shape_cast %90 : vector<1x256x8xbf16> to vector<256x8xbf16>
    %92 = vector.shape_cast %89 : vector<256x8xbf16> to vector<1x256x8xbf16>
    tpu.vector_store %arg8[%c0_66, %c0_67, %c0_68], %92 {strides = array<i32>} : memref<1x256x8xbf16, #tpu.memory_space<vmem>>, vector<1x256x8xbf16>,
    return
  }
  func.func @transform_0(%arg0: i32) -> (i32, i32, i32, i32) {
    %c0_i32 = arith.constant 0 : i32
    %c0_i32_0 = arith.constant 0 : i32
    %c0_i32_1 = arith.constant 0 : i32
    %c0_i32_2 = arith.constant 0 : i32
    return %arg0, %c0_i32, %c0_i32_0, %c0_i32_1 : i32, i32, i32, i32
  }
  func.func @transform_1(%arg0: i32) -> (i32, i32) {
    %c0_i32 = arith.constant 0 : i32
    %c0_i32_0 = arith.constant 0 : i32
    %c0_i32_1 = arith.constant 0 : i32
    return %c0_i32, %c0_i32_0 : i32, i32
  }
  func.func @transform_2(%arg0: i32) -> (i32, i32) {
    %c0_i32 = arith.constant 0 : i32
    %c0_i32_0 = arith.constant 0 : i32
    %c0_i32_1 = arith.constant 0 : i32
    return %c0_i32, %c0_i32_0 : i32, i32
  }
  func.func @transform_3(%arg0: i32) -> (i32, i32) {
    %c0_i32 = arith.constant 0 : i32
    %c0_i32_0 = arith.constant 0 : i32
    %c0_i32_1 = arith.constant 0 : i32
    return %c0_i32, %c0_i32_0 : i32, i32
  }
  func.func @transform_4(%arg0: i32) -> (i32, i32) {
    %c0_i32 = arith.constant 0 : i32
    %c0_i32_0 = arith.constant 0 : i32
    %c0_i32_1 = arith.constant 0 : i32
    return %c0_i32, %c0_i32_0 : i32, i32
  }
  func.func @transform_5(%arg0: i32) -> (i32, i32) {
    %c0_i32 = arith.constant 0 : i32
    %c0_i32_0 = arith.constant 0 : i32
    %c0_i32_1 = arith.constant 0 : i32
    return %c0_i32, %c0_i32_0 : i32, i32
  }
  func.func @transform_6(%arg0: i32) -> (i32, i32) {
    %c0_i32 = arith.constant 0 : i32
    %c0_i32_0 = arith.constant 0 : i32
    %c0_i32_1 = arith.constant 0 : i32
    return %c0_i32, %c0_i32_0 : i32, i32
  }
  func.func @transform_7(%arg0: i32) -> (i32, i32, i32) {
    %c0_i32 = arith.constant 0 : i32
    %c0_i32_0 = arith.constant 0 : i32
    %c0_i32_1 = arith.constant 0 : i32
    return %arg0, %c0_i32, %c0_i32_0 : i32, i32, i32
  }
}

</mosaic_0001>

<bundles_post_ra>
// kernel: tpu_custom_call.1
= control target key start
LH: loop header
LB: loop body
LE: loop exit
PB: predicated region body
PF: predicated region fallthrough
CT: control target
= control target key end

     0   :  { %s6096_s24 = smov 0   ;;  %s8887_s0 = inlined_call_operand.vmem [shape: bf16[2,16,16,4], index: 0, kind: input, shape index: {}]   ;;  %s8888_s1 = inlined_call_operand.vmem [shape: bf16[36,8], index: 1, kind: input, shape index: {}]   ;;  %s8889_s2 = inlined_call_operand.vmem [shape: f32[1,8], index: 2, kind: input, shape index: {}]   ;;  %s8890_s3 = inlined_call_operand.vmem [shape: bf16[72,8], index: 3, kind: input, shape index: {}]   ;;  %s8891_s4 = inlined_call_operand.vmem [shape: f32[1,8], index: 4, kind: input, shape index: {}]   ;;  %s8892_s5 = inlined_call_operand.vmem [shape: bf16[4,8], index: 5, kind: input, shape index: {}]   ;;  %s8893_s6 = inlined_call_operand.vmem [shape: f32[1,8], index: 6, kind: input, shape index: {}]   ;;  %s8894_s7 = inlined_call_operand.vmem [shape: bf16[2,256,8], index: 7, kind: output, shape index: {}]  }
   0x1 LB: > { %s5339_s25 = sadd.s32 4294967295, %s6041_s24   ;;  %p5343_p0 = scmp.ge.s32.totalorder %s6041_s24, 1  ;;  %s6041_s24 = sphi %s6096_s24, %s17_s24  }
   0x2   : > { %p237_p1 = scmp.lt.s32.totalorder %s6041_s24, 3 }
   0x4   : > { %p238_p2 = pnand %p5343_p0, %p237_p1 }
   0x5   : > { %vm312_vm0 = vcmask (!%p238_p2), 27648   ;;  %vm315_vm1 = vcmask (!%p238_p2), 24576   ;;  %v6043_v0 = vmov (!%p238_p2), 0   ;;  %p269_p3 = scmp.lt.s32.totalorder (!%p238_p2), %s5339_s25, 1  ;;  %vm976_vm2 = vsmask.f32 (!%p238_p2), 3328 }
   0x6   : > { %241 = sbr.rel (%p238_p2) target bundleno = 1060 (0x424), region = 48  ;;  %313 = vst.msk [vmem:[#allocation2] sm:$0xf] (!%p238_p2), %vm312_vm0, %v6043_v0  ;;  %314 = vst.msk [vmem:[#allocation2 + $0x4] sm:$0xf] (!%p238_p2), %vm312_vm0, %v6043_v0  ;;  %vm1492_vm4 = vcmask (!%p238_p2), 1042432  }
   0x7   : > { %316 = vst.msk [vmem:[#allocation2 + $0x8] sm:$0x1] (!%p238_p2), %vm315_vm1, %v6043_v0  ;;  %319 = vst.msk [vmem:[#allocation2 + $0x14] sm:$0x1] (!%p238_p2), %vm315_vm1, %v6043_v0  ;;  %vm977_vm3 = vsmask.f32 (!%p238_p2), 7440 }
   0x8   : > { %317 = vst.msk [vmem:[#allocation2 + $0xc] sm:$0xf] (!%p238_p2), %vm312_vm0, %v6043_v0  ;;  %318 = vst.msk [vmem:[#allocation2 + $0x10] sm:$0xf] (!%p238_p2), %vm312_vm0, %v6043_v0  ;;  %vm1493_vm5 = vcmask (!%p238_p2), 1046532   ;;  %s6044_s30 = smov (!%p238_p2), 8  }
   0x9   : > { %320 = vst.msk [vmem:[#allocation2 + $0x18] sm:$0xf] (!%p238_p2), %vm312_vm0, %v6043_v0  ;;  %321 = vst.msk [vmem:[#allocation2 + $0x1c] sm:$0xf] (!%p238_p2), %vm312_vm0, %v6043_v0  ;;  %vm368_vm6 = vsmask.f32 (!%p238_p2), 256 }
   0xa   : > { %322 = vst.msk [vmem:[#allocation2 + $0x20] sm:$0x1] (!%p238_p2), %vm315_vm1, %v6043_v0  ;;  %325 = vst.msk [vmem:[#allocation2 + $0x2c] sm:$0x1] (!%p238_p2), %vm315_vm1, %v6043_v0  ;;  %vm369_vm7 = vsmask.f32 (!%p238_p2), 4368 }
   0xb   : > { %323 = vst.msk [vmem:[#allocation2 + $0x24] sm:$0xf] (!%p238_p2), %vm312_vm0, %v6043_v0  ;;  %324 = vst.msk [vmem:[#allocation2 + $0x28] sm:$0xf] (!%p238_p2), %vm312_vm0, %v6043_v0  ;;  %vm693_vm8 = vsmask.f32 (!%p238_p2), 7938 }
   0xc   : > { %326 = vst.msk [vmem:[#allocation2 + $0x30] sm:$0xf] (!%p238_p2), %vm312_vm0, %v6043_v0  ;;  %327 = vst.msk [vmem:[#allocation2 + $0x34] sm:$0xf] (!%p238_p2), %vm312_vm0, %v6043_v0  ;;  %s6045_s8 = smov (!%p238_p2), 4   ;;  %s6046_s9 = smov (!%p238_p2), 12  }
   0xd   : > { %328 = vst.msk [vmem:[#allocation2 + $0x38] sm:$0x1] %vm315_vm1, %v6043_v0  ;;  %331 = vst.msk [vmem:[#allocation2 + $0x44] sm:$0x1] %vm315_vm1, %v6043_v0  ;;  %s8930_s25 = smov (!%p269_p3, %s5339_s25), 1  ;;  %s6047_s10 = smov 24  }
   0xe   : > { %329 = vst.msk [vmem:[#allocation2 + $0x3c] sm:$0xf] %vm312_vm0, %v6043_v0  ;;  %330 = vst.msk [vmem:[#allocation2 + $0x40] sm:$0xf] %vm312_vm0, %v6043_v0  ;;  %s5633_s26 = sshll.u32 %s8930_s25, 7  ;;  %s6048_s11 = smov 20  }
   0xf   : > { %332 = vst.msk [vmem:[#allocation2 + $0x48] sm:$0xf] %vm312_vm0, %v6043_v0  ;;  %333 = vst.msk [vmem:[#allocation2 + $0x4c] sm:$0xf] %vm312_vm0, %v6043_v0  ;;  %s6224_s29 = scalar_lea.vmem %s8887_s0, %s5633_s26  ;;  %v6226_v1 = vld [vmem:[#allocation2] sm:$0xf] }
  0x10   : > { %334 = vst.msk [vmem:[#allocation2 + $0x50] sm:$0x1] %vm315_vm1, %v6043_v0  ;;  %337 = vst.msk [vmem:[#allocation2 + $0x5c] sm:$0x1] %vm315_vm1, %v6043_v0  ;;  %v6228_v2 = vld [vmem:[#allocation2 + $0x4] sm:$0xf] }
  0x11   : > { %335 = vst.msk [vmem:[#allocation2 + $0x54] sm:$0xf] %vm312_vm0, %v6043_v0  ;;  %336 = vst.msk [vmem:[#allocation2 + $0x58] sm:$0xf] %vm312_vm0, %v6043_v0  ;;  %v811_v3 = vld [vmem:[#allocation2 + $0x8] sm:$0x1] }
  0x12   : > { %338 = vst.msk [vmem:[#allocation2 + $0x60] sm:$0xf] %vm312_vm0, %v6043_v0  ;;  %339 = vst.msk [vmem:[#allocation2 + $0x64] sm:$0xf] %vm312_vm0, %v6043_v0  ;;  %v980_v4 = vshrl.u32 %v6226_v1, 16  ;;  %v983_v5 = vshll.u32 %v6226_v1, 16 }
  0x13   : > { %340 = vst.msk [vmem:[#allocation2 + $0x68] sm:$0x1] %vm315_vm1, %v6043_v0  ;;  %343 = vst.msk [vmem:[#allocation2 + $0x74] sm:$0x1] %vm315_vm1, %v6043_v0  ;;  %v989_v6 = vshll.u32 %v6228_v2, 16  ;;  %v993_v7 = vshrl.u32 %v6228_v2, 16 }
  0x14   : > { %341 = vst.msk [vmem:[#allocation2 + $0x6c] sm:$0xf] %vm312_vm0, %v6043_v0  ;;  %342 = vst.msk [vmem:[#allocation2 + $0x70] sm:$0xf] %vm312_vm0, %v6043_v0  ;;  %v280_v9 = vld [vmem:[%s6224_s29] sm:$0xf] }
  0x15   : > { %344 = vst.msk [vmem:[#allocation2 + $0x78] sm:$0xf] %vm312_vm0, %v6043_v0  ;;  %345 = vst.msk [vmem:[#allocation2 + $0x7c] sm:$0xf] %vm312_vm0, %v6043_v0  ;;  %v999_v10 = vshll.u32 %v811_v3, 16  ;;  %v5380_v11 = vrot.slane %v6226_v1, 9 }
  0x16   : > { %346 = vst.msk [vmem:[#allocation2 + $0x80] sm:$0x1] %vm315_vm1, %v6043_v0  ;;  %349 = vst.msk [vmem:[#allocation2 + $0x8c] sm:$0x1] %vm315_vm1, %v6043_v0  ;;  %v1497_v12 = vrot.slane %v6228_v2, 5  ;;  %v1500_v13 = vrot.slane %v811_v3, 5 }
  0x17   : > { %347 = vst.msk [vmem:[#allocation2 + $0x84] sm:$0xf] %vm312_vm0, %v6043_v0  ;;  %348 = vst.msk [vmem:[#allocation2 + $0x88] sm:$0xf] %vm312_vm0, %v6043_v0  ;;  %v281_v14 = vld [vmem:[%s6224_s29 + $0x4] sm:$0xf] }
  0x18   : > { %350 = vst.msk [vmem:[#allocation2 + $0x90] sm:$0xf] %vm312_vm0, %v6043_v0  ;;  %351 = vst.msk [vmem:[#allocation2 + $0x94] sm:$0xf] %vm312_vm0, %v6043_v0  ;;  %v982_v15 = vrot.slane %v980_v4, 4  ;;  %v985_v16 = vrot.slane %v983_v5, 5 }
  0x19   : > { %352 = vst.msk [vmem:[#allocation2 + $0x98] sm:$0x1] %vm315_vm1, %v6043_v0  ;;  %355 = vst.msk [vmem:[#allocation2 + $0xa4] sm:$0x1] %vm315_vm1, %v6043_v0  ;;  %v991_v17 = vrot.slane %v989_v6, 5  ;;  %v995_v18 = vrot.slane %v993_v7, 4 }
  0x1a   : > { %353 = vst.msk [vmem:[#allocation2 + $0x9c] sm:$0xf] %vm312_vm0, %v6043_v0  ;;  %354 = vst.msk [vmem:[#allocation2 + $0xa0] sm:$0xf] %vm312_vm0, %v6043_v0  ;;  %v282_v19 = vld [vmem:[%s6224_s29 + $0x8] sm:$0xf]  ;;  %v986_v24 = vor.u32 %v985_v16, %v982_v15 }
  0x1b   : > { %356 = vst.msk [vmem:[#allocation2 + $0xa8] sm:$0xf] %vm312_vm0, %v6043_v0  ;;  %357 = vst.msk [vmem:[#allocation2 + $0xac] sm:$0xf] %vm312_vm0, %v6043_v0  ;;  %v1001_v20 = vrot.slane %v999_v10, 5  ;;  %v1499_v22 = vrot.slane %v1497_v12, 4  ;;  %v996_v25 = vor.u32 %v995_v18, %v991_v17 }
  0x1c   : > { %358 = vst.msk [vmem:[#allocation2 + $0xb0] sm:$0x1] %vm315_vm1, %v6043_v0  ;;  %361 = vst.msk [vmem:[#allocation2 + $0xbc] sm:$0x1] %vm315_vm1, %v6043_v0  ;;  %v372_v23 = vshrl.u32 %v280_v9, 16  ;;  %v375_v26 = vshll.u32 %v280_v9, 16 }
  0x1d   : > { %359 = vst.msk [vmem:[#allocation2 + $0xb4] sm:$0xf] %vm312_vm0, %v6043_v0  ;;  %360 = vst.msk [vmem:[#allocation2 + $0xb8] sm:$0xf] %vm312_vm0, %v6043_v0  ;;  %v380_v27 = vshrl.u32 %v281_v14, 16  ;;  %v383_v31 = vshll.u32 %v281_v14, 16 }
  0x1e   : > { %362 = vst.msk [vmem:[#allocation2 + $0xc0] sm:$0xf] %vm312_vm0, %v6043_v0  ;;  %363 = vst.msk [vmem:[#allocation2 + $0xc4] sm:$0xf] %vm312_vm0, %v6043_v0  ;;  %v374_v30 = vrot.slane %v372_v23, 7  ;;  %v389_v33 = vshrl.u32 %v282_v19, 16 }
  0x1f   : > { %364 = vst.msk [vmem:[#allocation2 + $0xc8] sm:$0x1] %vm315_vm1, %v6043_v0  ;;  %367 = vst.msk [vmem:[#allocation2 + $0xd4] sm:$0x1] %vm315_vm1, %v6043_v0  ;;  %v283_v32 = vld [vmem:[%s6224_s29 + $0xc] sm:$0xf] }
  0x20   : > { %365 = vst.msk [vmem:[#allocation2 + $0xcc] sm:$0xf] %vm312_vm0, %v6043_v0  ;;  %366 = vst.msk [vmem:[#allocation2 + $0xd0] sm:$0xf] %vm312_vm0, %v6043_v0  ;;  %v987_v34 = vrot.slane %v986_v24, 4  ;;  %v997_v35 = vrot.slane %v996_v25, 4  ;;  %v377_v41 = vor.u32 %v375_v26, %v374_v30 }
  0x21   : > { %vm6234_vm9 = vmor %vm1492_vm4, %vm1493_vm5  ;;  %v382_v37 = vrot.slane %v380_v27, 7  ;;  %v695_v39 = vld [vmem:[#allocation2 + $0xc] sm:$0xf]  ;;  %v378_v42 = vrot.slane %v374_v30, 4  ;;  %v391_v43 = vrot.slane %v389_v33, 7  ;;  %v392_v44 = vshll.u32 %v282_v19, 16 }
  0x22   : > { %v1498_v21 = vsel %vm6234_vm9, %v5380_v11, %v1497_v12  ;;  %vm6247_vm10 = vmor %vm976_vm2, %vm977_vm3  ;;  %v1501_v29 = vsel %vm6234_vm9, %v1499_v22, %v1500_v13  ;;  %v284_v45 = vld [vmem:[%s6224_s29 + $0x10] sm:$0xf]  ;;  %v397_v49 = vshrl.u32 %v283_v32, 16  ;;  %v704_v50 = vld [vmem:[#allocation2 + $0x18] sm:$0xf]  ;;  %v400_v59 = vshll.u32 %v283_v32, 16 }
  0x23   : > { %v5396_v36 = vcombine.low %v1498_v21, %v1501_v29  ;;  %vm6256_vm11 = vmand %vm312_vm0, %vm693_vm8  ;;  %v992_v46 = vsel %vm6247_vm10, %v987_v34, %v991_v17  ;;  %v1002_v47 = vsel %vm6247_vm10, %v997_v35, %v1001_v20  ;;  %v385_v48 = vor.u32 %v383_v31, %v382_v37  ;;  %v285_v51 = vld [vmem:[%s6224_s29 + $0x14] sm:$0xf]  ;;  %v286_v56 = vld [vmem:[%s6224_s29 + $0x18] sm:$0xf]  ;;  %s6049_s12 = smov 32   ;;  %s6050_s17 = smov 16  }
  0x24   : > { %vm6262_vm12 = vmor %vm368_vm6, %vm369_vm7  ;;  %v5364_v52 = vcombine.low %v992_v46, %v1002_v47  ;;  %v696_v53 = vsel %vm6256_vm11, %v377_v41, %v695_v39  ;;  %v394_v54 = vor.u32 %v392_v44, %v391_v43  ;;  %v395_v55 = vrot.slane %v391_v43, 4  ;;  %v287_v61 = vld [vmem:[%s6224_s29 + $0x1c] sm:$0xf]  ;;  %v701_v6 = vld [vmem:[#allocation2 + $0x14] sm:$0x1]  ;;  %s6051_s18 = smov 28  }
  0x25   : > { %1655 = vrot.lane.b32.xlu1 %v5396_v36, %s6044_s30  ;;  %v386_v57 = vsel %vm6262_vm12, %v378_v42, %v385_v48  ;;  %697 = vst [vmem:[#allocation2 + $0xc] sm:$0xf] %v696_v53  ;;  %v399_v58 = vrot.slane %v397_v49, 7  ;;  %v406_v60 = vshrl.u32 %v284_v45, 16  ;;  %v409_v63 = vshll.u32 %v284_v45, 16  ;;  %vm6285_vm13 = vmand %vm315_vm1, %vm368_vm6  ;;  %s6052_s23 = smov 48  }
  0x26   : > { %1411 = vrot.lane.b32.xlu0 %v5364_v52, %s6045_s8  ;;  %698 = vst.msk [vmem:[#allocation2 + $0x10] sm:$0xf] %vm312_vm0, %v386_v57  ;;  %v705_v62 = vsel %vm6256_vm11, %v394_v54, %v704_v50  ;;  %v414_v3 = vshrl.u32 %v285_v51, 16  ;;  %v417_v4 = vshll.u32 %v285_v51, 16  ;;  %v387_v10 = vrot.slane %v382_v37, 4  ;;  %s6053_s27 = smov 40  }
  0x27   : > { %v402_v7 = vor.u32 %v400_v59, %v399_v58  ;;  %706 = vst [vmem:[#allocation2 + $0x18] sm:$0xf] %v705_v62  ;;  %v408_v9 = vrot.slane %v406_v60, 7  ;;  %v404_v11 = vrot.slane %v399_v58, 4  ;;  %v708_v12 = vld [vmem:[#allocation2 + $0x20] sm:$0x1] }
  0x28   : > { %v416_v13 = vrot.slane %v414_v3, 7  ;;  %v711_v14 = vld [vmem:[#allocation2 + $0x24] sm:$0xf]  ;;  %v423_v15 = vshrl.u32 %v286_v56, 16  ;;  %v426_v16 = vshll.u32 %v286_v56, 16  ;;  %v431_v17 = vshrl.u32 %v287_v61, 16 }
  0x29   : > { %v403_v18 = vsel %vm6262_vm12, %v395_v55, %v402_v7  ;;  %v411_v19 = vor.u32 %v409_v63, %v408_v9  ;;  %v412_v20 = vrot.slane %v408_v9, 4  ;;  %v702_v21 = vsel %vm6285_vm13, %v387_v10, %v701_v6  ;;  %v715_v22 = vld [vmem:[#allocation2 + $0x2c] sm:$0x1]  ;;  %v718_v36 = vld [vmem:[#allocation2 + $0x30] sm:$0xf]  ;;  %s6054_s28 = smov 64  }
  0x2a   : > { %707 = vst.msk [vmem:[#allocation2 + $0x1c] sm:$0xf] %vm312_vm0, %v403_v18  ;;  %v419_v23 = vor.u32 %v417_v4, %v416_v13  ;;  %703 = vst [vmem:[#allocation2 + $0x14] sm:$0x1] %v702_v21  ;;  %v709_v24 = vsel %vm6285_vm13, %v404_v11, %v708_v12  ;;  %v421_v25 = vrot.slane %v416_v13, 4  ;;  %v425_v26 = vrot.slane %v423_v15, 7 }
  0x2b   : > { %v712_v27 = vsel %vm6256_vm11, %v411_v19, %v711_v14  ;;  %710 = vst [vmem:[#allocation2 + $0x20] sm:$0x1] %v709_v24  ;;  %v6298_v29 = vrot.slane %v431_v17, 7  ;;  %v434_v30 = vshll.u32 %v287_v61, 16  ;;  %vm8895_vm14 = vcmask 31744  }
  0x2c   : > { %v812_v31 = vld [vmem:[#allocation2 + $0xc] sm:$0xf]  ;;  %v420_v32 = vsel %vm6262_vm12, %v412_v20, %v419_v23  ;;  %713 = vst [vmem:[#allocation2 + $0x24] sm:$0xf] %v712_v27  ;;  %v716_v33 = vsel %vm6285_vm13, %v421_v25, %v715_v22  ;;  %v428_v34 = vor.u32 %v426_v16, %v425_v26  ;;  %v429_v35 = vrot.slane %v425_v26, 4 }
  0x2d   : > { %v6304_v37 = vld [vmem:[#allocation2 + $0x10] sm:$0xf]  ;;  %v1004_v39 = vshrl.u32 %v812_v31, 16  ;;  %v1007_v41 = vshll.u32 %v812_v31, 16  ;;  %714 = vst.msk [vmem:[#allocation2 + $0x28] sm:$0xf] %vm312_vm0, %v420_v32  ;;  %v436_v43 = vor.u32 %v434_v30, %v6298_v29 }
  0x2e   : > { %v5381_v42 = vrot.slane %v812_v31, 9  ;;  %717 = vst [vmem:[#allocation2 + $0x2c] sm:$0x1] %v716_v33  ;;  %v6309_v44 = vcombine.low %v812_v31, %v6304_v37  ;;  %v1017_v45 = vshrl.u32 %v6304_v37, 16  ;;  %v815_v46 = vld [vmem:[#allocation2 + $0x18] sm:$0xf]  ;;  %v719_v62 = vsel %vm6256_vm11, %v428_v34, %v718_v36 }
  0x2f   : > { %v1504_v47 = vrot.slane %v6304_v37, 5  ;;  %v1013_v48 = vshll.u32 %v6304_v37, 16  ;;  %v1028_v49 = vshrl.u32 %v815_v46, 16  ;;  %v1031_v50 = vshll.u32 %v815_v46, 16  ;;  %720 = vst [vmem:[#allocation2 + $0x30] sm:$0xf] %v719_v62 }
  0x30   : > { %v5382_v51 = vrot.slane %v815_v46, 9  ;;  %v1006_v52 = vrot.slane %v1004_v39, 4  ;;  %1725 = vrot.lane.b32.xlu0 %v6309_v44, %s6046_s9  ;;  %v1009_v55 = vrot.slane %v1007_v41, 5  ;;  %v437_v61 = vsel %vm6262_vm12, %v429_v35, %v436_v43  ;;  %961 = vst.msk [vmem:[#allocation4 + $0x8] sm:$0xff] %vm8895_vm14, %v6309_v44 }
  0x31   : > { %v1505_v53 = vsel %vm6234_vm9, %v5381_v42, %v1504_v47  ;;  %v1506_v54 = vrot.slane %v1504_v47, 4  ;;  %v6318_v56 = vrot.slane %v1013_v48, 5  ;;  %v816_v57 = vld [vmem:[#allocation2 + $0x1c] sm:$0xf]  ;;  %v814_v58 = vld [vmem:[#allocation2 + $0x14] sm:$0x1] }
  0x32   : > { %v1030_v59 = vrot.slane %v1028_v49, 4  ;;  %v1033_v60 = vrot.slane %v1031_v50, 5  ;;  %v6324_v63 = vcombine.low %v815_v46, %v816_v57  ;;  %v1041_v3 = vshrl.u32 %v816_v57, 16  ;;  %v817_v6 = vld [vmem:[#allocation2 + $0x20] sm:$0x1] }
  0x33   : > { %v1507_v4 = vrot.slane %v814_v58, 5  ;;  %v1511_v7 = vrot.slane %v816_v57, 5  ;;  %721 = vst.msk [vmem:[#allocation2 + $0x34] sm:$0xf] %vm312_vm0, %v437_v61  ;;  %v818_v9 = vld [vmem:[#allocation2 + $0x24] sm:$0xf]  ;;  %v1010_v36 = vor.u32 %v1009_v55, %v1006_v52 }
  0x34   : > { %v1514_v10 = vrot.slane %v817_v6, 5  ;;  %v1034_v11 = vor.u32 %v1033_v60, %v1030_v59  ;;  %v1037_v12 = vshll.u32 %v816_v57, 16  ;;  %v1047_v13 = vshll.u32 %v817_v6, 16  ;;  %1727 = vrot.lane.b32.xlu1 %v6324_v63, %s6046_s9  ;;  %1963 = vrot.lane.b32.xlu0 %v6324_v63, %s6047_s10  ;;  %v819_v14 = vld [vmem:[#allocation2 + $0x28] sm:$0xf]  ;;  %v5971_v6 = vld [vmem:[%s8888_s1] sm:$0xff]  }
  0x35   : > { %v1052_v15 = vshrl.u32 %v818_v9, 16  ;;  %v1055_v16 = vshll.u32 %v818_v9, 16  ;;  %v1508_v17 = vsel %vm6234_vm9, %v1506_v54, %v1507_v4  ;;  %v820_v18 = vld [vmem:[#allocation2 + $0x2c] sm:$0x1]  ;;  %v6333_v19 = vcombine.low %v818_v9, %v819_v14  ;;  %v288_v57 = vld [vmem:[%s6224_s29 + $0x20] sm:$0xf]  ;;  %5756 = vmatprep.subr.bf16.mxu0 %v5971_v6 }
  0x36   : > { %v5397_v20 = vcombine.low %v1505_v53, %v1508_v17  ;;  %v1512_v21 = vsel %vm6234_vm9, %v5382_v51, %v1511_v7  ;;  %v1513_v22 = vrot.slane %v1511_v7, 4  ;;  %v1065_v23 = vshrl.u32 %v819_v14, 16  ;;  %v6362_v4 = vld [vmem:[#allocation2 + $0x30] sm:$0xf]  ;;  %5757 = vmatpush3.bf16.msra.mxu0 %v5971_v6  ;;  %962 = vst.msk [vmem:[#allocation4 + $0x10] sm:$0xff] %vm8895_vm14, %v6324_v63 }
  0x37   : > { %v5383_v24 = vrot.slane %v818_v9, 9  ;;  %v1518_v25 = vrot.slane %v819_v14, 5  ;;  %v1521_v26 = vrot.slane %v820_v18, 5  ;;  %v1035_v30 = vrot.slane %v1034_v11, 4  ;;  %963 = vst.msk [vmem:[#allocation4 + $0x18] sm:$0xff] %vm8895_vm14, %v6333_v19 }
  0x38   : > { %v1515_v27 = vsel %vm6234_vm9, %v1513_v22, %v1514_v10  ;;  %v1039_v31 = vrot.slane %v1037_v12, 5  ;;  %v1043_v32 = vrot.slane %v1041_v3, 4  ;;  %1965 = vrot.lane.b32.xlu1 %v6333_v19, %s6047_s10  ;;  %1893 = vrot.lane.b32.xlu0 %v5397_v20, %s6048_s11  ;;  %v1049_v35 = vrot.slane %v1047_v13, 5  ;;  %v722_v10 = vld [vmem:[#allocation2 + $0x38] sm:$0x1] }
  0x39   : > { %v6342_v33 = vcombine.low %v1512_v21, %v1515_v27  ;;  %v1520_v34 = vrot.slane %v1518_v25, 4  ;;  %v1519_v37 = vsel %vm6234_vm9, %v5383_v24, %v1518_v25  ;;  %v1019_v41 = vrot.slane %v1017_v45, 4  ;;  %v290_v24 = vld [vmem:[%s6224_s29 + $0x28] sm:$0xf] }
  0x3a   : > { %v1044_v39 = vor.u32 %v1043_v32, %v1039_v31  ;;  %v1023_v42 = vshll.u32 %v814_v58, 16  ;;  %v1011_v46 = vrot.slane %v1010_v36, 4  ;;  %v1054_v47 = vrot.slane %v1052_v15, 4 }
  0x3b   : > { %v1522_v43 = vsel %vm6234_vm9, %v1520_v34, %v1521_v26  ;;  %v1057_v48 = vrot.slane %v1055_v16, 5  ;;  %v1040_v49 = vsel %vm6247_vm10, %v1035_v30, %v1039_v31  ;;  %v1020_v51 = vor.u32 %v1019_v41, %v6318_v56  ;;  %v291_v31 = vld [vmem:[%s6224_s29 + $0x2c] sm:$0xf] }
  0x3c   : > { %v1045_v50 = vrot.slane %v1044_v39, 4  ;;  %v1025_v52 = vrot.slane %v1023_v42, 5  ;;  %1657 = vrot.lane.b32.xlu1 %v5397_v20, %s6044_s30  ;;  %2131 = vrot.lane.b32.xlu0 %v6342_v33, %s6049_s12  ;;  %v6354_v45 = vcombine.low %v1519_v37, %v1522_v43  ;;  %v1061_v54 = vshll.u32 %v819_v14, 16  ;;  %v6375_v14 = vld [vmem:[#allocation2 + $0x34] sm:$0xf] }
  0x3d   : > { %v1058_v53 = vor.u32 %v1057_v48, %v1054_v47  ;;  %v1067_v55 = vrot.slane %v1065_v23, 4  ;;  %v1016_v59 = vsel %vm6247_vm10, %v1011_v46, %v6318_v56  ;;  %v1021_v60 = vrot.slane %v1020_v51, 4  ;;  %v725_v23 = vld [vmem:[#allocation2 + $0x3c] sm:$0xf]  ;;  %v293_v48 = vld [vmem:[%s6224_s29 + $0x34] sm:$0xf] }
  0x3e   : > { %v1050_v58 = vsel %vm6247_vm10, %v1045_v50, %v1049_v35  ;;  %v1071_v61 = vshll.u32 %v820_v18, 16  ;;  %v1063_v3 = vrot.slane %v1061_v54, 5  ;;  %v440_v11 = vshrl.u32 %v288_v57, 16  ;;  %v289_v18 = vld [vmem:[%s6224_s29 + $0x24] sm:$0xf] }
  0x3f   : > { %v1059_v62 = vrot.slane %v1058_v53, 4  ;;  %v6367_v7 = vcombine.low %v1040_v49, %v1050_v58  ;;  %v1026_v9 = vsel %vm6247_vm10, %v1021_v60, %v1025_v52  ;;  %v438_v15 = vrot.slane %v6298_v29, 4  ;;  %v5972_v29 = vld [vmem:[%s8888_s1 + $0x8] sm:$0xff]   ;;  %v292_v35 = vld [vmem:[%s6224_s29 + $0x30] sm:$0xf] }
  0x40   : > { %1895 = vrot.lane.b32.xlu1 %v6342_v33, %s6048_s11  ;;  %2133 = vrot.lane.b32.xlu0 %v6354_v45, %s6049_s12  ;;  %v5365_v56 = vcombine.low %v1016_v59, %v1026_v9  ;;  %v1068_v12 = vor.u32 %v1067_v55, %v1063_v3  ;;  %v1073_v13 = vrot.slane %v1071_v61, 5  ;;  %v1076_v16 = vshrl.u32 %v6362_v4, 16  ;;  %v729_v52 = vld [vmem:[#allocation2 + $0x44] sm:$0x1]  ;;  %v732_v61 = vld [vmem:[#allocation2 + $0x48] sm:$0xf] }
  0x41   : > { %v1079_v17 = vshll.u32 %v6362_v4, 16  ;;  %v1064_v20 = vsel %vm6247_vm10, %v1059_v62, %v1063_v3  ;;  %v723_v22 = vsel %vm6285_vm13, %v438_v15, %v722_v10  ;;  %v1089_v25 = vshrl.u32 %v6375_v14, 16  ;;  %5758 = vmatprep.subr.bf16.mxu0 %v5972_v29 }
  0x42   : > { %v1069_v21 = vrot.slane %v1068_v12, 4  ;;  %724 = vst [vmem:[#allocation2 + $0x38] sm:$0x1] %v723_v22  ;;  %v1085_v26 = vshll.u32 %v6375_v14, 16  ;;  %v442_v27 = vrot.slane %v440_v11, 7  ;;  %v443_v30 = vshll.u32 %v288_v57, 16  ;;  %5759 = vmatpush3.bf16.msra.mxu0 %v5972_v29 }
  0x43   : > { %v448_v34 = vshrl.u32 %v289_v18, 16  ;;  %v1078_v37 = vrot.slane %v1076_v16, 4  ;;  %v1081_v39 = vrot.slane %v1079_v17, 5  ;;  %v451_v46 = vshll.u32 %v289_v18, 16 }
  0x44   : > { %1819 = vrot.lane.b32.xlu1 %v6367_v7, %s6050_s17  ;;  %1413 = vrot.lane.b32.xlu0 %v5365_v56, %s6045_s8  ;;  %v1074_v32 = vsel %vm6247_vm10, %v1069_v21, %v1073_v13  ;;  %v445_v41 = vor.u32 %v443_v30, %v442_v27  ;;  %v446_v42 = vrot.slane %v442_v27, 4  ;;  %v457_v47 = vshrl.u32 %v290_v24, 16  ;;  %v739_v27 = vld [vmem:[#allocation2 + $0x54] sm:$0xf]  ;;  %v743_v30 = vld [vmem:[#allocation2 + $0x5c] sm:$0x1] }
  0x45   : > { %v6398_v36 = vcombine.low %v1064_v20, %v1074_v32  ;;  %v450_v43 = vrot.slane %v448_v34, 7  ;;  %v6401_v49 = vrot.slane %v1085_v26, 5  ;;  %v1091_v50 = vrot.slane %v1089_v25, 4  ;;  %v736_v20 = vld [vmem:[#allocation2 + $0x50] sm:$0x1] }
  0x46   : > { %v726_v51 = vsel %vm6256_vm11, %v445_v41, %v725_v23  ;;  %v460_v53 = vshll.u32 %v290_v24, 16  ;;  %v459_v57 = vrot.slane %v457_v47, 7  ;;  %v465_v58 = vshrl.u32 %v291_v31, 16 }
  0x47   : > { %v453_v54 = vor.u32 %v451_v46, %v450_v43  ;;  %727 = vst [vmem:[#allocation2 + $0x3c] sm:$0xf] %v726_v51  ;;  %v455_v55 = vrot.slane %v450_v43, 4  ;;  %v1082_v59 = vor.u32 %v1081_v39, %v1078_v37  ;;  %v468_v60 = vshll.u32 %v291_v31, 16 }
  0x48   : > { %2057 = vrot.lane.b32.xlu1 %v6398_v36, %s6051_s18  ;;  %1817 = vrot.lane.b32.xlu0 %v5365_v56, %s6050_s17  ;;  %v474_v62 = vshrl.u32 %v292_v35, 16  ;;  %v482_v3 = vshrl.u32 %v293_v48, 16  ;;  %v462_v11 = vor.u32 %v460_v53, %v459_v57  ;;  %v477_v56 = vshll.u32 %v292_v35, 16 }
  0x49   : > { %v6408_v6 = vld [vmem:[#allocation2 + $0x38] sm:$0x1]  ;;  %v454_v9 = vsel %vm6262_vm12, %v446_v42, %v453_v54  ;;  %v730_v10 = vsel %vm6285_vm13, %v455_v55, %v729_v52  ;;  %v1092_v12 = vor.u32 %v1091_v50, %v6401_v49  ;;  %v463_v13 = vrot.slane %v459_v57, 4 }
  0x4a   : > { %728 = vst.msk [vmem:[#allocation2 + $0x40] sm:$0xf] %vm312_vm0, %v454_v9  ;;  %731 = vst [vmem:[#allocation2 + $0x44] sm:$0x1] %v730_v10  ;;  %v467_v15 = vrot.slane %v465_v58, 7  ;;  %v476_v16 = vrot.slane %v474_v62, 7  ;;  %v733_v18 = vsel %vm6256_vm11, %v462_v11, %v732_v61  ;;  %v5348_v50 = vcombine.low %v6226_v1, %v6228_v2 }
  0x4b   : > { %v1095_v17 = vshll.u32 %v6408_v6, 16  ;;  %v484_v21 = vrot.slane %v482_v3, 7  ;;  %v485_v22 = vshll.u32 %v293_v48, 16  ;;  %734 = vst [vmem:[#allocation2 + $0x48] sm:$0xf] %v733_v18  ;;  %v1525_v31 = vrot.slane %v6375_v14, 5 }
  0x4c   : > { %1415 = vrot.lane.b32.xlu1 %v6367_v7, %s6045_s8  ;;  %2055 = vrot.lane.b32.xlu0 %v6367_v7, %s6051_s18  ;;  %v470_v23 = vor.u32 %v468_v60, %v467_v15  ;;  %v472_v24 = vrot.slane %v467_v15, 4  ;;  %v479_v29 = vor.u32 %v477_v56, %v476_v16  ;;  %v480_v25 = vrot.slane %v476_v16, 4  ;;  %v294_v62 = vld [vmem:[%s6224_s29 + $0x38] sm:$0xf]  ;;  %960 = vst.msk [vmem:[#allocation4] sm:$0xff] %vm8895_vm14, %v5348_v50 }
  0x4d   : > { %v487_v26 = vor.u32 %v485_v22, %v484_v21  ;;  %v489_v35 = vrot.slane %v484_v21, 4  ;;  %v1083_v37 = vrot.slane %v1082_v59, 4  ;;  %v1093_v39 = vrot.slane %v1092_v12, 4  ;;  %v297_v1 = vld [vmem:[%s6224_s29 + $0x44] sm:$0xf] }
  0x4e   : > { %v6424_v32 = vld [vmem:[#allocation2 + $0x3c] sm:$0xf]  ;;  %v471_v7 = vsel %vm6262_vm12, %v463_v13, %v470_v23  ;;  %v737_v34 = vsel %vm6285_vm13, %v472_v24, %v736_v20  ;;  %v1097_v41 = vrot.slane %v1095_v17, 5  ;;  %v740_v47 = vsel %vm6256_vm11, %v479_v29, %v739_v27 }
  0x4f   : > { %v1100_v42 = vshrl.u32 %v6424_v32, 16  ;;  %735 = vst.msk [vmem:[#allocation2 + $0x4c] sm:$0xf] %vm312_vm0, %v471_v7  ;;  %738 = vst [vmem:[#allocation2 + $0x50] sm:$0x1] %v737_v34  ;;  %v1103_v43 = vshll.u32 %v6424_v32, 16  ;;  %v488_v46 = vsel %vm6262_vm12, %v480_v25, %v487_v26  ;;  %v744_v48 = vsel %vm6285_vm13, %v489_v35, %v743_v30 }
  0x50   : > { %1417 = vrot.lane.b32.xlu1 %v6398_v36, %s6045_s8  ;;  %1659 = vrot.lane.b32.xlu0 %v6342_v33, %s6044_s30  ;;  %741 = vst [vmem:[#allocation2 + $0x54] sm:$0xf] %v740_v47  ;;  %742 = vst.msk [vmem:[#allocation2 + $0x58] sm:$0xf] %vm312_vm0, %v488_v46  ;;  %v6448_v51 = vcombine.low %v6362_v4, %v6375_v14  ;;  %v5384_v52 = vrot.slane %v6362_v4, 9  ;;  %v1088_v55 = vsel %vm6247_vm10, %v1083_v37, %v6401_v49  ;;  %vm8896_vm15 = vcmask 1041408  }
  0x51   : > { %v825_v33 = vld [vmem:[#allocation2 + $0x40] sm:$0xf]  ;;  %745 = vst [vmem:[#allocation2 + $0x5c] sm:$0x1] %v744_v48  ;;  %v1098_v57 = vsel %vm6247_vm10, %v1093_v39, %v1097_v41  ;;  %v1527_v58 = vrot.slane %v1525_v31, 4  ;;  %v1528_v14 = vrot.slane %v6408_v6, 5 }
  0x52   : > { %v1113_v53 = vshrl.u32 %v825_v33, 16  ;;  %v1109_v54 = vshll.u32 %v825_v33, 16  ;;  %v1102_v59 = vrot.slane %v1100_v42, 4  ;;  %v1105_v4 = vrot.slane %v1103_v43, 5  ;;  %v826_v3 = vld [vmem:[#allocation2 + $0x44] sm:$0x1] }
  0x53   : > { %v6466_v9 = vcombine.low %v1088_v55, %v1098_v57  ;;  %v1526_v49 = vsel %vm6234_vm9, %v5384_v52, %v1525_v31  ;;  %v491_v10 = vshrl.u32 %v294_v62, 16  ;;  %v1529_v6 = vsel %vm6234_vm9, %v1527_v58, %v1528_v14  ;;  %v6472_v15 = vld [vmem:[#allocation2 + $0x48] sm:$0xf]  ;;  %v295_v27 = vld [vmem:[%s6224_s29 + $0x3c] sm:$0xf]  ;;  %964 = vst.msk [vmem:[#allocation4 + $0x20] sm:$0xff] %vm8895_vm14, %v6448_v51 }
  0x54   : > { %1661 = vrot.lane.b32.xlu1 %v6354_v45, %s6044_s30  ;;  %1729 = vrot.lane.b32.xlu0 %v6333_v19, %s6046_s9  ;;  %v1111_v60 = vrot.slane %v1109_v54, 5  ;;  %v1115_v61 = vrot.slane %v1113_v53, 4  ;;  %v1106_v11 = vor.u32 %v1105_v4, %v1102_v59  ;;  %v1119_v12 = vshll.u32 %v826_v3, 16  ;;  %v746_v35 = vld [vmem:[#allocation2 + $0x60] sm:$0xf] }
  0x55   : > { %v1532_v13 = vrot.slane %v825_v33, 5  ;;  %v6480_v16 = vrot.slane %v491_v10, 7  ;;  %v494_v17 = vshll.u32 %v294_v62, 16  ;;  %v5385_v22 = vrot.slane %v6424_v32, 9  ;;  %v296_v37 = vld [vmem:[%s6224_s29 + $0x40] sm:$0xf] }
  0x56   : > { %v1116_v56 = vor.u32 %v1115_v61, %v1111_v60  ;;  %v1107_v18 = vrot.slane %v1106_v11, 4  ;;  %v1121_v21 = vrot.slane %v1119_v12, 5  ;;  %v1535_v24 = vrot.slane %v826_v3, 5  ;;  %v6484_v25 = vld [vmem:[#allocation2 + $0x4c] sm:$0xf] }
  0x57   : > { %v1534_v23 = vrot.slane %v1532_v13, 4  ;;  %v1124_v29 = vshrl.u32 %v6472_v15, 16  ;;  %v1127_v26 = vshll.u32 %v6472_v15, 16  ;;  %v496_v30 = vor.u32 %v494_v17, %v6480_v16  ;;  %v6512_v43 = vld [vmem:[#allocation2 + $0x54] sm:$0xf] }
  0x58   : > { %1731 = vrot.lane.b32.xlu1 %v6448_v51, %s6046_s9  ;;  %1821 = vrot.lane.b32.xlu0 %v6398_v36, %s6050_s17  ;;  %v6478_v36 = vcombine.low %v1526_v49, %v1529_v6  ;;  %v1117_v20 = vrot.slane %v1116_v56, 4  ;;  %v1112_v31 = vsel %vm6247_vm10, %v1107_v18, %v1111_v60  ;;  %v1533_v34 = vsel %vm6234_vm9, %v5385_v22, %v1532_v13  ;;  %v6514_v46 = vld [vmem:[#allocation2 + $0x58] sm:$0xf]  ;;  %v6516_v47 = vld [vmem:[#allocation2 + $0x50] sm:$0x1] }
  0x59   : > { %v6507_v39 = vcombine.low %v6472_v15, %v6484_v25  ;;  %v1137_v41 = vshrl.u32 %v6484_v25, 16  ;;  %v6510_v42 = vrot.slane %v1124_v29, 4  ;;  %v1133_v48 = vshll.u32 %v6484_v25, 16  ;;  %v750_v59 = vld [vmem:[#allocation2 + $0x68] sm:$0x1] }
  0x5a   : > { %v1122_v7 = vsel %vm6247_vm10, %v1117_v20, %v1121_v21  ;;  %v499_v52 = vshrl.u32 %v295_v27, 16  ;;  %v502_v53 = vshll.u32 %v295_v27, 16  ;;  %v6529_v55 = vrot.slane %v1127_v26, 5  ;;  %v298_v19 = vld [vmem:[%s6224_s29 + $0x48] sm:$0xf] }
  0x5b   : > { %v6527_v54 = vcombine.low %v1112_v31, %v1122_v7  ;;  %v747_v57 = vsel %vm6256_vm11, %v496_v30, %v746_v35  ;;  %v497_v58 = vrot.slane %v6480_v16, 4  ;;  %966 = vst.msk [vmem:[#allocation4 + $0x30] sm:$0xff] %vm8895_vm14, %v6507_v39  ;;  %v1139_v44 = vrot.slane %v1137_v41, 4  ;;  %v299_v62 = vld [vmem:[%s6224_s29 + $0x4c] sm:$0xf] }
  0x5c   : > { %1823 = vrot.lane.b32.xlu1 %v6466_v9, %s6050_s17  ;;  %1897 = vrot.lane.b32.xlu0 %v6354_v45, %s6048_s11  ;;  %v6491_v45 = vcombine.low %v6424_v32, %v825_v33  ;;  %v1536_v32 = vsel %vm6234_vm9, %v1534_v23, %v1535_v24  ;;  %v6521_v33 = vcombine.low %v6512_v43, %v6514_v46  ;;  %v501_v14 = vrot.slane %v499_v52, 7  ;;  %v753_v12 = vld [vmem:[#allocation2 + $0x6c] sm:$0xf]  ;;  %v757_v24 = vld [vmem:[#allocation2 + $0x74] sm:$0x1] }
  0x5d   : > { %748 = vst [vmem:[#allocation2 + $0x60] sm:$0xf] %v747_v57  ;;  %v6553_v2 = vcombine.low %v1533_v34, %v1536_v32  ;;  %v1143_v63 = vshll.u32 %v6516_v47, 16  ;;  %v508_v50 = vshrl.u32 %v296_v37, 16  ;;  %v6557_v4 = vrot.slane %v1133_v48, 5 }
  0x5e   : > { %965 = vst.msk [vmem:[#allocation4 + $0x28] sm:$0xff] %vm8895_vm14, %v6491_v45  ;;  %967 = vst.msk [vmem:[#allocation4 + $0x38] sm:$0xff] %vm8895_vm14, %v6521_v33  ;;  %v506_v60 = vrot.slane %v501_v14, 4  ;;  %v511_v61 = vshll.u32 %v296_v37, 16  ;;  %v1130_v3 = vor.u32 %v6529_v55, %v6510_v42  ;;  %v516_v10 = vshrl.u32 %v297_v1, 16 }
  0x5f   : > { %v510_v49 = vrot.slane %v508_v50, 7  ;;  %v519_v6 = vshll.u32 %v297_v1, 16  ;;  %v525_v13 = vshrl.u32 %v298_v19, 16  ;;  %v528_v16 = vshll.u32 %v298_v19, 16  ;;  %v760_v34 = vld [vmem:[#allocation2 + $0x78] sm:$0xf] }
  0x60   : > { %1899 = vrot.lane.b32.xlu1 %v6478_v36, %s6048_s11  ;;  %1967 = vrot.lane.b32.xlu0 %v6448_v51, %s6047_s10  ;;  %v504_v51 = vor.u32 %v502_v53, %v501_v14  ;;  %v751_v56 = vsel %vm6285_vm13, %v506_v60, %v750_v59  ;;  %v518_v20 = vrot.slane %v516_v10, 7  ;;  %v533_v21 = vshrl.u32 %v299_v62, 16  ;;  %v832_v1 = vld [vmem:[#allocation2 + $0x5c] sm:$0x1] }
  0x61   : > { %752 = vst [vmem:[#allocation2 + $0x68] sm:$0x1] %v751_v56  ;;  %v513_v17 = vor.u32 %v511_v61, %v510_v49  ;;  %v514_v18 = vrot.slane %v510_v49, 4  ;;  %v1140_v22 = vor.u32 %v1139_v44, %v6557_v4  ;;  %v1148_v23 = vshrl.u32 %v6512_v43, 16 }
  0x62   : > { %v505_v11 = vsel %vm6262_vm12, %v497_v58, %v504_v51  ;;  %v527_v29 = vrot.slane %v525_v13, 7  ;;  %v536_v26 = vshll.u32 %v299_v62, 16  ;;  %v521_v27 = vor.u32 %v519_v6, %v518_v20  ;;  %v764_v58 = vld [vmem:[#allocation2 + $0x80] sm:$0x1] }
  0x63   : > { %749 = vst.msk [vmem:[#allocation2 + $0x64] sm:$0xf] %vm312_vm0, %v505_v11  ;;  %v754_v30 = vsel %vm6256_vm11, %v513_v17, %v753_v12  ;;  %v523_v31 = vrot.slane %v518_v20, 4  ;;  %v535_v7 = vrot.slane %v533_v21, 7  ;;  %v1151_v35 = vshll.u32 %v6512_v43, 16 }
  0x64   : > { %1969 = vrot.lane.b32.xlu1 %v6491_v45, %s6047_s10  ;;  %2059 = vrot.lane.b32.xlu0 %v6466_v9, %s6051_s18  ;;  %v1161_v37 = vshrl.u32 %v6514_v46, 16  ;;  %v1157_v32 = vshll.u32 %v6514_v46, 16  ;;  %755 = vst [vmem:[#allocation2 + $0x6c] sm:$0xf] %v754_v30  ;;  %v530_v41 = vor.u32 %v528_v16, %v527_v29  ;;  %v531_v48 = vrot.slane %v527_v29, 4 }
  0x65   : > { %v758_v42 = vsel %vm6285_vm13, %v523_v31, %v757_v24  ;;  %v538_v52 = vor.u32 %v536_v26, %v535_v7  ;;  %v1145_v53 = vrot.slane %v1143_v63, 5  ;;  %v1539_v55 = vrot.slane %v6484_v25, 5  ;;  %v6596_v19 = vld [vmem:[#allocation2 + $0x60] sm:$0xf]  ;;  %v300_v11 = vld [vmem:[%s6224_s29 + $0x50] sm:$0xf] }
  0x66   : > { %759 = vst [vmem:[#allocation2 + $0x74] sm:$0x1] %v758_v42  ;;  %v761_v57 = vsel %vm6256_vm11, %v530_v41, %v760_v34  ;;  %v1131_v14 = vrot.slane %v1130_v3, 4  ;;  %v1141_v59 = vrot.slane %v1140_v22, 4  ;;  %v540_v25 = vrot.slane %v535_v7, 4 }
  0x67   : > { %v539_v44 = vsel %vm6262_vm12, %v531_v48, %v538_v52  ;;  %762 = vst [vmem:[#allocation2 + $0x78] sm:$0xf] %v761_v57  ;;  %v1150_v63 = vrot.slane %v1148_v23, 4  ;;  %v1153_v50 = vrot.slane %v1151_v35, 5  ;;  %v6601_v60 = vrot.slane %v1157_v32, 5 }
  0x68   : > { %2061 = vrot.lane.b32.xlu1 %v6527_v54, %s6051_s18  ;;  %2135 = vrot.lane.b32.xlu0 %v6478_v36, %s6049_s12  ;;  %763 = vst.msk [vmem:[#allocation2 + $0x7c] sm:$0xf] %vm312_vm0, %v539_v44  ;;  %v765_v62 = vsel %vm6285_vm13, %v540_v25, %v764_v58  ;;  %v5386_v3 = vrot.slane %v6472_v15, 9  ;;  %v1541_v49 = vrot.slane %v1539_v55, 4  ;;  %v1542_v10 = vrot.slane %v6516_v47, 5 }
  0x69   : > { %v1167_v6 = vshll.u32 %v832_v1, 16  ;;  %766 = vst [vmem:[#allocation2 + $0x80] sm:$0x1] %v765_v62  ;;  %v1136_v56 = vsel %vm6247_vm10, %v1131_v14, %v6557_v4  ;;  %v1146_v12 = vsel %vm6247_vm10, %v1141_v59, %v1145_v53  ;;  %v1154_v13 = vor.u32 %v1153_v50, %v1150_v63  ;;  %v6678_v57 = vld [vmem:[#allocation2 + $0x68] sm:$0x1] }
  0x6a   : > { %v6598_v51 = vld [vmem:[#allocation2 + $0x64] sm:$0xf]  ;;  %v1172_v47 = vshrl.u32 %v6596_v19, 16  ;;  %v1175_v16 = vshll.u32 %v6596_v19, 16  ;;  %v542_v4 = vshrl.u32 %v300_v11, 16  ;;  %v5387_v22 = vrot.slane %v6512_v43, 9 }
  0x6b   : > { %v6605_v61 = vcombine.low %v6596_v19, %v6598_v51  ;;  %v6627_v17 = vld [vmem:[#allocation2 + $0x6c] sm:$0xf]  ;;  %v1169_v21 = vrot.slane %v1167_v6, 5  ;;  %v1549_v23 = vrot.slane %v832_v1, 5  ;;  %v1540_v24 = vsel %vm6234_vm9, %v5386_v3, %v1539_v55  ;;  %v301_v55 = vld [vmem:[%s6224_s29 + $0x54] sm:$0xf] }
  0x6c   : > { %1419 = vrot.lane.b32.xlu1 %v6466_v9, %s6045_s8  ;;  %2137 = vrot.lane.b32.xlu0 %v6553_v2, %s6049_s12  ;;  %v522_v9 = vsel %vm6262_vm12, %v514_v18, %v521_v27  ;;  %v1543_v29 = vsel %vm6234_vm9, %v1541_v49, %v1542_v10  ;;  %v1155_v26 = vrot.slane %v1154_v13, 4  ;;  %v1174_v7 = vrot.slane %v1172_v47, 4  ;;  %v767_v59 = vld [vmem:[#allocation2 + $0x84] sm:$0xf]  ;;  %v302_v6 = vld [vmem:[%s6224_s29 + $0x58] sm:$0xf] }
  0x6d   : > { %756 = vst.msk [vmem:[#allocation2 + $0x70] sm:$0xf] %vm312_vm0, %v522_v9  ;;  %v1177_v43 = vrot.slane %v1175_v16, 5  ;;  %v6656_v35 = vrot.slane %v542_v4, 7  ;;  %v6662_v32 = vcombine.low %v1540_v24, %v1543_v29  ;;  %v1185_v41 = vshrl.u32 %v6598_v51, 16 }
  0x6e   : > { %968 = vst.msk [vmem:[#allocation4 + $0x40] sm:$0xff] %vm8895_vm14, %v6605_v61  ;;  %v6648_v30 = vld [vmem:[#allocation2 + $0x78] sm:$0xf]  ;;  %v1181_v9 = vshll.u32 %v6598_v51, 16  ;;  %v1160_v52 = vsel %vm6247_vm10, %v1155_v26, %v6601_v60  ;;  %v1553_v58 = vrot.slane %v6598_v51, 5  ;;  %v1199_v62 = vshll.u32 %v6627_v17, 16 }
  0x6f   : > { %v1178_v53 = vor.u32 %v1177_v43, %v1174_v7  ;;  %v6690_v25 = vrot.slane %v1185_v41, 4  ;;  %v5974_v63 = vld [vmem:[%s8888_s1 + $0x10] ss:$0 sps:$4 sm:$0x33]   ;;  %v1191_v3 = vshll.u32 %v6678_v57, 16  ;;  %v550_v49 = vshrl.u32 %v301_v55, 16 }
  0x70   : > { %1421 = vrot.lane.b32.xlu1 %v6527_v54, %s6045_s8  ;;  %1663 = vrot.lane.b32.xlu0 %v6478_v36, %s6044_s30  ;;  %v1163_v36 = vrot.slane %v1161_v37, 4  ;;  %v545_v37 = vshll.u32 %v300_v11, 16  ;;  %v6688_v44 = vrot.slane %v1181_v9, 5  ;;  %v553_v10 = vshll.u32 %v301_v55, 16  ;;  %v771_v13 = vld [vmem:[#allocation2 + $0x8c] sm:$0x1] }
  0x71   : > { %v6706_v11 = vrot.slane %v1553_v58, 4  ;;  %v548_v47 = vrot.slane %v6656_v35, 4  ;;  %v552_v16 = vrot.slane %v550_v49, 7  ;;  %v2290_v4 = vsel %vm8896_vm15, %v5974_v63, 0  ;;  %5936 = vmatprep.subr.msk.bf16.mxu0 %vm8896_vm15, %v5974_v63  ;;  %v305_v26 = vld [vmem:[%s6224_s29 + $0x64] sm:$0xf] }
  0x72   : > { %v1164_v15 = vor.u32 %v1163_v36, %v6601_v60  ;;  %v547_v14 = vor.u32 %v545_v37, %v6656_v35  ;;  %v5388_v60 = vrot.slane %v6596_v19, 9  ;;  %v1196_v36 = vshrl.u32 %v6627_v17, 16  ;;  %5761 = vmatpush3.bf16.msra.mxu0 %v2290_v4 }
  0x73   : > { %v6724_v24 = vrot.slane %v1199_v62, 5  ;;  %v559_v29 = vshrl.u32 %v302_v6, 16  ;;  %v557_v7 = vrot.slane %v552_v16, 4  ;;  %v562_v43 = vshll.u32 %v302_v6, 16 }
  0x74   : > { %1665 = vrot.lane.b32.xlu1 %v6553_v2, %s6044_s30  ;;  %1733 = vrot.lane.b32.xlu0 %v6491_v45, %s6046_s9  ;;  %v1546_v45 = vrot.slane %v6514_v46, 5  ;;  %v6629_v18 = vld [vmem:[#allocation2 + $0x70] sm:$0xf]  ;;  %v6639_v46 = vcombine.low %v1136_v56, %v1146_v12  ;;  %v1165_v31 = vrot.slane %v1164_v15, 4  ;;  %v1556_v56 = vrot.slane %v6678_v57, 5 }
  0x75   : > { %v6633_v20 = vcombine.low %v6627_v17, %v6629_v18  ;;  %v768_v12 = vsel %vm6256_vm11, %v547_v14, %v767_v59  ;;  %v1188_v15 = vor.u32 %v6690_v25, %v6688_v44  ;;  %v561_v35 = vrot.slane %v559_v29, 7 }
  0x76   : > { %v1548_v27 = vrot.slane %v1546_v45, 4  ;;  %v1547_v42 = vsel %vm6234_vm9, %v5387_v22, %v1546_v45  ;;  %v303_v45 = vld [vmem:[%s6224_s29 + $0x5c] sm:$0xf]  ;;  %769 = vst [vmem:[#allocation2 + $0x84] sm:$0xf] %v768_v12  ;;  %v1209_v22 = vshrl.u32 %v6629_v18, 16 }
  0x77   : > { %969 = vst.msk [vmem:[#allocation4 + $0x48] sm:$0xff] %vm8895_vm14, %v6633_v20  ;;  %v567_v37 = vshrl.u32 %v303_v45, 16  ;;  %v570_v41 = vshll.u32 %v303_v45, 16  ;;  %v584_v55 = vshrl.u32 %v305_v26, 16  ;;  %v564_v14 = vor.u32 %v562_v43, %v561_v35  ;;  %v781_v12 = vld [vmem:[#allocation2 + $0x9c] sm:$0xf] }
  0x78   : > { %1735 = vrot.lane.b32.xlu1 %v6507_v39, %s6046_s9  ;;  %1825 = vrot.lane.b32.xlu0 %v6527_v54, %s6050_s17  ;;  %v6650_v54 = vld [vmem:[#allocation2 + $0x7c] sm:$0xf]  ;;  %v1550_v48 = vsel %vm6234_vm9, %v1548_v27, %v1549_v23  ;;  %v6722_v23 = vrot.slane %v1196_v36, 4  ;;  %v1205_v27 = vshll.u32 %v6629_v18, 16  ;;  %v565_v59 = vrot.slane %v561_v35, 4 }
  0x79   : > { %v6654_v34 = vcombine.low %v6648_v30, %v6650_v54  ;;  %v6686_v1 = vcombine.low %v1547_v42, %v1550_v48  ;;  %v306_v42 = vld [vmem:[%s6224_s29 + $0x68] sm:$0xf]  ;;  %v569_v63 = vrot.slane %v567_v37, 7  ;;  %v778_v36 = vld [vmem:[#allocation2 + $0x98] sm:$0x1]  ;;  %v1211_v49 = vrot.slane %v1209_v22, 4 }
  0x7a   : > { %v587_v6 = vshll.u32 %v305_v26, 16  ;;  %v593_v45 = vshrl.u32 %v306_v42, 16  ;;  %v1560_v22 = vrot.slane %v6629_v18, 5  ;;  %v596_v26 = vshll.u32 %v306_v42, 16  ;;  %v785_v37 = vld [vmem:[#allocation2 + $0xa4] sm:$0x1] }
  0x7b   : > { %970 = vst.msk [vmem:[#allocation4 + $0x50] sm:$0xff] %vm8895_vm14, %v6654_v34  ;;  %v1554_v18 = vsel %vm6234_vm9, %v5388_v60, %v1553_v58  ;;  %v1189_v42 = vrot.slane %v1188_v15, 4  ;;  %v5389_v51 = vrot.slane %v6627_v17, 9  ;;  %v788_v58 = vld [vmem:[#allocation2 + $0xa8] sm:$0xf]  ;;  %vm1459_vm1 = vcmask 64544  }
  0x7c   : > { %1827 = vrot.lane.b32.xlu1 %v6639_v46, %s6050_s17  ;;  %1901 = vrot.lane.b32.xlu0 %v6553_v2, %s6048_s11  ;;  %v1170_v2 = vsel %vm6247_vm10, %v1165_v31, %v1169_v21  ;;  %v304_v21 = vld [vmem:[%s6224_s29 + $0x60] sm:$0xf]  ;;  %v555_v31 = vor.u32 %v553_v10, %v552_v16  ;;  %v586_v10 = vrot.slane %v584_v55, 7  ;;  %v574_v16 = vrot.slane %v569_v63, 4  ;;  %v6800_v55 = vld [vmem:[%s6224_s29 + $0x6c] sm:$0xf] }
  0x7d   : > { %v6695_v50 = vcombine.low %v1160_v52, %v1170_v2  ;;  %v576_v9 = vshrl.u32 %v304_v21, 16  ;;  %v772_v52 = vsel %vm6285_vm13, %v557_v7, %v771_v13  ;;  %v774_v2 = vld [vmem:[#allocation2 + $0x90] sm:$0xf]  ;;  %v6778_v15 = vld [vmem:[#allocation2 + $0x84] sm:$0xf]  ;;  %vm1703_vm2 = vcmask 97344  }
  0x7e   : > { %v556_v48 = vsel %vm6262_vm12, %v548_v47, %v555_v31  ;;  %773 = vst [vmem:[#allocation2 + $0x8c] sm:$0x1] %v772_v52  ;;  %v572_v47 = vor.u32 %v570_v41, %v569_v63  ;;  %v775_v13 = vsel %vm6256_vm11, %v564_v14, %v774_v2  ;;  %v838_v31 = vld [vmem:[#allocation2 + $0x74] sm:$0x1]  ;;  %v779_v43 = vsel %vm6285_vm13, %v574_v16, %v778_v36 }
  0x7f   : > { %770 = vst.msk [vmem:[#allocation2 + $0x88] sm:$0xf] %vm312_vm0, %v556_v48  ;;  %v578_v62 = vrot.slane %v576_v9, 7  ;;  %776 = vst [vmem:[#allocation2 + $0x90] sm:$0xf] %v775_v13  ;;  %v589_v35 = vor.u32 %v587_v6, %v586_v10  ;;  %v591_v41 = vrot.slane %v586_v10, 4 }
  0x80   : > { %1903 = vrot.lane.b32.xlu1 %v6662_v32, %s6048_s11  ;;  %1971 = vrot.lane.b32.xlu0 %v6507_v39, %s6047_s10  ;;  %v6700_v39 = vrot.slane %v1178_v53, 4  ;;  %v579_v53 = vshll.u32 %v304_v21, 16  ;;  %v6745_v21 = vrot.slane %v1205_v27, 5  ;;  %v573_v7 = vsel %vm6262_vm12, %v565_v59, %v572_v47  ;;  %780 = vst [vmem:[#allocation2 + $0x98] sm:$0x1] %v779_v43 }
  0x81   : > { %v582_v29 = vrot.slane %v578_v62, 4  ;;  %v1193_v27 = vrot.slane %v1191_v3, 5  ;;  %777 = vst.msk [vmem:[#allocation2 + $0x94] sm:$0xf] %vm312_vm0, %v573_v7  ;;  %v6763_v9 = vrot.slane %v593_v45, 7  ;;  %v1202_v3 = vor.u32 %v6724_v24, %v6722_v23 }
  0x82   : > { %v581_v4 = vor.u32 %v579_v53, %v578_v62  ;;  %v1212_v60 = vor.u32 %v1211_v49, %v6745_v21  ;;  %v1215_v25 = vshll.u32 %v838_v31, 16  ;;  %v786_v17 = vsel %vm6285_vm13, %v591_v41, %v785_v37 }
  0x83   : > { %v590_v19 = vsel %vm6262_vm12, %v582_v29, %v589_v35  ;;  %v598_v23 = vor.u32 %v596_v26, %v6763_v9  ;;  %v1562_v24 = vrot.slane %v1560_v22, 4  ;;  %v1563_v52 = vrot.slane %v838_v31, 5  ;;  %787 = vst [vmem:[#allocation2 + $0xa4] sm:$0x1] %v786_v17 }
  0x84   : > { %1973 = vrot.lane.b32.xlu1 %v6521_v33, %s6047_s10  ;;  %2063 = vrot.lane.b32.xlu0 %v6639_v46, %s6051_s18  ;;  %784 = vst.msk [vmem:[#allocation2 + $0xa0] sm:$0xf] %vm312_vm0, %v590_v19  ;;  %v1184_v53 = vsel %vm6247_vm10, %v6700_v39, %v6688_v44  ;;  %v1203_v57 = vrot.slane %v1202_v3, 4  ;;  %v1220_v14 = vshrl.u32 %v6648_v30, 16  ;;  %v1194_v44 = vsel %vm6247_vm10, %v1189_v42, %v1193_v27 }
  0x85   : > { %v789_v59 = vsel %vm6256_vm11, %v598_v23, %v788_v58  ;;  %v1213_v63 = vrot.slane %v1212_v60, 4  ;;  %v1217_v36 = vrot.slane %v1215_v25, 5  ;;  %v1561_v62 = vsel %vm6234_vm9, %v5389_v51, %v1560_v22 }
  0x86   : > { %v6780_v48 = vld [vmem:[#allocation2 + $0x88] sm:$0xf]  ;;  %790 = vst [vmem:[#allocation2 + $0xa8] sm:$0xf] %v789_v59  ;;  %v1564_v49 = vsel %vm6234_vm9, %v1562_v24, %v1563_v52  ;;  %v1229_v10 = vshll.u32 %v6650_v54, 16  ;;  %v1233_v45 = vshrl.u32 %v6650_v54, 16  ;;  %v1208_v22 = vsel %vm6247_vm10, %v1203_v57, %v6745_v21 }
  0x87   : > { %v6793_v2 = vcombine.low %v6778_v15, %v6780_v48  ;;  %v6823_v6 = vld [vmem:[#allocation2 + $0x90] sm:$0xf]  ;;  %v6840_v29 = vrot.slane %v1220_v14, 4  ;;  %v6844_v31 = vld [vmem:[#allocation2 + $0x98] sm:$0x1]  ;;  %vm1773_vm3 = vcmask 130144   ;;  %v1218_v43 = vsel %vm6247_vm10, %v1213_v63, %v1217_v36 }
  0x88   : > { %2065 = vrot.lane.b32.xlu1 %v6695_v50, %s6051_s18  ;;  %2139 = vrot.lane.b32.xlu0 %v6662_v32, %s6049_s12  ;;  %v5392_v16 = vrot.slane %v6823_v6, 9  ;;  %v6852_v35 = vcombine.low %v1561_v62, %v1564_v49  ;;  %v604_v51 = vshll.u32 %v6800_v55, 16  ;;  %v6867_v19 = vrot.slane %v1233_v45, 4  ;;  %v308_v14 = vld [vmem:[%s6224_s29 + $0x70] sm:$0xf] }
  0x89   : > { %971 = vst.msk [vmem:[#allocation4 + $0x58] sm:$0xff] %vm8895_vm14, %v6793_v2  ;;  %v6873_v17 = vcombine.low %v1208_v22, %v1218_v43  ;;  %v5390_v23 = vrot.slane %v6648_v30, 9  ;;  %vm1865_vm4 = vcmask 162944   ;;  %v1247_v38 = vshll.u32 %v6778_v15, 16 }
  0x8a   : > { %v850_v42 = vld [vmem:[#allocation2 + $0xa4] sm:$0x1]  ;;  %vm1941_vm5 = vcmask 195744   ;;  %vm2011_vm7 = vcmask 228544   ;;  %vm2488_vm15 = vcmask 57344  }
  0x8b   : > { %v849_v27 = vld [vmem:[#allocation2 + $0xa0] sm:$0xf]  ;;  %v1311_v57 = vshll.u32 %v850_v42, 16  ;;  %2495 = vst.msk [vmem:[#allocation3 + $0x20] sm:$0x1] %vm2488_vm15, %v6043_v0 }
  0x8c   : > { %1423 = vrot.lane.b32.xlu1 %v6639_v46, %s6045_s8  ;;  %2141 = vrot.lane.b32.xlu0 %v6686_v1, %s6049_s12  ;;  %v782_v46 = vsel %vm6256_vm11, %v581_v4, %v781_v12  ;;  %v6825_v12 = vld [vmem:[#allocation2 + $0x94] sm:$0xf]  ;;  %v6835_v4 = vcombine.low %v1184_v53, %v1194_v44  ;;  %v1305_v53 = vshrl.u32 %v849_v27, 16  ;;  %v599_v44 = vrot.slane %v6763_v9, 4  ;;  %2489 = vst.msk [vmem:[#allocation3 + $0x8] sm:$0x1] %vm2488_vm15, %v6043_v0 }
  0x8d   : > { %783 = vst [vmem:[#allocation2 + $0x9c] sm:$0xf] %v782_v46  ;;  %v6832_v13 = vcombine.low %v6823_v6, %v6825_v12  ;;  %v1581_v21 = vrot.slane %v6825_v12, 5  ;;  %v1584_v46 = vrot.slane %v6844_v31, 5  ;;  %v6889_v36 = vld [vmem:[#allocation2 + $0xa8] sm:$0xf] }
  0x8e   : > { %v1588_v45 = vrot.slane %v849_v27, 5  ;;  %v1316_v43 = vshrl.u32 %v6889_v36, 16  ;;  %2492 = vst.msk [vmem:[#allocation3 + $0x14] sm:$0x1] %vm2488_vm15, %v6043_v0  ;;  %2498 = vst.msk [vmem:[#allocation3 + $0x2c] sm:$0x1] %vm2488_vm15, %v6043_v0 }
  0x8f   : > { %972 = vst.msk [vmem:[#allocation4 + $0x60] sm:$0xff] %vm8895_vm14, %v6832_v13  ;;  %v1582_v60 = vsel %vm6234_vm9, %v5392_v16, %v1581_v21  ;;  %v1583_v25 = vrot.slane %v1581_v21, 4  ;;  %v610_v16 = vshrl.u32 %v308_v14, 16 }
  0x90   : > { %1425 = vrot.lane.b32.xlu1 %v6695_v50, %s6045_s8  ;;  %1667 = vrot.lane.b32.xlu0 %v6662_v32, %s6044_s30  ;;  %v1557_v32 = vsel %vm6234_vm9, %v6706_v11, %v1556_v56  ;;  %v1223_v11 = vshll.u32 %v6648_v30, 16  ;;  %v6804_v56 = vld [vmem:[#allocation2 + $0x80] sm:$0x1]  ;;  %2501 = vst.msk [vmem:[#allocation3 + $0x38] sm:$0x1] %vm2488_vm15, %v6043_v0 }
  0x91   : > { %v6816_v39 = vcombine.low %v1554_v18, %v1557_v32  ;;  %v1239_v47 = vshll.u32 %v6804_v56, 16  ;;  %v1585_v52 = vsel %vm6234_vm9, %v1583_v25, %v1584_v46  ;;  %v1319_v46 = vshll.u32 %v6889_v36, 16  ;;  %2504 = vst.msk [vmem:[#allocation3 + $0x44] sm:$0x1] %vm2488_vm15, %v6043_v0  ;;  %2507 = vst.msk [vmem:[#allocation3 + $0x50] sm:$0x1] %vm2488_vm15, %v6043_v0 }
  0x92   : > { %v6842_v26 = vrot.slane %v1223_v11, 5  ;;  %v6885_v11 = vcombine.low %v1582_v60, %v1585_v52  ;;  %v612_v52 = vrot.slane %v610_v16, 7  ;;  %2510 = vst.msk [vmem:[#allocation3 + $0x5c] sm:$0x1] %vm2488_vm15, %v6043_v0  ;;  %2513 = vst.msk [vmem:[#allocation3 + $0x68] sm:$0x1] %vm2488_vm15, %v6043_v0 }
  0x93   : > { %v6869_v58 = vrot.slane %v1239_v47, 5  ;;  %v1591_v47 = vrot.slane %v850_v42, 5  ;;  %v792_v42 = vld [vmem:[#allocation2 + $0xb0] sm:$0x1]  ;;  %2516 = vst.msk [vmem:[#allocation3 + $0x74] sm:$0x1] %vm2488_vm15, %v6043_v0 }
  0x94   : > { %1669 = vrot.lane.b32.xlu1 %v6686_v1, %s6044_s30  ;;  %1737 = vrot.lane.b32.xlu0 %v6521_v33, %s6046_s9  ;;  %v601_v33 = vshrl.u32 %v6800_v55, 16  ;;  %v848_v37 = vld [vmem:[#allocation2 + $0x9c] sm:$0xf]  ;;  %v1301_v55 = vshll.u32 %v849_v27, 16  ;;  %v1226_v62 = vor.u32 %v6842_v26, %v6840_v29  ;;  %v1590_v26 = vrot.slane %v1588_v45, 4 }
  0x95   : > { %v6861_v41 = vcombine.low %v848_v37, %v849_v27  ;;  %v1292_v32 = vshrl.u32 %v848_v37, 16  ;;  %v1295_v24 = vshll.u32 %v848_v37, 16  ;;  %2519 = vst.msk [vmem:[#allocation3 + $0x80] sm:$0x1] %vm2488_vm15, %v6043_v0  ;;  %2522 = vst.msk [vmem:[#allocation3 + $0x8c] sm:$0x1] %vm2488_vm15, %v6043_v0 }
  0x96   : > { %v6863_v3 = vrot.slane %v601_v33, 7  ;;  %v1303_v49 = vrot.slane %v1301_v55, 5  ;;  %v5393_v33 = vrot.slane %v848_v37, 9  ;;  %v1592_v25 = vsel %vm6234_vm9, %v1590_v26, %v1591_v47  ;;  %2525 = vst.msk [vmem:[#allocation3 + $0x98] sm:$0x1] %vm2488_vm15, %v6043_v0 }
  0x97   : > { %v1656_v18 = vpop.permute.xlu1 %1655  ;;  %973 = vst.msk [vmem:[#allocation4 + $0x68] sm:$0xff] %vm8895_vm14, %v6861_v41  ;;  %v1294_v59 = vrot.slane %v1292_v32, 4  ;;  %v1321_v32 = vrot.slane %v1319_v46, 5  ;;  %v5394_v26 = vrot.slane %v6889_v36, 9  ;;  %v799_v46 = vld [vmem:[#allocation2 + $0xbc] sm:$0x1] }
  0x98   : > { %1739 = vrot.lane.b32.xlu1 %v6605_v61, %s6046_s9  ;;  %1829 = vrot.lane.b32.xlu0 %v6695_v50, %s6050_s17  ;;  %v1412_v7 = vpop.permute.xlu0 %1411  ;;  %v6859_v50 = vrot.slane %v1229_v10, 5  ;;  %v606_v63 = vor.u32 %v604_v51, %v6863_v3  ;;  %v1307_v10 = vrot.slane %v1305_v53, 4  ;;  %v1589_v29 = vsel %vm6234_vm9, %v5393_v33, %v1588_v45  ;;  %v310_v53 = vld [vmem:[%s6224_s29 + $0x78] sm:$0xf]  ;;  %v795_v33 = vld [vmem:[#allocation2 + $0xb4] sm:$0xf] }
  0x99   : > { %1460 = vst.msk [vmem:[#allocation4] sm:$0xff] %vm1459_vm1, %v1412_v7  ;;  %v1313_v7 = vrot.slane %v1311_v57, 5  ;;  %v1318_v51 = vrot.slane %v1316_v43, 4  ;;  %v613_v57 = vshll.u32 %v308_v14, 16  ;;  %v627_v14 = vshrl.u32 %v310_v53, 16 }
  0x9a   : > { %1704 = vst.msk [vmem:[#allocation4] sm:$0xff] %vm1703_vm2, %v1656_v18  ;;  %v1308_v22 = vor.u32 %v1307_v10, %v1303_v49  ;;  %v607_v21 = vsel %vm6262_vm12, %v599_v44, %v606_v63  ;;  %v1236_v60 = vor.u32 %v6867_v19, %v6859_v50  ;;  %v6920_v19 = vcombine.low %v1589_v29, %v1592_v25 }
  0x9b   : > { %791 = vst.msk [vmem:[#allocation2 + $0xac] sm:$0xf] %vm312_vm0, %v607_v21  ;;  %v1567_v44 = vrot.slane %v6650_v54, 5  ;;  %v1322_v10 = vor.u32 %v1321_v32, %v1318_v51  ;;  %v615_v16 = vor.u32 %v613_v57, %v612_v52  ;;  %v630_v43 = vshll.u32 %v310_v53, 16 }
  0x9c   : > { %1831 = vrot.lane.b32.xlu1 %v6835_v4, %s6050_s17  ;;  %1905 = vrot.lane.b32.xlu0 %v6686_v1, %s6048_s11  ;;  %v1297_v1 = vrot.slane %v1295_v24, 5  ;;  %v1309_v18 = vrot.slane %v1308_v22, 4  ;;  %v309_v24 = vld [vmem:[%s6224_s29 + $0x74] sm:$0xf]  ;;  %v6934_v22 = vrot.slane %v1236_v60, 4 }
  0x9d   : > { %2528 = vst.msk [vmem:[#allocation3 + $0xa4] sm:$0x1] %vm2488_vm15, %v6043_v0  ;;  %2531 = vst.msk [vmem:[#allocation3 + $0xb0] sm:$0x1] %vm2488_vm15, %v6043_v0 }
  0x9e   : > { %v1298_v9 = vor.u32 %v1297_v1, %v1294_v59  ;;  %v1314_v55 = vsel %vm6247_vm10, %v1309_v18, %v1313_v7  ;;  %v311_v59 = vld [vmem:[%s6224_s29 + $0x7c] sm:$0xf]  ;;  %v621_v7 = vshll.u32 %v309_v24, 16  ;;  %v6943_v18 = vrot.slane %v1322_v10, 4  ;;  %2534 = vst.msk [vmem:[#allocation3 + $0xbc] sm:$0x1] %vm2488_vm15, %v6043_v0 }
  0x9f   : > { %v635_v29 = vshrl.u32 %v311_v59, 16  ;;  %v638_v51 = vshll.u32 %v311_v59, 16  ;;  %2537 = vst.msk [vmem:[#allocation3 + $0xc8] sm:$0x1] %vm2488_vm15, %v6043_v0  ;;  %2540 = vst.msk [vmem:[#allocation3 + $0xd4] sm:$0x1] %vm2488_vm15, %v6043_v0 }
  0xa0   : > { %1907 = vrot.lane.b32.xlu1 %v6816_v39, %s6048_s11  ;;  %1975 = vrot.lane.b32.xlu0 %v6605_v61, %s6047_s10  ;;  %v1299_v27 = vrot.slane %v1298_v9, 4  ;;  %v608_v61 = vrot.slane %v6863_v3, 4  ;;  %v618_v9 = vshrl.u32 %v309_v24, 16 }
  0xa2   : > { %v1726_v37 = vpop.permute.xlu0 %1725  ;;  %v1304_v3 = vsel %vm6247_vm10, %v1299_v27, %v1303_v49  ;;  %v793_v1 = vsel %vm6285_vm13, %v608_v61, %v792_v42  ;;  %v6932_v49 = vrot.slane %v1226_v62, 4  ;;  %v620_v21 = vrot.slane %v618_v9, 7  ;;  %v852_v27 = vld [vmem:[#allocation2 + $0xac] sm:$0xf] }
  0xa3   : > { %1774 = vst.msk [vmem:[#allocation4] sm:$0xff] %vm1773_vm3, %v1726_v37  ;;  %v6924_v63 = vcombine.low %v1304_v3, %v1314_v55  ;;  %794 = vst [vmem:[#allocation2 + $0xb0] sm:$0x1] %v793_v1  ;;  %v796_v62 = vsel %vm6256_vm11, %v615_v16, %v795_v33  ;;  %v629_v37 = vrot.slane %v627_v14, 7  ;;  %v616_v61 = vrot.slane %v612_v52, 4 }
  0xa4   : > { %1977 = vrot.lane.b32.xlu1 %v6633_v20, %s6047_s10  ;;  %2067 = vrot.lane.b32.xlu0 %v6835_v4, %s6051_s18  ;;  %797 = vst [vmem:[#allocation2 + $0xb4] sm:$0xf] %v796_v62  ;;  %v637_v42 = vrot.slane %v635_v29, 7  ;;  %v6950_v32 = vcombine.low %v6889_v36, %v852_v27  ;;  %v1329_v24 = vshrl.u32 %v852_v27, 16  ;;  %v1325_v53 = vshll.u32 %v852_v27, 16 }
  0xa5   : > { %v1595_v3 = vrot.slane %v852_v27, 5  ;;  %v802_v55 = vld [vmem:[#allocation2 + $0xc0] sm:$0xf]  ;;  %v623_v57 = vor.u32 %v621_v7, %v620_v21  ;;  %v625_v1 = vrot.slane %v620_v21, 4  ;;  %v632_v33 = vor.u32 %v630_v43, %v629_v37 }
  0xa6   : > { %v6928_v45 = vpop.permute.xlu1 %1727  ;;  %v6930_v47 = vpop.permute.xlu0 %1963  ;;  %v633_v10 = vrot.slane %v629_v37, 4  ;;  %974 = vst.msk [vmem:[#allocation4 + $0x70] sm:$0xff] %vm8895_vm14, %v6950_v32  ;;  %v1327_v52 = vrot.slane %v1325_v53, 5  ;;  %v1331_v36 = vrot.slane %v1329_v24, 4  ;;  %v806_v24 = vld [vmem:[#allocation2 + $0xc8] sm:$0x1]  ;;  %v1232_v5 = vsel %vm6247_vm10, %v6932_v49, %v6859_v50 }
  0xa7   : > { %v1596_v59 = vsel %vm6234_vm9, %v5394_v26, %v1595_v3  ;;  %v1597_v16 = vrot.slane %v1595_v3, 4  ;;  %v624_v14 = vsel %vm6262_vm12, %v616_v61, %v623_v57  ;;  %v800_v7 = vsel %vm6285_vm13, %v625_v1, %v799_v46 }
  0xa8   : > { %2069 = vrot.lane.b32.xlu1 %v6873_v17, %s6051_s18  ;;  %2143 = vrot.lane.b32.xlu0 %v6816_v39, %s6049_s12  ;;  %v803_v43 = vsel %vm6256_vm11, %v632_v33, %v802_v55  ;;  %v1328_v26 = vsel %vm6247_vm10, %v6943_v18, %v1327_v52  ;;  %v1332_v62 = vor.u32 %v1331_v36, %v1327_v52  ;;  %v1244_v46 = vshrl.u32 %v6778_v15, 16 }
  0xa9   : > { %798 = vst.msk [vmem:[#allocation2 + $0xb8] sm:$0xf] %vm312_vm0, %v624_v14  ;;  %801 = vst [vmem:[#allocation2 + $0xbc] sm:$0x1] %v800_v7  ;;  %v1253_v18 = vshll.u32 %v6780_v48, 16  ;;  %v1568_v36 = vsel %vm6234_vm9, %v5390_v23, %v1567_v44  ;;  %v1569_v14 = vrot.slane %v1567_v44, 4  ;;  %v1242_v23 = vsel %vm6247_vm10, %v6934_v22, %v6869_v58 }
  0xaa   : > { %v6945_v60 = vpop.permute.xlu1 %1965  ;;  %v6947_v25 = vpop.permute.xlu0 %1893  ;;  %v853_v9 = vld [vmem:[#allocation2 + $0xb0] sm:$0x1]  ;;  %804 = vst [vmem:[#allocation2 + $0xc0] sm:$0xf] %v803_v43  ;;  %v1333_v53 = vrot.slane %v1332_v62, 4  ;;  %v1246_v30 = vrot.slane %v1244_v46, 4 }
  0xab   : > { %v1335_v37 = vshll.u32 %v853_v9, 16  ;;  %v1598_v27 = vrot.slane %v853_v9, 5  ;;  %v854_v57 = vld [vmem:[#allocation2 + $0xb4] sm:$0xf]  ;;  %v7014_v54 = vrot.slane %v1253_v18, 5  ;;  %vm2179_vm11 = vcmask 294144  }
  0xac   : > { %1427 = vrot.lane.b32.xlu1 %v6835_v4, %s6045_s8  ;;  %2145 = vrot.lane.b32.xlu0 %v6852_v35, %s6049_s12  ;;  %v640_v4 = vor.u32 %v638_v51, %v637_v42  ;;  %v642_v51 = vrot.slane %v637_v42, 4  ;;  %v1257_v42 = vshrl.u32 %v6780_v48, 16  ;;  %v1340_v33 = vshrl.u32 %v854_v57, 16 }
  0xad   : > { %v1337_v3 = vrot.slane %v1335_v37, 5  ;;  %v1599_v55 = vsel %vm6234_vm9, %v1597_v16, %v1598_v27  ;;  %v1570_v16 = vrot.slane %v6804_v56, 5  ;;  %v1249_v56 = vrot.slane %v1247_v38, 5 }
  0xae   : > { %v6966_v29 = vpop.permute.xlu1 %1657  ;;  %v6968_v21 = vpop.permute.xlu0 %2131  ;;  %v641_v61 = vsel %vm6262_vm12, %v633_v10, %v640_v4  ;;  %v6987_v1 = vcombine.low %v1596_v59, %v1599_v55  ;;  %v1343_v10 = vshll.u32 %v854_v57, 16  ;;  %v807_v59 = vsel %vm6285_vm13, %v642_v51, %v806_v24  ;;  %v7020_v51 = vld [vmem:[#allocation2 + $0x8c] sm:$0x1] }
  0xaf   : > { %805 = vst.msk [vmem:[#allocation2 + $0xc4] sm:$0xf] %vm312_vm0, %v641_v61  ;;  %v1338_v9 = vsel %vm6247_vm10, %v1333_v53, %v1337_v3  ;;  %v1342_v4 = vrot.slane %v1340_v33, 4  ;;  %808 = vst [vmem:[#allocation2 + $0xc8] sm:$0x1] %v807_v59  ;;  %v1259_v44 = vrot.slane %v1257_v42, 4  ;;  %v1571_v38 = vsel %vm6234_vm9, %v1569_v14, %v1570_v16 }
  0xb0   : > { %1429 = vrot.lane.b32.xlu1 %v6873_v17, %s6045_s8  ;;  %1671 = vrot.lane.b32.xlu0 %v6816_v39, %s6044_s30  ;;  %v7004_v7 = vcombine.low %v1328_v26, %v1338_v9  ;;  %v1345_v43 = vrot.slane %v1343_v10, 5  ;;  %v855_v26 = vld [vmem:[#allocation2 + $0xb8] sm:$0xf]  ;;  %v856_v62 = vld [vmem:[#allocation2 + $0xbc] sm:$0x1]  ;;  %v5395_v27 = vrot.slane %v854_v57, 9  ;;  %v7033_v53 = vcombine.low %v1232_v5, %v1242_v23 }
  0xb1   : > { %v7022_v24 = vcombine.low %v854_v57, %v855_v26  ;;  %v1353_v50 = vshrl.u32 %v855_v26, 16  ;;  %v1349_v49 = vshll.u32 %v855_v26, 16  ;;  %v1359_v46 = vshll.u32 %v856_v62, 16 }
  0xb2   : > { %v1896_v52 = vpop.permute.xlu1 %1895  ;;  %v6989_v39 = vpop.permute.xlu0 %2133  ;;  %v1346_v37 = vor.u32 %v1345_v43, %v1342_v4  ;;  %v1602_v22 = vrot.slane %v855_v26, 5  ;;  %v1605_v18 = vrot.slane %v856_v62, 5  ;;  %v1250_v3 = vor.u32 %v1249_v56, %v1246_v30 }
  0xb3   : > { %975 = vst.msk [vmem:[#allocation4 + $0x78] sm:$0xff] %vm8895_vm14, %v7022_v24  ;;  %v1351_v55 = vrot.slane %v1349_v49, 5  ;;  %v1355_v57 = vrot.slane %v1353_v50, 4  ;;  %v1260_v42 = vor.u32 %v1259_v44, %v7014_v54  ;;  %v1263_v33 = vshll.u32 %v7020_v51, 16 }
  0xb4   : > { %1673 = vrot.lane.b32.xlu1 %v6852_v35, %s6044_s30  ;;  %1741 = vrot.lane.b32.xlu0 %v6633_v20, %s6046_s9  ;;  %v1347_v58 = vrot.slane %v1346_v37, 4  ;;  %v1604_v10 = vrot.slane %v1602_v22, 4  ;;  %vm2103_vm0 = vcmask 261344   ;;  %v1361_v14 = vrot.slane %v1359_v46, 5 }
  0xb5   : > { %v1356_v59 = vor.u32 %v1355_v57, %v1351_v55  ;;  %v7058_v4 = vcombine.low %v1568_v36, %v1571_v38  ;;  %v1261_v5 = vrot.slane %v1260_v42, 4  ;;  %v1265_v30 = vrot.slane %v1263_v33, 5 }
  0xb6   : > { %v1820_v20 = vpop.permute.xlu1 %1819  ;;  %v1414_v61 = vpop.permute.xlu0 %1413  ;;  %v1352_v9 = vsel %vm6247_vm10, %v1347_v58, %v1351_v55  ;;  %v1574_v56 = vrot.slane %v6780_v48, 5  ;;  %v5391_v48 = vrot.slane %v6778_v15, 9  ;;  %v1577_v26 = vrot.slane %v7020_v51, 5 }
  0xb7   : > { %1461 = vst.msk [vmem:[#allocation4 + $0x8] sm:$0xff] %vm1459_vm1, %v1414_v61  ;;  %v1277_v61 = vshll.u32 %v6825_v12, 16  ;;  %vm2239_vm13 = vcmask 293888   ;;  %v1287_v42 = vshll.u32 %v6844_v31, 16  ;;  %vm2485_vm14 = vcmask 60416  }
  0xb8   : > { %1743 = vrot.lane.b32.xlu1 %v6654_v34, %s6046_s9  ;;  %1705 = vst.msk [vmem:[#allocation4 + $0x8] sm:$0xff] %vm1703_vm2, %v6966_v29  ;;  %1833 = vrot.lane.b32.xlu0 %v6873_v17, %s6050_s17  ;;  %v1603_v29 = vsel %vm6234_vm9, %v5395_v27, %v1602_v22  ;;  %v1576_v44 = vrot.slane %v1574_v56, 4  ;;  %v1575_v15 = vsel %vm6234_vm9, %v5391_v48, %v1574_v56  ;;  %v1271_v27 = vshll.u32 %v6823_v6, 16 }
  0xb9   : > { %1775 = vst.msk [vmem:[#allocation4 + $0x8] sm:$0xff] %vm1773_vm3, %v6928_v45  ;;  %v1606_v45 = vsel %vm6234_vm9, %v1604_v10, %v1605_v18 }
  0xba   : > { %v2058_v17 = vpop.permute.xlu1 %2057  ;;  %1867 = vst.msk [vmem:[#allocation4 + $0x8] sm:$0xff] %vm1865_vm4, %v1820_v20  ;;  %v1818_v16 = vpop.permute.xlu0 %1817  ;;  %v7060_v43 = vcombine.low %v1603_v29, %v1606_v45  ;;  %v1281_v20 = vshrl.u32 %v6825_v12, 16  ;;  %v1273_v58 = vrot.slane %v1271_v27, 5  ;;  %v1279_v12 = vrot.slane %v1277_v61, 5  ;;  %v7193_v61 = vld [vmem:[#allocation2 + $0xc4] sm:$0xf] }
  0xbb   : > { %1943 = vst.msk [vmem:[#allocation4 + $0x8] sm:$0xff] %vm1941_vm5, %v1896_v52  ;;  %v1357_v52 = vrot.slane %v1356_v59, 4 }
  0xbc   : > { %1866 = vst.msk [vmem:[#allocation4] sm:$0xff] %vm1865_vm4, %v1818_v16  ;;  %1835 = vrot.lane.b32.xlu1 %v7033_v53, %s6050_s17  ;;  %1909 = vrot.lane.b32.xlu0 %v6852_v35, %s6048_s11  ;;  %v1283_v22 = vrot.slane %v1281_v20, 4  ;;  %v7191_v20 = vld [vmem:[#allocation2 + $0xc0] sm:$0xf] }
  0xbd   : > { %2013 = vst.msk [vmem:[#allocation4 + $0x8] sm:$0xff] %vm2011_vm7, %v6945_v60  ;;  %v1251_v60 = vrot.slane %v1250_v3, 4  ;;  %v1362_v36 = vsel %vm6247_vm10, %v1357_v52, %v1361_v14 }
  0xbe   : > { %1942 = vst.msk [vmem:[#allocation4] sm:$0xff] %vm1941_vm5, %v6947_v25  ;;  %v1416_v25 = vpop.permute.xlu1 %1415  ;;  %v2056_v35 = vpop.permute.xlu0 %2055  ;;  %v7072_v23 = vcombine.low %v1352_v9, %v1362_v36  ;;  %v1284_v57 = vor.u32 %v1283_v22, %v1279_v12 }
  0xbf   : > { %2105 = vst.msk [vmem:[#allocation4 + $0x8] sm:$0xff] %vm2103_vm0, %v2058_v17 }
  0xc0   : > { %2012 = vst.msk [vmem:[#allocation4] sm:$0xff] %vm2011_vm7, %v6930_v47  ;;  %1911 = vrot.lane.b32.xlu1 %v7058_v4, %s6048_s11  ;;  %1979 = vrot.lane.b32.xlu0 %v6654_v34, %s6047_s10  ;;  %v1256_v47 = vsel %vm6247_vm10, %v1251_v60, %v7014_v54  ;;  %v1578_v54 = vsel %vm6234_vm9, %v1576_v44, %v1577_v26  ;;  %v1285_v17 = vrot.slane %v1284_v57, 4  ;;  %v7219_v57 = vld [vmem:[#allocation2 + $0xcc] sm:$0xf] }
  0xc1   : > { %2181 = vst.msk [vmem:[#allocation4 + $0x8] sm:$0xff] %vm2179_vm11, %v6989_v39  ;;  %v1266_v39 = vsel %vm6247_vm10, %v1261_v5, %v1265_v30  ;;  %v5407_v46 = vcombine.low %v1575_v15, %v1578_v54 }
  0xc2   : > { %1462 = vst.msk [vmem:[#allocation4 + $0x10] sm:$0xff] %vm1459_vm1, %v1416_v25  ;;  %v1418_v62 = vpop.permute.xlu1 %1417  ;;  %v1660_v37 = vpop.permute.xlu0 %1659  ;;  %v5375_v34 = vcombine.low %v1256_v47, %v1266_v39 }
  0xc3   : > { %2104 = vst.msk [vmem:[#allocation4] sm:$0xff] %vm2103_vm0, %v2056_v35 }
  0xc4   : > { %2180 = vst.msk [vmem:[#allocation4] sm:$0xff] %vm2179_vm11, %v6968_v21  ;;  %1981 = vrot.lane.b32.xlu1 %v6793_v2, %s6047_s10  ;;  %2071 = vrot.lane.b32.xlu0 %v7033_v53, %s6051_s18  ;;  %v1268_v21 = vshrl.u32 %v6823_v6, 16 }
  0xc5   : > { %1463 = vst.msk [vmem:[#allocation4 + $0x18] sm:$0xff] %vm1459_vm1, %v1418_v62 }
  0xc6   : > { %1706 = vst.msk [vmem:[#allocation4 + $0x10] sm:$0xff] %vm1703_vm2, %v1660_v37  ;;  %v1662_v51 = vpop.permute.xlu1 %1661  ;;  %v1730_v50 = vpop.permute.xlu0 %1729  ;;  %v1270_v38 = vrot.slane %v1268_v21, 4 }
  0xc7   : > { %1707 = vst.msk [vmem:[#allocation4 + $0x18] sm:$0xff] %vm1703_vm2, %v1662_v51  ;;  %v1804_v51 = vshrl.u32 %v7193_v61, 16 }
  0xc8   : > { %1776 = vst.msk [vmem:[#allocation4 + $0x10] sm:$0xff] %vm1773_vm3, %v1730_v50  ;;  %2073 = vrot.lane.b32.xlu1 %v5375_v34, %s6051_s18  ;;  %2147 = vrot.lane.b32.xlu0 %v7058_v4, %s6049_s12  ;;  %v2197_v6 = vld [vmem:[#allocation4 + $0x8] sm:$0xff]  ;;  %v1274_v55 = vor.u32 %v1273_v58, %v1270_v38  ;;  %v1800_v50 = vshll.u32 %v7193_v61, 16 }
  0xc9   : > { %v1806_v22 = vrot.slane %v1804_v51, 4  ;;  %2493 = vst.msk [vmem:[#allocation3 + $0x18] sm:$0xf] %vm2485_vm14, %v6043_v0  ;;  %2486 = vst.msk [vmem:[#allocation3] sm:$0xf] %vm2485_vm14, %v6043_v0 }
  0xca   : > { %v1732_v18 = vpop.permute.xlu1 %1731  ;;  %v1822_v3 = vpop.permute.xlu0 %1821  ;;  %v1275_v10 = vrot.slane %v1274_v55, 4  ;;  %v859_v55 = vld [vmem:[#allocation2 + $0xc8] sm:$0x1]  ;;  %2487 = vst.msk [vmem:[#allocation3 + $0x4] sm:$0xf] %vm2485_vm14, %v6043_v0 }
  0xcb   : > { %v2196_v49 = vld [vmem:[#allocation4] sm:$0xff]  ;;  %1777 = vst.msk [vmem:[#allocation4 + $0x18] sm:$0xff] %vm1773_vm3, %v1732_v18 }
  0xcc   : > { %5762 = vmatprep.mubr.msk.bf16.mxu0 %vm2239_vm13, %v2196_v49  ;;  %1868 = vst.msk [vmem:[#allocation4 + $0x10] sm:$0xff] %vm1865_vm4, %v1822_v3  ;;  %1431 = vrot.lane.b32.xlu1 %v7033_v53, %s6045_s8  ;;  %v1289_v53 = vrot.slane %v1287_v42, 5  ;;  %v1280_v31 = vsel %vm6247_vm10, %v1275_v10, %v1279_v12  ;;  %v1802_v12 = vrot.slane %v1800_v50, 5  ;;  %v7221_v10 = vld [vmem:[#allocation2 + $0xd0] sm:$0xf] }
  0xcd   : > { %5763 = vmatmul.mubr.msk.bf16.vlgmr.msra.gmra.mrb[0].mxu0 %vm2239_vm13, %v2197_v6  ;;  %2149 = vrot.lane.b32.xlu0 %v5407_v46, %s6049_s12  ;;  %2490 = vst.msk [vmem:[#allocation3 + $0xc] sm:$0xf] %vm2485_vm14, %v6043_v0  ;;  %2491 = vst.msk [vmem:[#allocation3 + $0x10] sm:$0xf] %vm2485_vm14, %v6043_v0 }
  0xce   : > { %v1824_v33 = vpop.permute.xlu1 %1823  ;;  %v1898_v29 = vpop.permute.xlu0 %1897  ;;  %v1290_v59 = vsel %vm6247_vm10, %v1285_v17, %v1289_v53  ;;  %2494 = vst.msk [vmem:[#allocation3 + $0x1c] sm:$0xf] %vm2485_vm14, %v6043_v0  ;;  %2496 = vst.msk [vmem:[#allocation3 + $0x24] sm:$0xf] %vm2485_vm14, %v6043_v0 }
  0xcf   : > { %1869 = vst.msk [vmem:[#allocation4 + $0x18] sm:$0xff] %vm1865_vm4, %v1824_v33  ;;  %v1807_v33 = vor.u32 %v1806_v22, %v1802_v12 }
  0xd0   : > { %1944 = vst.msk [vmem:[#allocation4 + $0x10] sm:$0xff] %vm1941_vm5, %v1898_v29  ;;  %1433 = vrot.lane.b32.xlu1 %v5375_v34, %s6045_s8  ;;  %v1810_v29 = vshll.u32 %v859_v55, 16  ;;  %v7422_v22 = vld [vmem:[#allocation3] sm:$0xf] }
  0xd1   : > { %1675 = vrot.lane.b32.xlu0 %v7058_v4, %s6044_s30  ;;  %v5376_v4 = vcombine.low %v1280_v31, %v1290_v59  ;;  %v2038_v31 = vshll.u32 %v7221_v10, 16  ;;  %2497 = vst.msk [vmem:[#allocation3 + $0x28] sm:$0xf] %vm2485_vm14, %v6043_v0  ;;  %2499 = vst.msk [vmem:[#allocation3 + $0x30] sm:$0xf] %vm2485_vm14, %v6043_v0 }
  0xd2   : > { %v1900_v16 = vpop.permute.xlu1 %1899  ;;  %v1968_v9 = vpop.permute.xlu0 %1967  ;;  %2500 = vst.msk [vmem:[#allocation3 + $0x34] sm:$0xf] %vm2485_vm14, %v6043_v0  ;;  %2502 = vst.msk [vmem:[#allocation3 + $0x3c] sm:$0xf] %vm2485_vm14, %v6043_v0 }
  0xd3   : > { %1945 = vst.msk [vmem:[#allocation4 + $0x18] sm:$0xff] %vm1941_vm5, %v1900_v16  ;;  %v2029_v16 = vshrl.u32 %v7219_v57, 16 }
  0xd4   : > { %2014 = vst.msk [vmem:[#allocation4 + $0x10] sm:$0xff] %vm2011_vm7, %v1968_v9  ;;  %1677 = vrot.lane.b32.xlu1 %v5407_v46, %s6044_s30  ;;  %v2042_v9 = vshrl.u32 %v7221_v10, 16 }
  0xd5   : > { %1745 = vrot.lane.b32.xlu0 %v6793_v2, %s6046_s9  ;;  %2503 = vst.msk [vmem:[#allocation3 + $0x40] sm:$0xf] %vm2485_vm14, %v6043_v0  ;;  %2505 = vst.msk [vmem:[#allocation3 + $0x48] sm:$0xf] %vm2485_vm14, %v6043_v0 }
  0xd6   : > { %v1970_v14 = vpop.permute.xlu1 %1969  ;;  %v2060_v45 = vpop.permute.xlu0 %2059  ;;  %2506 = vst.msk [vmem:[#allocation3 + $0x4c] sm:$0xf] %vm2485_vm14, %v6043_v0  ;;  %2508 = vst.msk [vmem:[#allocation3 + $0x54] sm:$0xf] %vm2485_vm14, %v6043_v0 }
  0xd7   : > { %2015 = vst.msk [vmem:[#allocation4 + $0x18] sm:$0xff] %vm2011_vm7, %v1970_v14  ;;  %v1808_v14 = vrot.slane %v1807_v33, 4  ;;  %v3245_v33 = vshll.u32 %v7422_v22, 16 }
  0xd8   : > { %2106 = vst.msk [vmem:[#allocation4 + $0x10] sm:$0xff] %vm2103_vm0, %v2060_v45  ;;  %1747 = vrot.lane.b32.xlu1 %v6832_v13, %s6046_s9  ;;  %v1812_v45 = vrot.slane %v1810_v29, 5 }
  0xd9   : > { %1837 = vrot.lane.b32.xlu0 %v5375_v34, %s6050_s17  ;;  %2509 = vst.msk [vmem:[#allocation3 + $0x58] sm:$0xf] %vm2485_vm14, %v6043_v0  ;;  %2511 = vst.msk [vmem:[#allocation3 + $0x60] sm:$0xf] %vm2485_vm14, %v6043_v0 }
  0xda   : > { %v2062_v52 = vpop.permute.xlu1 %2061  ;;  %v2136_v2 = vpop.permute.xlu0 %2135  ;;  %2512 = vst.msk [vmem:[#allocation3 + $0x64] sm:$0xf] %vm2485_vm14, %v6043_v0  ;;  %2514 = vst.msk [vmem:[#allocation3 + $0x6c] sm:$0xf] %vm2485_vm14, %v6043_v0 }
  0xdb   : > { %2107 = vst.msk [vmem:[#allocation4 + $0x18] sm:$0xff] %vm2103_vm0, %v2062_v52 }
  0xdc   : > { %2182 = vst.msk [vmem:[#allocation4 + $0x10] sm:$0xff] %vm2179_vm11, %v2136_v2  ;;  %1839 = vrot.lane.b32.xlu1 %v5376_v4, %s6050_s17 }
  0xdd   : > { %1913 = vrot.lane.b32.xlu0 %v5407_v46, %s6048_s11  ;;  %2515 = vst.msk [vmem:[#allocation3 + $0x70] sm:$0xf] %vm2485_vm14, %v6043_v0  ;;  %2517 = vst.msk [vmem:[#allocation3 + $0x78] sm:$0xf] %vm2485_vm14, %v6043_v0 }
  0xde   : > { %v1420_v60 = vpop.permute.xlu1 %1419  ;;  %v2138_v5 = vpop.permute.xlu0 %2137  ;;  %2518 = vst.msk [vmem:[#allocation3 + $0x7c] sm:$0xf] %vm2485_vm14, %v6043_v0  ;;  %2520 = vst.msk [vmem:[#allocation3 + $0x84] sm:$0xf] %vm2485_vm14, %v6043_v0 }
  0xdf   : > { %1464 = vst.msk [vmem:[#allocation4 + $0x20] sm:$0xff] %vm1459_vm1, %v1420_v60  ;;  %v2031_v60 = vrot.slane %v2029_v16, 4  ;;  %v3247_v16 = vrot.slane %v3245_v33, 5 }
  0xe0   : > { %2183 = vst.msk [vmem:[#allocation4 + $0x18] sm:$0xff] %vm2179_vm11, %v2138_v5  ;;  %1915 = vrot.lane.b32.xlu1 %v6885_v11, %s6048_s11 }
  0xe1   : > { %1983 = vrot.lane.b32.xlu0 %v6832_v13, %s6047_s10  ;;  %2521 = vst.msk [vmem:[#allocation3 + $0x88] sm:$0xf] %vm2485_vm14, %v6043_v0  ;;  %2523 = vst.msk [vmem:[#allocation3 + $0x90] sm:$0xf] %vm2485_vm14, %v6043_v0 }
  0xe2   : > { %v1422_v30 = vpop.permute.xlu1 %1421  ;;  %v1664_v56 = vpop.permute.xlu0 %1663  ;;  %2524 = vst.msk [vmem:[#allocation3 + $0x94] sm:$0xf] %vm2485_vm14, %v6043_v0  ;;  %2526 = vst.msk [vmem:[#allocation3 + $0x9c] sm:$0xf] %vm2485_vm14, %v6043_v0 }
  0xe3   : > { %v2198_v25 = vld [vmem:[#allocation4 + $0x10] sm:$0xff]  ;;  %1465 = vst.msk [vmem:[#allocation4 + $0x28] sm:$0xff] %vm1459_vm1, %v1422_v30  ;;  %v5414_v30 = vrot.slane %v7191_v20, 9 }
  0xe4   : > { %1708 = vst.msk [vmem:[#allocation4 + $0x20] sm:$0xff] %vm1703_vm2, %v1664_v56  ;;  %5766 = vmatprep.mubr.msk.bf16.mxu0 %vm2239_vm13, %v2198_v25  ;;  %1985 = vrot.lane.b32.xlu1 %v6861_v41, %s6047_s10  ;;  %v7245_v56 = vrot.slane %v2038_v31, 5  ;;  %v2044_v25 = vrot.slane %v2042_v9, 4  ;;  %v3076_v31 = vld [vmem:[#allocation3 + $0x8] sm:$0x1] }
  0xe5   : > { %2075 = vrot.lane.b32.xlu0 %v5376_v4, %s6051_s18  ;;  %2527 = vst.msk [vmem:[#allocation3 + $0xa0] sm:$0xf] %vm2485_vm14, %v6043_v0  ;;  %2529 = vst.msk [vmem:[#allocation3 + $0xa8] sm:$0xf] %vm2485_vm14, %v6043_v0 }
  0xe6   : > { %v1666_v35 = vpop.permute.xlu1 %1665  ;;  %v1734_v36 = vpop.permute.xlu0 %1733  ;;  %2530 = vst.msk [vmem:[#allocation3 + $0xac] sm:$0xf] %vm2485_vm14, %v6043_v0  ;;  %2532 = vst.msk [vmem:[#allocation3 + $0xb4] sm:$0xf] %vm2485_vm14, %v6043_v0 }
  0xe7   : > { %v2199_v48 = vld [vmem:[#allocation4 + $0x18] sm:$0xff]  ;;  %1709 = vst.msk [vmem:[#allocation4 + $0x28] sm:$0xff] %vm1703_vm2, %v1666_v35 }
  0xe8   : > { %1778 = vst.msk [vmem:[#allocation4 + $0x20] sm:$0xff] %vm1773_vm3, %v1734_v36  ;;  %5767 = vmatmul.mubr.msk.bf16.gmra.mrb[4].mxu0 %vm2239_vm13, %v2199_v48  ;;  %2077 = vrot.lane.b32.xlu1 %v6924_v63, %s6051_s18  ;;  %v1813_v36 = vsel %vm6247_vm10, %v1808_v14, %v1812_v45 }
  0xe9   : > { %2151 = vrot.lane.b32.xlu0 %v6885_v11, %s6049_s12  ;;  %2533 = vst.msk [vmem:[#allocation3 + $0xb8] sm:$0xf] %vm2485_vm14, %v6043_v0  ;;  %2535 = vst.msk [vmem:[#allocation3 + $0xc0] sm:$0xf] %vm2485_vm14, %v6043_v0 }
  0xea   : > { %v1736_v13 = vpop.permute.xlu1 %1735  ;;  %v1826_v47 = vpop.permute.xlu0 %1825  ;;  %2536 = vst.msk [vmem:[#allocation3 + $0xc4] sm:$0xf] %vm2485_vm14, %v6043_v0  ;;  %2538 = vst.msk [vmem:[#allocation3 + $0xcc] sm:$0xf] %vm2485_vm14, %v6043_v0 }
  0xeb   : > { %1779 = vst.msk [vmem:[#allocation4 + $0x28] sm:$0xff] %vm1773_vm3, %v1736_v13  ;;  %v1888_v13 = vrot.slane %v859_v55, 5 }
  0xec   : > { %1870 = vst.msk [vmem:[#allocation4 + $0x20] sm:$0xff] %vm1865_vm4, %v1826_v47  ;;  %1435 = vrot.lane.b32.xlu1 %v5376_v4, %s6045_s8  ;;  %v1885_v4 = vrot.slane %v7193_v61, 5 }
  0xed   : > { %2153 = vrot.lane.b32.xlu0 %v6920_v19, %s6049_s12  ;;  %2539 = vst.msk [vmem:[#allocation3 + $0xd0] sm:$0xf] %vm2485_vm14, %v6043_v0 }
  0xee   : > { %v1828_v39 = vpop.permute.xlu1 %1827  ;;  %v1902_v44 = vpop.permute.xlu0 %1901  ;;  %v1887_v48 = vrot.slane %v1885_v4, 4 }
  0xef   : > { %1871 = vst.msk [vmem:[#allocation4 + $0x28] sm:$0xff] %vm1865_vm4, %v1828_v39 }
  0xf0   : > { %1946 = vst.msk [vmem:[#allocation4 + $0x20] sm:$0xff] %vm1941_vm5, %v1902_v44  ;;  %1437 = vrot.lane.b32.xlu1 %v6924_v63, %s6045_s8 }
  0xf1   : > { %1679 = vrot.lane.b32.xlu0 %v6885_v11, %s6044_s30 }
  0xf2   : > { %v1904_v26 = vpop.permute.xlu1 %1903  ;;  %v1972_v62 = vpop.permute.xlu0 %1971 }
  0xf3   : > { %1947 = vst.msk [vmem:[#allocation4 + $0x28] sm:$0xff] %vm1941_vm5, %v1904_v26 }
  0xf4   : > { %2016 = vst.msk [vmem:[#allocation4 + $0x20] sm:$0xff] %vm2011_vm7, %v1972_v62  ;;  %1681 = vrot.lane.b32.xlu1 %v6920_v19, %s6044_s30  ;;  %v1886_v62 = vsel %vm6234_vm9, %v5414_v30, %v1885_v4 }
  0xf5   : > { %1749 = vrot.lane.b32.xlu0 %v6861_v41, %s6046_s9 }
  0xf6   : > { %v1974_v37 = vpop.permute.xlu1 %1973  ;;  %v2064_v34 = vpop.permute.xlu0 %2063 }
  0xf7   : > { %2017 = vst.msk [vmem:[#allocation4 + $0x28] sm:$0xff] %vm2011_vm7, %v1974_v37  ;;  %v1889_v37 = vsel %vm6234_vm9, %v1887_v48, %v1888_v13  ;;  %v3759_v13 = vrot.slane %v3076_v31, 5 }
  0xf8   : > { %2108 = vst.msk [vmem:[#allocation4 + $0x20] sm:$0xff] %vm2103_vm0, %v2064_v34  ;;  %1751 = vrot.lane.b32.xlu1 %v6950_v32, %s6046_s9  ;;  %v2045_v34 = vor.u32 %v2044_v25, %v7245_v56 }
  0xf9   : > { %1841 = vrot.lane.b32.xlu0 %v6924_v63, %s6050_s17 }
  0xfa   : > { %v2066_v11 = vpop.permute.xlu1 %2065  ;;  %v2140_v15 = vpop.permute.xlu0 %2139 }
  0xfb   : > { %2109 = vst.msk [vmem:[#allocation4 + $0x28] sm:$0xff] %vm2103_vm0, %v2066_v11 }
  0xfc   : > { %2184 = vst.msk [vmem:[#allocation4 + $0x20] sm:$0xff] %vm2179_vm11, %v2140_v15  ;;  %1843 = vrot.lane.b32.xlu1 %v7004_v7, %s6050_s17 }
  0xfd   : > { %1917 = vrot.lane.b32.xlu0 %v6920_v19, %s6048_s11  ;;  %v1791_v19 = vshrl.u32 %v7191_v20, 16 }
  0xfe   : > { %v1424_v41 = vpop.permute.xlu1 %1423  ;;  %v2142_v21 = vpop.permute.xlu0 %2141 }
  0xff   : > { %1466 = vst.msk [vmem:[#allocation4 + $0x30] sm:$0xff] %vm1459_vm1, %v1424_v41  ;;  %v1793_v38 = vrot.slane %v1791_v19, 4  ;;  %v5418_v19 = vrot.slane %v7219_v57, 9 }
 0x100   : > { %2185 = vst.msk [vmem:[#allocation4 + $0x28] sm:$0xff] %vm2179_vm11, %v2142_v21  ;;  %1919 = vrot.lane.b32.xlu1 %v6987_v1, %s6048_s11  ;;  %v2123_v21 = vrot.slane %v7221_v10, 5 }
 0x101   : > { %1987 = vrot.lane.b32.xlu0 %v6950_v32, %s6047_s10  ;;  %v1794_v32 = vshll.u32 %v7191_v20, 16 }
 0x102   : > { %v1426_v63 = vpop.permute.xlu1 %1425  ;;  %v1668_v54 = vpop.permute.xlu0 %1667 }
 0x103   : > { %v2200_v27 = vld [vmem:[#allocation4 + $0x20] sm:$0xff]  ;;  %1467 = vst.msk [vmem:[#allocation4 + $0x38] sm:$0xff] %vm1459_vm1, %v1426_v63  ;;  %v1796_v58 = vrot.slane %v1794_v32, 5  ;;  %v2125_v32 = vrot.slane %v2123_v21, 4 }
 0x104   : > { %1710 = vst.msk [vmem:[#allocation4 + $0x30] sm:$0xff] %vm1703_vm2, %v1668_v54  ;;  %5770 = vmatprep.mubr.msk.bf16.mxu0 %vm2239_vm13, %v2200_v27  ;;  %1989 = vrot.lane.b32.xlu1 %v7022_v24, %s6047_s10  ;;  %v7278_v54 = vrot.slane %v2045_v34, 4 }
 0x105   : > { %2079 = vrot.lane.b32.xlu0 %v7004_v7, %s6051_s18  ;;  %v1797_v42 = vor.u32 %v1796_v58, %v1793_v38 }
 0x106   : > { %v1670_v49 = vpop.permute.xlu1 %1669  ;;  %v1738_v46 = vpop.permute.xlu0 %1737 }
 0x107   : > { %v2201_v6 = vld [vmem:[#allocation4 + $0x28] sm:$0xff]  ;;  %1711 = vst.msk [vmem:[#allocation4 + $0x38] sm:$0xff] %vm1703_vm2, %v1670_v49  ;;  %v1798_v59 = vrot.slane %v1797_v42, 4  ;;  %v3242_v42 = vshrl.u32 %v7422_v22, 16 }
 0x108   : > { %1780 = vst.msk [vmem:[#allocation4 + $0x30] sm:$0xff] %vm1773_vm3, %v1738_v46  ;;  %5771 = vmatmul.mubr.msk.bf16.gmra.mrb[8].mxu0 %vm2239_vm13, %v2201_v6  ;;  %2081 = vrot.lane.b32.xlu1 %v7072_v23, %s6051_s18 }
 0x109   : > { %2155 = vrot.lane.b32.xlu0 %v6987_v1, %s6049_s12  ;;  %v1803_v35 = vsel %vm6247_vm10, %v1798_v59, %v1802_v12  ;;  %v2124_v12 = vsel %vm6234_vm9, %v5418_v19, %v2123_v21 }
 0x10a   : > { %v1740_v18 = vpop.permute.xlu1 %1739  ;;  %v1830_v3 = vpop.permute.xlu0 %1829  ;;  %v7259_v44 = vcombine.low %v1803_v35, %v1813_v36  ;;  %v5504_v35 = vrot.slane %v7422_v22, 9 }
 0x10b   : > { %1781 = vst.msk [vmem:[#allocation4 + $0x38] sm:$0xff] %vm1773_vm3, %v1740_v18  ;;  %v7424_v18 = vld [vmem:[#allocation3 + $0x4] sm:$0xf] }
 0x10c   : > { %1872 = vst.msk [vmem:[#allocation4 + $0x30] sm:$0xff] %vm1865_vm4, %v1830_v3  ;;  %1439 = vrot.lane.b32.xlu1 %v7004_v7, %s6045_s8  ;;  %v2032_v7 = vshll.u32 %v7219_v57, 16  ;;  %v3251_v29 = vshll.u32 %v7424_v18, 16  ;;  %v3756_v36 = vrot.slane %v7424_v18, 5 }
 0x10d   : > { %2157 = vrot.lane.b32.xlu0 %v7060_v43, %s6049_s12 }
 0x10e   : > { %v1832_v17 = vpop.permute.xlu1 %1831  ;;  %v1906_v53 = vpop.permute.xlu0 %1905  ;;  %v2034_v5 = vrot.slane %v2032_v7, 5  ;;  %v3253_v7 = vrot.slane %v3251_v29, 5 }
 0x10f   : > { %1873 = vst.msk [vmem:[#allocation4 + $0x38] sm:$0xff] %vm1865_vm4, %v1832_v17 }
 0x110   : > { %1948 = vst.msk [vmem:[#allocation4 + $0x30] sm:$0xff] %vm1941_vm5, %v1906_v53  ;;  %1441 = vrot.lane.b32.xlu1 %v7072_v23, %s6045_s8  ;;  %v2035_v26 = vor.u32 %v2034_v5, %v2031_v60  ;;  %v3244_v53 = vrot.slane %v3242_v42, 4 }
 0x111   : > { %1683 = vrot.lane.b32.xlu0 %v6987_v1, %s6044_s30  ;;  %v7242_v1 = vcombine.low %v7191_v20, %v7193_v61 }
 0x112   : > { %v1908_v52 = vpop.permute.xlu1 %1907  ;;  %v1976_v2 = vpop.permute.xlu0 %1975  ;;  %v7276_v63 = vrot.slane %v2035_v26, 4  ;;  %v3248_v45 = vor.u32 %v3247_v16, %v3244_v53 }
 0x113   : > { %1949 = vst.msk [vmem:[#allocation4 + $0x38] sm:$0xff] %vm1941_vm5, %v1908_v52  ;;  %v3261_v52 = vshll.u32 %v3076_v31, 16 }
 0x114   : > { %2018 = vst.msk [vmem:[#allocation4 + $0x30] sm:$0xff] %vm2011_vm7, %v1976_v2  ;;  %1685 = vrot.lane.b32.xlu1 %v7060_v43, %s6044_s30  ;;  %v2041_v50 = vsel %vm6247_vm10, %v7276_v63, %v7245_v56  ;;  %v3249_v2 = vrot.slane %v3248_v45, 4 }
 0x115   : > { %1753 = vrot.lane.b32.xlu0 %v7022_v24, %s6046_s9  ;;  %v7251_v24 = vld [vmem:[#allocation2 + $0xd4] sm:$0x1]  ;;  %v3263_v5 = vrot.slane %v3261_v52, 5 }
 0x116   : > { %v1978_v47 = vpop.permute.xlu1 %1977  ;;  %v2068_v39 = vpop.permute.xlu0 %2067  ;;  %v2048_v11 = vshll.u32 %v7251_v24, 16  ;;  %v2126_v51 = vrot.slane %v7251_v24, 5  ;;  %v3254_v56 = vsel %vm6247_vm10, %v3249_v2, %v3253_v7 }
 0x117   : > { %2019 = vst.msk [vmem:[#allocation4 + $0x38] sm:$0xff] %vm2011_vm7, %v1978_v47  ;;  %v3757_v47 = vsel %vm6234_vm9, %v5504_v35, %v3756_v36 }
 0x118   : > { %2110 = vst.msk [vmem:[#allocation4 + $0x30] sm:$0xff] %vm2103_vm0, %v2068_v39  ;;  %1755 = vrot.lane.b32.xlu1 %v7242_v1, %s6046_s9  ;;  %v7280_v27 = vrot.slane %v2048_v11, 5  ;;  %v2127_v0 = vsel %vm6234_vm9, %v2125_v32, %v2126_v51  ;;  %v3758_v39 = vrot.slane %v3756_v36, 4 }
 0x119   : > { %1845 = vrot.lane.b32.xlu0 %v7072_v23, %s6050_s17  ;;  %v7273_v23 = vcombine.low %v1886_v62, %v1889_v37  ;;  %v5419_v17 = vcombine.low %v2124_v12, %v2127_v0 }
 0x11a   : > { %v2070_v15 = vpop.permute.xlu1 %2069  ;;  %v2144_v41 = vpop.permute.xlu0 %2143  ;;  %v2051_v49 = vsel %vm6247_vm10, %v7278_v54, %v7280_v27  ;;  %v3760_v26 = vsel %vm6234_vm9, %v3758_v39, %v3759_v13 }
 0x11b   : > { %2111 = vst.msk [vmem:[#allocation4 + $0x38] sm:$0xff] %vm2103_vm0, %v2070_v15  ;;  %v5417_v58 = vcombine.low %v2041_v50, %v2051_v49  ;;  %v5520_v62 = vcombine.low %v3757_v47, %v3760_v26 }
 0x11c   : > { %2186 = vst.msk [vmem:[#allocation4 + $0x30] sm:$0xff] %vm2179_vm11, %v2144_v41  ;;  %1847 = vrot.lane.b32.xlu1 %v7259_v44, %s6050_s17 }
 0x11d   : > { %1921 = vrot.lane.b32.xlu0 %v7060_v43, %s6048_s11  ;;  %v5416_v43 = vcombine.low %v7219_v57, %v7221_v10  ;;  %v3255_v10 = vshrl.u32 %v7424_v18, 16 }
 0x11e   : > { %v1428_v20 = vpop.permute.xlu1 %1427  ;;  %v2146_v61 = vpop.permute.xlu0 %2145 }
 0x11f   : > { %1468 = vst.msk [vmem:[#allocation4 + $0x40] sm:$0xff] %vm1459_vm1, %v1428_v20  ;;  %v3257_v9 = vrot.slane %v3255_v10, 4 }
 0x120   : > { %2187 = vst.msk [vmem:[#allocation4 + $0x38] sm:$0xff] %vm2179_vm11, %v2146_v61  ;;  %1923 = vrot.lane.b32.xlu1 %v7273_v23, %s6048_s11  ;;  %s6055_s11 = smov 56  }
 0x121   : > { %1991 = vrot.lane.b32.xlu0 %v7242_v1, %s6047_s10  ;;  %v3258_v4 = vor.u32 %v3257_v9, %v3253_v7 }
 0x122   : > { %v1430_v46 = vpop.permute.xlu1 %1429  ;;  %v1672_v6 = vpop.permute.xlu0 %1671 }
 0x123   : > { %v2202_v38 = vld [vmem:[#allocation4 + $0x30] sm:$0xff]  ;;  %1469 = vst.msk [vmem:[#allocation4 + $0x48] sm:$0xff] %vm1459_vm1, %v1430_v46  ;;  %v3259_v60 = vrot.slane %v3258_v4, 4 }
 0x124   : > { %1712 = vst.msk [vmem:[#allocation4 + $0x40] sm:$0xff] %vm1703_vm2, %v1672_v6  ;;  %5774 = vmatprep.mubr.msk.bf16.mxu0 %vm2239_vm13, %v2202_v38  ;;  %1993 = vrot.lane.b32.xlu1 %v5416_v43, %s6047_s10 }
 0x125   : > { %2083 = vrot.lane.b32.xlu0 %v7259_v44, %s6051_s18  ;;  %v3264_v25 = vsel %vm6247_vm10, %v3259_v60, %v3263_v5 }
 0x126   : > { %v1674_v3 = vpop.permute.xlu1 %1673  ;;  %v1742_v55 = vpop.permute.xlu0 %1741  ;;  %v5488_v48 = vcombine.low %v3254_v56, %v3264_v25 }
 0x127   : > { %v2203_v57 = vld [vmem:[#allocation4 + $0x38] sm:$0xff]  ;;  %1713 = vst.msk [vmem:[#allocation4 + $0x48] sm:$0xff] %vm1703_vm2, %v1674_v3 }
 0x128   : > { %1782 = vst.msk [vmem:[#allocation4 + $0x40] sm:$0xff] %vm1773_vm3, %v1742_v55  ;;  %5775 = vmatmul.mubr.msk.bf16.gmra.mrb[12].mxu0 %vm2239_vm13, %v2203_v57  ;;  %2085 = vrot.lane.b32.xlu1 %v5417_v58, %s6051_s18 }
 0x129   : > { %2159 = vrot.lane.b32.xlu0 %v7273_v23, %s6049_s12 }
 0x12a   : > { %v1744_v59 = vpop.permute.xlu1 %1743  ;;  %v1834_v14 = vpop.permute.xlu0 %1833 }
 0x12b   : > { %1783 = vst.msk [vmem:[#allocation4 + $0x48] sm:$0xff] %vm1773_vm3, %v1744_v59 }
 0x12c   : > { %1874 = vst.msk [vmem:[#allocation4 + $0x40] sm:$0xff] %vm1865_vm4, %v1834_v14  ;;  %2161 = vrot.lane.b32.xlu1 %v5419_v17, %s6049_s12 }
 0x12d   : > { %3673 = vrot.lane.b32.xlu0 %v5488_v48, %s6044_s30 }
 0x12e   : > { %v1836_v1 = vpop.permute.xlu1 %1835  ;;  %v1910_v30 = vpop.permute.xlu0 %1909 }
 0x12f   : > { %1875 = vst.msk [vmem:[#allocation4 + $0x48] sm:$0xff] %vm1865_vm4, %v1836_v1 }
 0x130   : > { %1950 = vst.msk [vmem:[#allocation4 + $0x40] sm:$0xff] %vm1941_vm5, %v1910_v30 }
 0x131   : > { %3914 = vrot.lane.b32.xlu0 %v5520_v62, %s6050_s17  ;;  %v7516_v62 = vld [vmem:[%s8889_s2] ss:$0 sm:$0xff] }
 0x132   : > { %v1912_v24 = vpop.permute.xlu1 %1911  ;;  %v1980_v44 = vpop.permute.xlu0 %1979 }
 0x133   : > { %1951 = vst.msk [vmem:[#allocation4 + $0x48] sm:$0xff] %vm1941_vm5, %v1912_v24 }
 0x134   : > { %2020 = vst.msk [vmem:[#allocation4 + $0x40] sm:$0xff] %vm2011_vm7, %v1980_v44 }
 0x136   : > { %v1982_v37 = vpop.permute.xlu1 %1981  ;;  %v2072_v34 = vpop.permute.xlu0 %2071 }
 0x137   : > { %2021 = vst.msk [vmem:[#allocation4 + $0x48] sm:$0xff] %vm2011_vm7, %v1982_v37 }
 0x138   : > { %2112 = vst.msk [vmem:[#allocation4 + $0x40] sm:$0xff] %vm2103_vm0, %v2072_v34 }
 0x13a   : > { %v2074_v11 = vpop.permute.xlu1 %2073  ;;  %v2148_v15 = vpop.permute.xlu0 %2147 }
 0x13b   : > { %2113 = vst.msk [vmem:[#allocation4 + $0x48] sm:$0xff] %vm2103_vm0, %v2074_v11 }
 0x13c   : > { %2188 = vst.msk [vmem:[#allocation4 + $0x40] sm:$0xff] %vm2179_vm11, %v2148_v15 }
 0x13e   : > { %v1432_v41 = vpop.permute.xlu1 %1431 }
 0x13f   : > { %v2150_v23 = vpop.permute.xlu0 %2149  ;;  %1470 = vst.msk [vmem:[#allocation4 + $0x50] sm:$0xff] %vm1459_vm1, %v1432_v41 }
 0x140   : > { %2189 = vst.msk [vmem:[#allocation4 + $0x48] sm:$0xff] %vm2179_vm11, %v2150_v23 }
 0x142   : > { %v1434_v21 = vpop.permute.xlu1 %1433 }
 0x143   : > { %v1676_v63 = vpop.permute.xlu0 %1675  ;;  %v2204_v54 = vld [vmem:[#allocation4 + $0x40] sm:$0xff]  ;;  %1471 = vst.msk [vmem:[#allocation4 + $0x58] sm:$0xff] %vm1459_vm1, %v1434_v21 }
 0x144   : > { %1714 = vst.msk [vmem:[#allocation4 + $0x50] sm:$0xff] %vm1703_vm2, %v1676_v63  ;;  %5778 = vmatprep.mubr.msk.bf16.mxu0 %vm2239_vm13, %v2204_v54 }
 0x146   : > { %v1678_v27 = vpop.permute.xlu1 %1677 }
 0x147   : > { %v1746_v20 = vpop.permute.xlu0 %1745  ;;  %v2205_v61 = vld [vmem:[#allocation4 + $0x48] sm:$0xff]  ;;  %1715 = vst.msk [vmem:[#allocation4 + $0x58] sm:$0xff] %vm1703_vm2, %v1678_v27 }
 0x148   : > { %1784 = vst.msk [vmem:[#allocation4 + $0x50] sm:$0xff] %vm1773_vm3, %v1746_v20  ;;  %5779 = vmatmul.mubr.msk.bf16.gmra.mrb[16].mxu0 %vm2239_vm13, %v2205_v61 }
 0x14a   : > { %v1748_v43 = vpop.permute.xlu1 %1747 }
 0x14b   : > { %v1838_v19 = vpop.permute.xlu0 %1837  ;;  %1785 = vst.msk [vmem:[#allocation4 + $0x58] sm:$0xff] %vm1773_vm3, %v1748_v43 }
 0x14c   : > { %1876 = vst.msk [vmem:[#allocation4 + $0x50] sm:$0xff] %vm1865_vm4, %v1838_v19 }
 0x14e   : > { %v1840_v32 = vpop.permute.xlu1 %1839 }
 0x14f   : > { %v1914_v51 = vpop.permute.xlu0 %1913  ;;  %1877 = vst.msk [vmem:[#allocation4 + $0x58] sm:$0xff] %vm1865_vm4, %v1840_v32 }
 0x150   : > { %1952 = vst.msk [vmem:[#allocation4 + $0x50] sm:$0xff] %vm1941_vm5, %v1914_v51 }
 0x152   : > { %v1916_v50 = vpop.permute.xlu1 %1915 }
 0x153   : > { %v1984_v49 = vpop.permute.xlu0 %1983  ;;  %1953 = vst.msk [vmem:[#allocation4 + $0x58] sm:$0xff] %vm1941_vm5, %v1916_v50 }
 0x154   : > { %2022 = vst.msk [vmem:[#allocation4 + $0x50] sm:$0xff] %vm2011_vm7, %v1984_v49 }
 0x156   : > { %v1986_v46 = vpop.permute.xlu1 %1985 }
 0x157   : > { %v2076_v6 = vpop.permute.xlu0 %2075  ;;  %2023 = vst.msk [vmem:[#allocation4 + $0x58] sm:$0xff] %vm2011_vm7, %v1986_v46 }
 0x158   : > { %2114 = vst.msk [vmem:[#allocation4 + $0x50] sm:$0xff] %vm2103_vm0, %v2076_v6 }
 0x15a   : > { %v2078_v38 = vpop.permute.xlu1 %2077 }
 0x15b   : > { %v2152_v58 = vpop.permute.xlu0 %2151  ;;  %2115 = vst.msk [vmem:[#allocation4 + $0x58] sm:$0xff] %vm2103_vm0, %v2078_v38 }
 0x15c   : > { %2190 = vst.msk [vmem:[#allocation4 + $0x50] sm:$0xff] %vm2179_vm11, %v2152_v58 }
 0x15e   : > { %v1436_v12 = vpop.permute.xlu1 %1435 }
 0x15f   : > { %v2154_v0 = vpop.permute.xlu0 %2153  ;;  %1472 = vst.msk [vmem:[#allocation4 + $0x60] sm:$0xff] %vm1459_vm1, %v1436_v12 }
 0x160   : > { %2191 = vst.msk [vmem:[#allocation4 + $0x58] sm:$0xff] %vm2179_vm11, %v2154_v0 }
 0x162   : > { %v1438_v3 = vpop.permute.xlu1 %1437 }
 0x163   : > { %v1680_v55 = vpop.permute.xlu0 %1679  ;;  %v2206_v57 = vld [vmem:[#allocation4 + $0x50] sm:$0xff]  ;;  %1473 = vst.msk [vmem:[#allocation4 + $0x68] sm:$0xff] %vm1459_vm1, %v1438_v3 }
 0x164   : > { %1716 = vst.msk [vmem:[#allocation4 + $0x60] sm:$0xff] %vm1703_vm2, %v1680_v55  ;;  %5782 = vmatprep.mubr.msk.bf16.mxu0 %vm2239_vm13, %v2206_v57  ;;  %v2969_v55 = vld [vmem:[#allocation3 + $0x18] sm:$0xf] }
 0x166   : > { %v1682_v42 = vpop.permute.xlu1 %1681 }
 0x167   : > { %v1750_v33 = vpop.permute.xlu0 %1749  ;;  %v2207_v29 = vld [vmem:[#allocation4 + $0x58] sm:$0xff]  ;;  %1717 = vst.msk [vmem:[#allocation4 + $0x68] sm:$0xff] %vm1703_vm2, %v1682_v42 }
 0x168   : > { %1786 = vst.msk [vmem:[#allocation4 + $0x60] sm:$0xff] %vm1773_vm3, %v1750_v33  ;;  %5783 = vmatmul.mubr.msk.bf16.gmra.mrb[20].mxu0 %vm2239_vm13, %v2207_v29 }
 0x16a   : > { %v1752_v10 = vpop.permute.xlu1 %1751 }
 0x16b   : > { %v1842_v17 = vpop.permute.xlu0 %1841  ;;  %1787 = vst.msk [vmem:[#allocation4 + $0x68] sm:$0xff] %vm1773_vm3, %v1752_v10  ;;  %v2960_v10 = vld [vmem:[#allocation3 + $0xc] sm:$0xf] }
 0x16c   : > { %1878 = vst.msk [vmem:[#allocation4 + $0x60] sm:$0xff] %vm1865_vm4, %v1842_v17 }
 0x16e   : > { %v1844_v53 = vpop.permute.xlu1 %1843 }
 0x16f   : > { %v1918_v16 = vpop.permute.xlu0 %1917  ;;  %1879 = vst.msk [vmem:[#allocation4 + $0x68] sm:$0xff] %vm1865_vm4, %v1844_v53 }
 0x170   : > { %1954 = vst.msk [vmem:[#allocation4 + $0x60] sm:$0xff] %vm1941_vm5, %v1918_v16 }
 0x172   : > { %v1920_v7 = vpop.permute.xlu1 %1919 }
 0x173   : > { %v1988_v9 = vpop.permute.xlu0 %1987  ;;  %1955 = vst.msk [vmem:[#allocation4 + $0x68] sm:$0xff] %vm1941_vm5, %v1920_v7 }
 0x174   : > { %2024 = vst.msk [vmem:[#allocation4 + $0x60] sm:$0xff] %vm2011_vm7, %v1988_v9 }
 0x176   : > { %v1990_v31 = vpop.permute.xlu1 %1989 }
 0x177   : > { %v2080_v59 = vpop.permute.xlu0 %2079  ;;  %2025 = vst.msk [vmem:[#allocation4 + $0x68] sm:$0xff] %vm2011_vm7, %v1990_v31  ;;  %v2973_v31 = vld [vmem:[#allocation3 + $0x20] sm:$0x1] }
 0x178   : > { %2116 = vst.msk [vmem:[#allocation4 + $0x60] sm:$0xff] %vm2103_vm0, %v2080_v59 }
 0x17a   : > { %v2082_v14 = vpop.permute.xlu1 %2081 }
 0x17b   : > { %v2156_v45 = vpop.permute.xlu0 %2155  ;;  %2117 = vst.msk [vmem:[#allocation4 + $0x68] sm:$0xff] %vm2103_vm0, %v2082_v14 }
 0x17c   : > { %2192 = vst.msk [vmem:[#allocation4 + $0x60] sm:$0xff] %vm2179_vm11, %v2156_v45 }
 0x17e   : > { %v1440_v4 = vpop.permute.xlu1 %1439 }
 0x17f   : > { %v2158_v52 = vpop.permute.xlu0 %2157  ;;  %1474 = vst.msk [vmem:[#allocation4 + $0x70] sm:$0xff] %vm1459_vm1, %v1440_v4 }
 0x180   : > { %2193 = vst.msk [vmem:[#allocation4 + $0x68] sm:$0xff] %vm2179_vm11, %v2158_v52 }
 0x182   : > { %v1442_v2 = vpop.permute.xlu1 %1441 }
 0x183   : > { %v1684_v60 = vpop.permute.xlu0 %1683  ;;  %v2208_v5 = vld [vmem:[#allocation4 + $0x60] sm:$0xff]  ;;  %1475 = vst.msk [vmem:[#allocation4 + $0x78] sm:$0xff] %vm1459_vm1, %v1442_v2  ;;  %vm7526_vm1 = vmand %vm2485_vm14, %vm693_vm8  ;;  %vm3721_vm8 = vcmask 130112  }
 0x184   : > { %1718 = vst.msk [vmem:[#allocation4 + $0x70] sm:$0xff] %vm1703_vm2, %v1684_v60  ;;  %5786 = vmatprep.mubr.msk.bf16.mxu0 %vm2239_vm13, %v2208_v5  ;;  %v2966_v60 = vld [vmem:[#allocation3 + $0x14] sm:$0x1] }
 0x186   : > { %v1686_v1 = vpop.permute.xlu1 %1685 }
 0x187   : > { %v1754_v30 = vpop.permute.xlu0 %1753  ;;  %v2209_v56 = vld [vmem:[#allocation4 + $0x68] sm:$0xff]  ;;  %1719 = vst.msk [vmem:[#allocation4 + $0x78] sm:$0xff] %vm1703_vm2, %v1686_v1  ;;  %vm7533_vm2 = vmand %vm2488_vm15, %vm368_vm6  ;;  %vm3224_vm6 = vcmask 64512   ;;  %vm3962_vm15 = vcmask 195712  }
 0x188   : > { %1788 = vst.msk [vmem:[#allocation4 + $0x70] sm:$0xff] %vm1773_vm3, %v1754_v30  ;;  %5787 = vmatmul.mubr.msk.bf16.gmra.mrb[24].mxu0 %vm2239_vm13, %v2209_v56  ;;  %v5472_v56 = vcombine.low %v7422_v22, %v7424_v18 }
 0x18a   : > { %v1756_v25 = vpop.permute.xlu1 %1755  ;;  %3225 = vst.msk [vmem:[#allocation5] sm:$0xff] %vm3224_vm6, %v5472_v56  ;;  %v2983_v56 = vld [vmem:[#allocation3 + $0x30] sm:$0xf] }
 0x18b   : > { %v1846_v35 = vpop.permute.xlu0 %1845  ;;  %1789 = vst.msk [vmem:[#allocation4 + $0x78] sm:$0xff] %vm1773_vm3, %v1756_v25  ;;  %vm8911_vm3 = vcmask 1041408  }
 0x18c   : > { %1880 = vst.msk [vmem:[#allocation4 + $0x70] sm:$0xff] %vm1865_vm4, %v1846_v35 }
 0x18e   : > { %v1848_v36 = vpop.permute.xlu1 %1847 }
 0x18f   : > { %v1922_v48 = vpop.permute.xlu0 %1921  ;;  %1881 = vst.msk [vmem:[#allocation4 + $0x78] sm:$0xff] %vm1865_vm4, %v1848_v36  ;;  %vm8912_vm4 = vmmov %vm8911_vm3 }
 0x190   : > { %1956 = vst.msk [vmem:[#allocation4 + $0x70] sm:$0xff] %vm1941_vm5, %v1922_v48 }
 0x192   : > { %v1924_v13 = vpop.permute.xlu1 %1923 }
 0x193   : > { %v1992_v47 = vpop.permute.xlu0 %1991  ;;  %1957 = vst.msk [vmem:[#allocation4 + $0x78] sm:$0xff] %vm1941_vm5, %v1924_v13  ;;  %vm8913_vm5 = vmmov %vm8911_vm3 }
 0x194   : > { %2026 = vst.msk [vmem:[#allocation4 + $0x70] sm:$0xff] %vm2011_vm7, %v1992_v47 }
 0x196   : > { %v1994_v39 = vpop.permute.xlu1 %1993 }
 0x197   : > { %v2084_v24 = vpop.permute.xlu0 %2083  ;;  %2027 = vst.msk [vmem:[#allocation4 + $0x78] sm:$0xff] %vm2011_vm7, %v1994_v39  ;;  %vm8914_vm7 = vcmask 31744  }
 0x198   : > { %2118 = vst.msk [vmem:[#allocation4 + $0x70] sm:$0xff] %vm2103_vm0, %v2084_v24 }
 0x19a   : > { %v2086_v44 = vpop.permute.xlu1 %2085 }
 0x19b   : > { %v2160_v26 = vpop.permute.xlu0 %2159  ;;  %2119 = vst.msk [vmem:[#allocation4 + $0x78] sm:$0xff] %vm2103_vm0, %v2086_v44  ;;  %vm8915_vm0 = vmmov %vm8914_vm7 }
 0x19c   : > { %2194 = vst.msk [vmem:[#allocation4 + $0x70] sm:$0xff] %vm2179_vm11, %v2160_v26 }
 0x19e   : > { %v2162_v34 = vpop.permute.xlu1 %2161 }
 0x19f   : > { %2195 = vst.msk [vmem:[#allocation4 + $0x78] sm:$0xff] %vm2179_vm11, %v2162_v34  ;;  %v3674_v25 = vpop.permute.xlu0 %3673  ;;  %vm8916_vm11 = vmmov %vm8915_vm0 }
 0x1a0   : > { %v5764_v37 = vpop.f32.mrb[0].mxu0  ;;  %3722 = vst.msk [vmem:[#allocation5] sm:$0xff] %vm3721_vm8, %v3674_v25 }
 0x1a1   : > { %v2335_v11 = vadd.f32 %v5764_v37, %v7516_v62  ;;  %v2326_v15 = vpop.f32.mrb[1].mxu0 }
 0x1a2   : > { %v2327_v41 = vadd.f32 %v7516_v62, %v2326_v15  ;;  %v5765_v23 = vpop.f32.mrb[2].mxu0 }
 0x1a3   : > { %v2455_v21 = vmax.f32 %v2335_v11, 0.0  ;;  %v2338_v63 = vadd.f32 %v5765_v23, %v7516_v62  ;;  %v2329_v54 = vpop.f32.mrb[3].mxu0  ;;  %v2210_v19 = vld [vmem:[#allocation4 + $0x70] sm:$0xff]  ;;  %v3915_v22 = vpop.permute.xlu0 %3914 }
 0x1a4   : > { %v2453_v27 = vmax.f32 %v2327_v41, 0.0  ;;  %v2330_v20 = vadd.f32 %v7516_v62, %v2329_v54  ;;  %5790 = vmatprep.mubr.msk.bf16.mxu0 %vm2239_vm13, %v2210_v19  ;;  %3963 = vst.msk [vmem:[#allocation5] sm:$0xff] %vm3962_vm15, %v3915_v22 }
 0x1a5   : > { %v5637_v61 = vpack.c.bf16 %v2455_v21, %v2455_v21  ;;  %v2456_v43 = vmax.f32 %v2338_v63, 0.0 }
 0x1a6   : > { %v5635_v32 = vpack.c.bf16 %v2453_v27, %v2453_v27  ;;  %v2454_v51 = vmax.f32 %v2330_v20, 0.0  ;;  %v2211_v0 = vld [vmem:[#allocation4 + $0x78] sm:$0xff] }
 0x1a7   : > { %v2655_v50 = vshrl.u32 %v5637_v61, 16  ;;  %v5638_v49 = vpack.c.bf16 %v2456_v43, %v2456_v43  ;;  %v2658_v58 = vshll.u32 %v5637_v61, 16  ;;  %5791 = vmatmul.mubr.msk.bf16.gmra.mrb[28].mxu0 %vm2239_vm13, %v2211_v0  ;;  %vm8917_vm13 = vmmov %vm8915_vm0 }
 0x1a8   : > { %v2638_v46 = vshrl.u32 %v5635_v32, 16  ;;  %v5636_v6 = vpack.c.bf16 %v2454_v51, %v2454_v51  ;;  %v2641_v42 = vshll.u32 %v5635_v32, 16 }
 0x1a9   : > { %v2657_v38 = vrot.slane %v2655_v50, 7  ;;  %v2663_v12 = vshrl.u32 %v5638_v49, 16  ;;  %v2666_v53 = vshll.u32 %v5638_v49, 16 }
 0x1aa   : > { %v2640_v57 = vrot.slane %v2638_v46, 7  ;;  %v2646_v33 = vshrl.u32 %v5636_v6, 16  ;;  %v2649_v14 = vshll.u32 %v5636_v6, 16 }
 0x1ab   : > { %v2660_v29 = vor.u32 %v2658_v58, %v2657_v38  ;;  %v2665_v17 = vrot.slane %v2663_v12, 7  ;;  %v2661_v16 = vrot.slane %v2657_v38, 4 }
 0x1ac   : > { %v2643_v7 = vor.u32 %v2641_v42, %v2640_v57  ;;  %v2648_v59 = vrot.slane %v2646_v33, 7  ;;  %v2644_v4 = vrot.slane %v2640_v57, 4 }
 0x1ad   : > { %v2970_v45 = vsel %vm7526_vm1, %v2660_v29, %v2969_v55  ;;  %v2668_v52 = vor.u32 %v2666_v53, %v2665_v17  ;;  %v2670_v2 = vrot.slane %v2665_v17, 4 }
 0x1ae   : > { %2971 = vst [vmem:[#allocation3 + $0x18] sm:$0xf] %v2970_v45  ;;  %v2961_v5 = vsel %vm7526_vm1, %v2643_v7, %v2960_v10  ;;  %v2651_v1 = vor.u32 %v2649_v14, %v2648_v59  ;;  %v2653_v30 = vrot.slane %v2648_v59, 4 }
 0x1af   : > { %2962 = vst [vmem:[#allocation3 + $0xc] sm:$0xf] %v2961_v5  ;;  %v2669_v35 = vsel %vm6262_vm12, %v2661_v16, %v2668_v52  ;;  %v2974_v36 = vsel %vm7533_vm2, %v2670_v2, %v2973_v31 }
 0x1b0   : > { %2972 = vst.msk [vmem:[#allocation3 + $0x1c] sm:$0xf] %vm2485_vm14, %v2669_v35  ;;  %2975 = vst [vmem:[#allocation3 + $0x20] sm:$0x1] %v2974_v36  ;;  %v2652_v48 = vsel %vm6262_vm12, %v2644_v4, %v2651_v1  ;;  %v2967_v13 = vsel %vm7533_vm2, %v2653_v30, %v2966_v60 }
 0x1b1   : > { %2963 = vst.msk [vmem:[#allocation3 + $0x10] sm:$0xf] %vm2485_vm14, %v2652_v48  ;;  %2968 = vst [vmem:[#allocation3 + $0x14] sm:$0x1] %v2967_v13  ;;  %v2976_v13 = vld [vmem:[#allocation3 + $0x24] sm:$0xf] }
 0x1b5   : > { %v3080_v18 = vld [vmem:[#allocation3 + $0x18] sm:$0xf] }
 0x1b6   : > { %v7561_v44 = vld [vmem:[#allocation3 + $0xc] sm:$0xf]  ;;  %v5506_v41 = vrot.slane %v3080_v18, 9  ;;  %v3290_v6 = vshrl.u32 %v3080_v18, 16  ;;  %v3293_v55 = vshll.u32 %v3080_v18, 16 }
 0x1b7   : > { %v7556_v47 = vld [vmem:[#allocation3 + $0x1c] sm:$0xf]  ;;  %v7558_v39 = vld [vmem:[#allocation3 + $0x20] sm:$0x1]  ;;  %v5505_v51 = vrot.slane %v7561_v44, 9  ;;  %v3266_v53 = vshrl.u32 %v7561_v44, 16 }
 0x1b8   : > { %v5474_v24 = vcombine.low %v3080_v18, %v7556_v47  ;;  %v7563_v26 = vld [vmem:[#allocation3 + $0x10] sm:$0xf]  ;;  %v3770_v37 = vrot.slane %v7556_v47, 5  ;;  %v7568_v11 = vld [vmem:[#allocation3 + $0x14] sm:$0x1]  ;;  %v3773_v21 = vrot.slane %v7558_v39, 5 }
 0x1b9   : > { %v5473_v34 = vcombine.low %v7561_v44, %v7563_v26  ;;  %v3763_v15 = vrot.slane %v7563_v26, 5  ;;  %v3766_v20 = vrot.slane %v7568_v11, 5  ;;  %v3303_v29 = vshrl.u32 %v7556_v47, 16 }
 0x1ba   : > { %4222 = vrot.lane.b32.xlu0 %v5474_v24, %s6052_s23  ;;  %3986 = vrot.lane.b32.xlu1 %v5474_v24, %s6047_s10  ;;  %v3772_v23 = vrot.slane %v3770_v37, 4  ;;  %3227 = vst.msk [vmem:[#allocation5 + $0x10] sm:$0xff] %vm3224_vm6, %v5474_v24  ;;  %v3771_v54 = vsel %vm6234_vm9, %v5506_v41, %v3770_v37  ;;  %v3299_v31 = vshll.u32 %v7556_v47, 16  ;;  %v3269_v14 = vshll.u32 %v7561_v44, 16 }
 0x1bb   : > { %v3765_v63 = vrot.slane %v3763_v15, 4  ;;  %3226 = vst.msk [vmem:[#allocation5 + $0x8] sm:$0xff] %vm3224_vm6, %v5473_v34  ;;  %v5768_v61 = vpop.f32.mrb[4].mxu0  ;;  %v3764_v0 = vsel %vm6234_vm9, %v5505_v51, %v3763_v15  ;;  %v3279_v45 = vshrl.u32 %v7563_v26, 16  ;;  %v7599_v60 = vrot.slane %v3290_v6, 4 }
 0x1bc   : > { %v3774_v27 = vsel %vm6234_vm9, %v3772_v23, %v3773_v21  ;;  %v2351_v19 = vadd.f32 %v5768_v61, %v7516_v62  ;;  %v2342_v32 = vpop.f32.mrb[5].mxu0  ;;  %v7601_v5 = vrot.slane %v3293_v55, 5  ;;  %v3305_v35 = vrot.slane %v3303_v29, 4 }
 0x1bd   : > { %v5522_v43 = vcombine.low %v3771_v54, %v3774_v27  ;;  %v3767_v50 = vsel %vm6234_vm9, %v3765_v63, %v3766_v20  ;;  %v2343_v49 = vadd.f32 %v7516_v62, %v2342_v32  ;;  %v5769_v46 = vpop.f32.mrb[6].mxu0  ;;  %v7604_v18 = vrot.slane %v3299_v31, 5  ;;  %v4480_v54 = vld [vmem:[%s8892_s5] sm:$0x3] }
 0x1be   : > { %3984 = vrot.lane.b32.xlu0 %v5473_v34, %s6047_s10  ;;  %v2459_v38 = vmax.f32 %v2351_v19, 0.0  ;;  %v2354_v58 = vadd.f32 %v5769_v46, %v7516_v62  ;;  %v2345_v12 = vpop.f32.mrb[7].mxu0  ;;  %v5521_v33 = vcombine.low %v3764_v0, %v3767_v50  ;;  %v2987_v34 = vld [vmem:[#allocation3 + $0x38] sm:$0x1]  ;;  %v3275_v15 = vshll.u32 %v7563_v26, 16  ;;  %5938 = vmatprep.subr.msk.bf16.mxu1 %vm8911_vm3, %v4480_v54  ;;  %vm8918_vm3 = vmmov %vm8915_vm0 }
 0x1bf   : > { %4154 = vrot.lane.b32.xlu1 %v5522_v43, %s6053_s27  ;;  %v2457_v57 = vmax.f32 %v2343_v49, 0.0  ;;  %v2346_v42 = vadd.f32 %v7516_v62, %v2345_v12  ;;  %v3281_v63 = vrot.slane %v3279_v45, 4  ;;  %v2980_v19 = vld [vmem:[#allocation3 + $0x2c] sm:$0x1]  ;;  %5937 = vmatprep.subr.msk.bf16.mxu0 %vm8912_vm4, %v4480_v54  ;;  %v4610_v6 = vsel %vm8913_vm5, %v4480_v54, 0  ;;  %vm8919_vm4 = vmmov %vm8915_vm0 }
 0x1c0   : > { %v5641_v10 = vpack.c.bf16 %v2459_v38, %v2459_v38  ;;  %v2460_v17 = vmax.f32 %v2354_v58, 0.0  ;;  %v6002_v38 = vld [vmem:[%s6224_s29 + $0x30] sm:$0xf]  ;;  %v6003_v58 = vld [vmem:[%s6224_s29 + $0x34] sm:$0xf]  ;;  %5871 = vmatpush3.bf16.msra.mxu1 %v4610_v6  ;;  %5795 = vmatpush3.bf16.msra.mxu0 %v4610_v6  ;;  %v3268_v31 = vrot.slane %v3266_v53, 4  ;;  %v3296_v45 = vor.u32 %v7601_v5, %v7599_v60  ;;  %vm8920_vm5 = vmmov %vm8915_vm0 }
 0x1c1   : > { %v5639_v16 = vpack.c.bf16 %v2457_v57, %v2457_v57  ;;  %v2458_v7 = vmax.f32 %v2346_v42, 0.0  ;;  %v5550_v12 = vcombine.low %v6002_v38, %v6003_v58  ;;  %v3277_v57 = vrot.slane %v3275_v15, 5  ;;  %v6004_v42 = vld [vmem:[%s6224_s29 + $0x38] sm:$0xf]  ;;  %v6008_v60 = vld [vmem:[%s6224_s29 + $0x48] sm:$0xf] }
 0x1c2   : > { %4390 = vrot.lane.b32.xlu0 %v5522_v43, %s6054_s28  ;;  %v2689_v59 = vshrl.u32 %v5641_v10, 16  ;;  %v5642_v4 = vpack.c.bf16 %v2460_v17, %v2460_v17  ;;  %v2692_v30 = vshll.u32 %v5641_v10, 16  ;;  %v3306_v10 = vor.u32 %v3305_v35, %v7604_v18  ;;  %v6006_v17 = vld [vmem:[%s6224_s29 + $0x40] sm:$0xf]  ;;  %v6009_v5 = vld [vmem:[%s6224_s29 + $0x4c] sm:$0xf] }
 0x1c3   : > { %3916 = vrot.lane.b32.xlu1 %v5521_v33, %s6050_s17  ;;  %v2672_v52 = vshrl.u32 %v5639_v16, 16  ;;  %v5640_v2 = vpack.c.bf16 %v2458_v7, %v2458_v7  ;;  %v2675_v48 = vshll.u32 %v5639_v16, 16  ;;  %5808 = vmatprep.mubr.msk.bf16.mxu1 %vm8914_vm7, %v5550_v12  ;;  %v6007_v16 = vld [vmem:[%s6224_s29 + $0x44] sm:$0xf]  ;;  %vm8921_vm7 = vmmov %vm8915_vm0 }
 0x1c4   : > { %v2691_v1 = vrot.slane %v2689_v59, 7  ;;  %v2697_v25 = vshrl.u32 %v5642_v4, 16  ;;  %v2700_v37 = vshll.u32 %v5642_v4, 16  ;;  %v5552_v7 = vcombine.low %v6006_v17, %v6007_v16 }
 0x1c5   : > { %v2674_v36 = vrot.slane %v2672_v52, 7  ;;  %v2680_v22 = vshrl.u32 %v5640_v2, 16  ;;  %v2683_v21 = vshll.u32 %v5640_v2, 16  ;;  %v3271_v59 = vrot.slane %v3269_v14, 5 }
 0x1c6   : > { %3918 = vrot.lane.b32.xlu0 %v5522_v43, %s6050_s17  ;;  %v2694_v47 = vor.u32 %v2692_v30, %v2691_v1  ;;  %v2699_v24 = vrot.slane %v2697_v25, 7  ;;  %v2695_v27 = vrot.slane %v2691_v1, 4  ;;  %v3309_v4 = vshll.u32 %v7558_v39, 16 }
 0x1c7   : > { %v2677_v41 = vor.u32 %v2675_v48, %v2674_v36  ;;  %v2682_v23 = vrot.slane %v2680_v22, 7  ;;  %v2678_v26 = vrot.slane %v2674_v36, 4  ;;  %v3282_v52 = vor.u32 %v3281_v63, %v3277_v57  ;;  %v6011_v22 = vld [vmem:[%s6224_s29 + $0x54] sm:$0xf] }
 0x1c8   : > { %v2984_v20 = vsel %vm7526_vm1, %v2694_v47, %v2983_v56  ;;  %v2702_v61 = vor.u32 %v2700_v37, %v2699_v24  ;;  %v2704_v43 = vrot.slane %v2699_v24, 4  ;;  %v3307_v2 = vrot.slane %v3306_v10, 4 }
 0x1c9   : > { %2985 = vst [vmem:[#allocation3 + $0x30] sm:$0xf] %v2984_v20  ;;  %v2977_v32 = vsel %vm7526_vm1, %v2677_v41, %v2976_v13  ;;  %v2685_v51 = vor.u32 %v2683_v21, %v2682_v23  ;;  %v2687_v50 = vrot.slane %v2682_v23, 4  ;;  %v3272_v1 = vor.u32 %v3271_v59, %v3268_v31  ;;  %v6010_v13 = vld [vmem:[%s6224_s29 + $0x50] sm:$0xf] }
 0x1ca   : > { %4152 = vrot.lane.b32.xlu0 %v5521_v33, %s6053_s27  ;;  %2978 = vst [vmem:[#allocation3 + $0x24] sm:$0xf] %v2977_v32  ;;  %v2703_v49 = vsel %vm6262_vm12, %v2695_v27, %v2702_v61  ;;  %v2988_v46 = vsel %vm7533_vm2, %v2704_v43, %v2987_v34  ;;  %v6005_v33 = vld [vmem:[%s6224_s29 + $0x3c] sm:$0xf]  ;;  %v3285_v30 = vshll.u32 %v7568_v11, 16  ;;  %v3297_v14 = vrot.slane %v3296_v45, 4 }
 0x1cb   : > { %2986 = vst.msk [vmem:[#allocation3 + $0x34] sm:$0xf] %vm2485_vm14, %v2703_v49  ;;  %2989 = vst [vmem:[#allocation3 + $0x38] sm:$0x1] %v2988_v46  ;;  %v2686_v0 = vsel %vm6262_vm12, %v2678_v26, %v2685_v51  ;;  %v2981_v55 = vsel %vm7533_vm2, %v2687_v50, %v2980_v19  ;;  %v5551_v29 = vcombine.low %v6004_v42, %v6005_v33  ;;  %v3311_v56 = vrot.slane %v3309_v4, 5 }
 0x1cc   : > { %2979 = vst.msk [vmem:[#allocation3 + $0x28] sm:$0xf] %vm2485_vm14, %v2686_v0  ;;  %2982 = vst [vmem:[#allocation3 + $0x2c] sm:$0x1] %v2981_v55  ;;  %v5553_v39 = vcombine.low %v6008_v60, %v6009_v5  ;;  %v3283_v48 = vrot.slane %v3282_v52, 4  ;;  %v5554_v11 = vcombine.low %v6010_v13, %v6011_v22  ;;  %v3273_v37 = vrot.slane %v3272_v1, 4 }
 0x1cd   : > { %5809 = vmatmul.mubr.msk.bf16.vlgmr.msra.gmra.mrb[0].mxu1 %vm8915_vm0, %v5551_v29  ;;  %v3312_v47 = vsel %vm6247_vm10, %v3307_v2, %v3311_v56  ;;  %v3287_v34 = vrot.slane %v3285_v30, 5  ;;  %v3302_v15 = vsel %vm6247_vm10, %v3297_v14, %v7604_v18  ;;  %v6012_v27 = vld [vmem:[%s6224_s29 + $0x58] sm:$0xf]  ;;  %v6013_v20 = vld [vmem:[%s6224_s29 + $0x5c] sm:$0xf] }
 0x1ce   : > { %5812 = vmatprep.mubr.msk.bf16.mxu1 %vm8916_vm11, %v5552_v7  ;;  %v5490_v41 = vcombine.low %v3302_v15, %v3312_v47  ;;  %v3278_v18 = vsel %vm6247_vm10, %v3273_v37, %v3277_v57  ;;  %v5555_v61 = vcombine.low %v6012_v27, %v6013_v20  ;;  %v6014_v60 = vld [vmem:[%s6224_s29 + $0x60] sm:$0xf]  ;;  %v6015_v5 = vld [vmem:[%s6224_s29 + $0x64] sm:$0xf]  ;;  %v6016_v22 = vld [vmem:[%s6224_s29 + $0x68] sm:$0xf] }
 0x1cf   : > { %v3288_v23 = vsel %vm6247_vm10, %v3283_v48, %v3287_v34  ;;  %vm8922_vm11 = vmmov %vm8915_vm0 }
 0x1d0   : > { %v7646_v53 = vld [vmem:[#allocation3 + $0x30] sm:$0xf]  ;;  %v7680_v63 = vcombine.low %v3278_v18, %v3288_v23  ;;  %v2997_v18 = vld [vmem:[#allocation3 + $0x48] sm:$0xf] }
 0x1d1   : > { %v7654_v35 = vld [vmem:[#allocation3 + $0x24] sm:$0xf]  ;;  %v3338_v43 = vshrl.u32 %v7646_v53, 16  ;;  %v3341_v19 = vshll.u32 %v7646_v53, 16  ;;  %v5508_v51 = vrot.slane %v7646_v53, 9 }
 0x1d2   : > { %v7648_v44 = vld [vmem:[#allocation3 + $0x34] sm:$0xf]  ;;  %v7682_v54 = vld [vmem:[#allocation3 + $0x38] sm:$0x1]  ;;  %v3314_v32 = vshrl.u32 %v7654_v35, 16  ;;  %v3317_v46 = vshll.u32 %v7654_v35, 16 }
 0x1d3   : > { %v5476_v25 = vcombine.low %v7646_v53, %v7648_v44  ;;  %v7656_v36 = vld [vmem:[#allocation3 + $0x28] sm:$0xf]  ;;  %v3784_v21 = vrot.slane %v7648_v44, 5  ;;  %v7692_v38 = vld [vmem:[#allocation3 + $0x2c] sm:$0x1]  ;;  %v3351_v12 = vshrl.u32 %v7648_v44, 16 }
 0x1d4   : > { %v5475_v24 = vcombine.low %v7654_v35, %v7656_v36  ;;  %v3777_v58 = vrot.slane %v7656_v36, 5  ;;  %v3327_v57 = vshrl.u32 %v7656_v36, 16  ;;  %v3787_v42 = vrot.slane %v7682_v54, 5 }
 0x1d5   : > { %3990 = vrot.lane.b32.xlu1 %v5476_v25, %s6047_s10  ;;  %4226 = vrot.lane.b32.xlu0 %v5476_v25, %s6052_s23  ;;  %3229 = vst.msk [vmem:[#allocation5 + $0x20] sm:$0xff] %vm3224_vm6, %v5476_v25  ;;  %v3786_v6 = vrot.slane %v3784_v21, 4  ;;  %v3785_v17 = vsel %vm6234_vm9, %v5508_v51, %v3784_v21  ;;  %v5507_v16 = vrot.slane %v7654_v35, 9  ;;  %v3780_v59 = vrot.slane %v7692_v38, 5  ;;  %v2990_v51 = vld [vmem:[#allocation3 + $0x3c] sm:$0xf] }
 0x1d6   : > { %3228 = vst.msk [vmem:[#allocation5 + $0x18] sm:$0xff] %vm3224_vm6, %v5475_v24  ;;  %5813 = vmatmul.mubr.msk.bf16.gmra.mrb[4].mxu1 %vm8917_vm13, %v5553_v39  ;;  %v7708_v45 = vrot.slane %v3338_v43, 4  ;;  %v3779_v1 = vrot.slane %v3777_v58, 4  ;;  %v3347_v56 = vshll.u32 %v7648_v44, 16  ;;  %v5556_v39 = vcombine.low %v6014_v60, %v6015_v5 }
 0x1d7   : > { %5816 = vmatprep.mubr.msk.bf16.mxu1 %vm8918_vm3, %v5554_v11  ;;  %v3788_v2 = vsel %vm6234_vm9, %v3786_v6, %v3787_v42  ;;  %v3778_v13 = vsel %vm6234_vm9, %v5507_v16, %v3777_v58  ;;  %v6017_v11 = vld [vmem:[%s6224_s29 + $0x6c] sm:$0xf]  ;;  %v7722_v15 = vrot.slane %v3351_v12, 4  ;;  %v3323_v6 = vshll.u32 %v7656_v36, 16  ;;  %vm8923_vm3 = vmmov %vm8915_vm0 }
 0x1d8   : > { %v5557_v47 = vcombine.low %v6016_v22, %v6017_v11  ;;  %v5524_v34 = vcombine.low %v3785_v17, %v3788_v2  ;;  %v3781_v21 = vsel %vm6234_vm9, %v3779_v1, %v3780_v59  ;;  %v7730_v43 = vrot.slane %v3347_v56, 5  ;;  %v2994_v17 = vld [vmem:[#allocation3 + $0x44] sm:$0x1]  ;;  %v6018_v59 = vld [vmem:[%s6224_s29 + $0x70] sm:$0xf]  ;;  %v5993_v22 = vld [vmem:[%s8890_s3] sm:$0xff]  }
 0x1d9   : > { %4078 = vrot.lane.b32.xlu1 %v5490_v41, %s6049_s12  ;;  %4314 = vrot.lane.b32.xlu0 %v5490_v41, %s6055_s11  ;;  %v6021_v56 = vld [vmem:[%s6224_s29 + $0x7c] sm:$0xf]  ;;  %vm4856_vm13 = vcmask 1043456  }
 0x1da   : > { %v3354_v53 = vor.u32 %v7722_v15, %v7730_v43  ;;  %5828 = vmatprep.subr.bf16.mxu1 %v5993_v22 }
 0x1db   : > { %v5772_v26 = vpop.f32.mrb[8].mxu0  ;;  %5829 = vmatpush3.bf16.msra.mxu1 %v5993_v22 }
 0x1dc   : > { %v2367_v50 = vadd.f32 %v5772_v26, %v7516_v62  ;;  %v2358_v49 = vpop.f32.mrb[9].mxu0  ;;  %v3355_v36 = vrot.slane %v3354_v53, 4 }
 0x1dd   : > { %v2359_v0 = vadd.f32 %v7516_v62, %v2358_v49  ;;  %v5773_v55 = vpop.f32.mrb[10].mxu0  ;;  %4224 = vrot.lane.b32.xlu1 %v5475_v24, %s6052_s23  ;;  %3988 = vrot.lane.b32.xlu0 %v5475_v24, %s6047_s10 }
 0x1de   : > { %v2463_v33 = vmax.f32 %v2367_v50, 0.0  ;;  %v2370_v29 = vadd.f32 %v5773_v55, %v7516_v62  ;;  %v2361_v10 = vpop.f32.mrb[11].mxu0  ;;  %5817 = vmatmul.mubr.msk.bf16.gmra.mrb[8].mxu1 %vm8919_vm4, %v5555_v61  ;;  %vm8924_vm4 = vmmov %vm8915_vm0 }
 0x1df   : > { %v2461_v7 = vmax.f32 %v2359_v0, 0.0  ;;  %v2362_v31 = vadd.f32 %v7516_v62, %v2361_v10  ;;  %5820 = vmatprep.mubr.msk.bf16.mxu1 %vm8920_vm5, %v5556_v39  ;;  %v3001_v0 = vld [vmem:[#allocation3 + $0x50] sm:$0x1]  ;;  %vm8925_vm5 = vmmov %vm8915_vm0 }
 0x1e0   : > { %v5645_v4 = vpack.c.bf16 %v2463_v33, %v2463_v33  ;;  %v2464_v52 = vmax.f32 %v2370_v29, 0.0 }
 0x1e1   : > { %v5643_v30 = vpack.c.bf16 %v2461_v7, %v2461_v7  ;;  %v2462_v14 = vmax.f32 %v2362_v31, 0.0  ;;  %3677 = vrot.lane.b32.xlu1 %v5490_v41, %s6044_s30  ;;  %4076 = vrot.lane.b32.xlu0 %v7680_v63, %s6049_s12 }
 0x1e2   : > { %v2723_v25 = vshrl.u32 %v5645_v4, 16  ;;  %v5646_v48 = vpack.c.bf16 %v2464_v52, %v2464_v52  ;;  %v2726_v44 = vshll.u32 %v5645_v4, 16  ;;  %v6019_v4 = vld [vmem:[%s6224_s29 + $0x74] sm:$0xf] }
 0x1e3   : > { %v2706_v24 = vshrl.u32 %v5643_v30, 16  ;;  %v5644_v37 = vpack.c.bf16 %v2462_v14, %v2462_v14  ;;  %v2709_v20 = vshll.u32 %v5643_v30, 16  ;;  %v5558_v52 = vcombine.low %v6018_v59, %v6019_v4  ;;  %v6020_v14 = vld [vmem:[%s6224_s29 + $0x78] sm:$0xf] }
 0x1e4   : > { %v2725_v41 = vrot.slane %v2723_v25, 7  ;;  %v2731_v23 = vshrl.u32 %v5646_v48, 16  ;;  %v2734_v49 = vshll.u32 %v5646_v48, 16  ;;  %v3343_v30 = vrot.slane %v3341_v19, 5 }
 0x1e5   : > { %v2708_v27 = vrot.slane %v2706_v24, 7  ;;  %v2714_v61 = vshrl.u32 %v5644_v37, 16  ;;  %3675 = vrot.lane.b32.xlu1 %v7680_v63, %s6044_s30  ;;  %4394 = vrot.lane.b32.xlu0 %v5524_v34, %s6054_s28  ;;  %v2717_v42 = vshll.u32 %v5644_v37, 16  ;;  %v5559_v60 = vcombine.low %v6020_v14, %v6021_v56  ;;  %v5994_v37 = vld [vmem:[%s8890_s3 + $0x8] sm:$0xff]  }
 0x1e6   : > { %v2728_v26 = vor.u32 %v2726_v44, %v2725_v41  ;;  %v2733_v50 = vrot.slane %v2731_v23, 7  ;;  %5821 = vmatmul.mubr.msk.bf16.gmra.mrb[12].mxu1 %vm8921_vm7, %v5557_v47  ;;  %v2729_v58 = vrot.slane %v2725_v41, 4  ;;  %v5523_v25 = vcombine.low %v3778_v13, %v3781_v21  ;;  %5830 = vmatprep.subr.bf16.mxu1 %v5994_v37  ;;  %vm8926_vm7 = vmmov %vm8915_vm0 }
 0x1e7   : > { %v2711_v12 = vor.u32 %v2709_v20, %v2708_v27  ;;  %v2716_v55 = vrot.slane %v2714_v61, 7  ;;  %v2712_v33 = vrot.slane %v2708_v27, 4  ;;  %5824 = vmatprep.mubr.msk.bf16.mxu1 %vm8915_vm0, %v5558_v52  ;;  %v3325_v19 = vrot.slane %v3323_v6, 5  ;;  %5831 = vmatpush3.bf16.msra.mxu1 %v5994_v37 }
 0x1e8   : > { %v2998_v63 = vsel %vm7526_vm1, %v2728_v26, %v2997_v18  ;;  %v2736_v29 = vor.u32 %v2734_v49, %v2733_v50  ;;  %v2738_v10 = vrot.slane %v2733_v50, 4  ;;  %v3329_v48 = vrot.slane %v3327_v57, 4  ;;  %v5995_v50 = vld [vmem:[%s8890_s3 + $0x10] sm:$0xff]  }
 0x1e9   : > { %2999 = vst [vmem:[#allocation3 + $0x48] sm:$0xf] %v2998_v63  ;;  %v2991_v16 = vsel %vm7526_vm1, %v2711_v12, %v2990_v51  ;;  %v2719_v7 = vor.u32 %v2717_v42, %v2716_v55  ;;  %v2721_v31 = vrot.slane %v2716_v55, 4  ;;  %4158 = vrot.lane.b32.xlu1 %v5524_v34, %s6053_s27  ;;  %3922 = vrot.lane.b32.xlu0 %v5524_v34, %s6050_s17  ;;  %v3357_v13 = vshll.u32 %v7682_v54, 16 }
 0x1ea   : > { %2992 = vst [vmem:[#allocation3 + $0x3c] sm:$0xf] %v2991_v16  ;;  %v2737_v2 = vsel %vm6262_vm12, %v2729_v58, %v2736_v29  ;;  %v3002_v1 = vsel %vm7533_vm2, %v2738_v10, %v3001_v0  ;;  %v3344_v11 = vor.u32 %v3343_v30, %v7708_v45  ;;  %v3316_v47 = vrot.slane %v3314_v32, 4  ;;  %5832 = vmatprep.subr.bf16.mxu1 %v5995_v50 }
 0x1eb   : > { %3000 = vst.msk [vmem:[#allocation3 + $0x4c] sm:$0xf] %vm2485_vm14, %v2737_v2  ;;  %3003 = vst [vmem:[#allocation3 + $0x50] sm:$0x1] %v3002_v1  ;;  %v2720_v5 = vsel %vm6262_vm12, %v2712_v33, %v2719_v7  ;;  %v2995_v39 = vsel %vm7533_vm2, %v2721_v31, %v2994_v17  ;;  %v3319_v24 = vrot.slane %v3317_v46, 5  ;;  %v3330_v57 = vor.u32 %v3329_v48, %v3325_v19 }
 0x1ec   : > { %2993 = vst.msk [vmem:[#allocation3 + $0x40] sm:$0xf] %vm2485_vm14, %v2720_v5  ;;  %2996 = vst [vmem:[#allocation3 + $0x44] sm:$0x1] %v2995_v39  ;;  %v3359_v54 = vrot.slane %v3357_v13, 5  ;;  %v3345_v32 = vrot.slane %v3344_v11, 4  ;;  %5833 = vmatpush3.bf16.msra.mxu1 %v5995_v50 }
 0x1ed   : > { %3920 = vrot.lane.b32.xlu1 %v5523_v25, %s6050_s17  ;;  %4392 = vrot.lane.b32.xlu0 %v5523_v25, %s6054_s28  ;;  %v3320_v35 = vor.u32 %v3319_v24, %v3316_v47  ;;  %v3333_v46 = vshll.u32 %v7692_v38, 16  ;;  %v3331_v18 = vrot.slane %v3330_v57, 4  ;;  %vm4032_vm0 = vcmask 261312  }
 0x1ee   : > { %5825 = vmatmul.mubr.msk.bf16.gmra.mrb[16].mxu1 %vm8922_vm11, %v5559_v60  ;;  %v3360_v23 = vsel %vm6247_vm10, %v3355_v36, %v3359_v54  ;;  %v3350_v38 = vsel %vm6247_vm10, %v3345_v32, %v7730_v43  ;;  %vm8927_vm11 = vmmov %vm8923_vm3 }
 0x1ef   : > { %v3321_v27 = vrot.slane %v3320_v35, 4  ;;  %v3335_v20 = vrot.slane %v3333_v46, 5  ;;  %v5492_v61 = vcombine.low %v3350_v38, %v3360_v23 }
 0x1f0   : > { %v7777_v45 = vld [vmem:[#allocation3 + $0x48] sm:$0xf] }
 0x1f1   : > { %4156 = vrot.lane.b32.xlu0 %v5523_v25, %s6053_s27  ;;  %v7784_v41 = vld [vmem:[#allocation3 + $0x3c] sm:$0xf]  ;;  %v3336_v26 = vsel %vm6247_vm10, %v3331_v18, %v3335_v20  ;;  %v3326_v43 = vsel %vm6247_vm10, %v3321_v27, %v3325_v19  ;;  %v3386_v6 = vshrl.u32 %v7777_v45, 16  ;;  %v3389_v58 = vshll.u32 %v7777_v45, 16  ;;  %v3011_v18 = vld [vmem:[#allocation3 + $0x60] sm:$0xf] }
 0x1f2   : > { %v7779_v34 = vld [vmem:[#allocation3 + $0x4c] sm:$0xf]  ;;  %v7809_v49 = vld [vmem:[#allocation3 + $0x50] sm:$0x1]  ;;  %v7813_v0 = vcombine.low %v3326_v43, %v3336_v26  ;;  %v5510_v55 = vrot.slane %v7777_v45, 9  ;;  %v3362_v33 = vshrl.u32 %v7784_v41, 16 }
 0x1f3   : > { %v5478_v15 = vcombine.low %v7777_v45, %v7779_v34  ;;  %v7786_v44 = vld [vmem:[#allocation3 + $0x40] sm:$0xf]  ;;  %v3798_v51 = vrot.slane %v7779_v34, 5  ;;  %v7818_v10 = vld [vmem:[#allocation3 + $0x44] sm:$0x1]  ;;  %v3399_v16 = vshrl.u32 %v7779_v34, 16 }
 0x1f4   : > { %v5477_v21 = vcombine.low %v7784_v41, %v7786_v44  ;;  %v3791_v17 = vrot.slane %v7786_v44, 5  ;;  %v3365_v59 = vshll.u32 %v7784_v41, 16  ;;  %v3801_v4 = vrot.slane %v7809_v49, 5 }
 0x1f5   : > { %3994 = vrot.lane.b32.xlu1 %v5478_v15, %s6047_s10  ;;  %4230 = vrot.lane.b32.xlu0 %v5478_v15, %s6052_s23  ;;  %3231 = vst.msk [vmem:[#allocation5 + $0x30] sm:$0xff] %vm3224_vm6, %v5478_v15  ;;  %v3800_v29 = vrot.slane %v3798_v51, 4  ;;  %v3375_v1 = vshrl.u32 %v7786_v44, 16  ;;  %v5509_v14 = vrot.slane %v7784_v41, 9  ;;  %v3799_v5 = vsel %vm6234_vm9, %v5510_v55, %v3798_v51  ;;  %v3004_v51 = vld [vmem:[#allocation3 + $0x54] sm:$0xf] }
 0x1f6   : > { %3230 = vst.msk [vmem:[#allocation5 + $0x28] sm:$0xff] %vm3224_vm6, %v5477_v21  ;;  %v3794_v39 = vrot.slane %v7818_v10, 5  ;;  %v3793_v48 = vrot.slane %v3791_v17, 4  ;;  %v7839_v11 = vrot.slane %v3386_v6, 4  ;;  %v3395_v47 = vshll.u32 %v7779_v34, 16  ;;  %v5996_v34 = vld [vmem:[%s8890_s3 + $0x18] sm:$0xff]  }
 0x1f7   : > { %v3802_v19 = vsel %vm6234_vm9, %v3800_v29, %v3801_v4  ;;  %v3792_v57 = vsel %vm6234_vm9, %v5509_v14, %v3791_v17  ;;  %v7844_v37 = vrot.slane %v3389_v58, 5  ;;  %v7846_v35 = vrot.slane %v3399_v16, 4  ;;  %5834 = vmatprep.subr.bf16.mxu1 %v5996_v34  ;;  %v3015_v55 = vld [vmem:[#allocation3 + $0x68] sm:$0x1] }
 0x1f8   : > { %v5526_v32 = vcombine.low %v3799_v5, %v3802_v19  ;;  %v3371_v6 = vshll.u32 %v7786_v44, 16  ;;  %5835 = vmatpush3.bf16.msra.mxu1 %v5996_v34  ;;  %v5998_v4 = vld [vmem:[%s8890_s3 + $0x20] ss:$0 sps:$4 sm:$0xff]   ;;  %v6023_v5 = vld [vmem:[%s6224_s29 + $0x4] sm:$0xf] }
 0x1f9   : > { %4082 = vrot.lane.b32.xlu1 %v5492_v61, %s6049_s12  ;;  %4318 = vrot.lane.b32.xlu0 %v5492_v61, %s6055_s11 }
 0x1fa   : > { %5939 = vmatprep.subr.msk.bf16.mxu1 %vm4856_vm13, %v5998_v4 }
 0x1fb   : > { %v5776_v12 = vpop.f32.mrb[12].mxu0 }
 0x1fc   : > { %v2383_v42 = vadd.f32 %v5776_v12, %v7516_v62  ;;  %v2374_v63 = vpop.f32.mrb[13].mxu0 }
 0x1fd   : > { %v2375_v7 = vadd.f32 %v7516_v62, %v2374_v63  ;;  %v5777_v31 = vpop.f32.mrb[14].mxu0  ;;  %4228 = vrot.lane.b32.xlu1 %v5477_v21, %s6052_s23  ;;  %3992 = vrot.lane.b32.xlu0 %v5477_v21, %s6047_s10  ;;  %v3795_v21 = vsel %vm6234_vm9, %v3793_v48, %v3794_v39  ;;  %v6024_v48 = vld [vmem:[%s6224_s29 + $0x8] sm:$0xf] }
 0x1fe   : > { %v2467_v52 = vmax.f32 %v2383_v42, 0.0  ;;  %v2386_v2 = vadd.f32 %v5777_v31, %v7516_v62  ;;  %v2377_v30 = vpop.f32.mrb[15].mxu0  ;;  %v3008_v31 = vld [vmem:[#allocation3 + $0x5c] sm:$0x1]  ;;  %v5525_v19 = vcombine.low %v3792_v57, %v3795_v21  ;;  %v3405_v57 = vshll.u32 %v7809_v49, 16 }
 0x1ff   : > { %v2465_v56 = vmax.f32 %v2375_v7, 0.0  ;;  %v2378_v60 = vadd.f32 %v7516_v62, %v2377_v30 }
 0x200   : > { %v5649_v25 = vpack.c.bf16 %v2467_v52, %v2467_v52  ;;  %v2468_v53 = vmax.f32 %v2386_v2, 0.0 }
 0x201   : > { %v5647_v22 = vpack.c.bf16 %v2465_v56, %v2465_v56  ;;  %v2466_v13 = vmax.f32 %v2378_v60, 0.0  ;;  %3681 = vrot.lane.b32.xlu1 %v5492_v61, %s6044_s30  ;;  %4080 = vrot.lane.b32.xlu0 %v7813_v0, %s6049_s12  ;;  %v7856_v61 = vrot.slane %v3395_v47, 5  ;;  %v6022_v60 = vld [vmem:[%s6224_s29] sm:$0xf] }
 0x202   : > { %v2757_v24 = vshrl.u32 %v5649_v25, 16  ;;  %v5650_v36 = vpack.c.bf16 %v2468_v53, %v2468_v53  ;;  %v2760_v15 = vshll.u32 %v5649_v25, 16  ;;  %v5544_v39 = vcombine.low %v6022_v60, %v6023_v5 }
 0x203   : > { %v2740_v54 = vshrl.u32 %v5647_v22, 16  ;;  %v5648_v45 = vpack.c.bf16 %v2466_v13, %v2466_v13  ;;  %v2743_v27 = vshll.u32 %v5647_v22, 16  ;;  %v4858_v25 = vsel %vm4856_vm13, %v5998_v4, 0  ;;  %v6025_v22 = vld [vmem:[%s6224_s29 + $0xc] sm:$0xf]  ;;  %vm8928_vm13 = vmmov %vm8923_vm3 }
 0x204   : > { %v2759_v46 = vrot.slane %v2757_v24, 7  ;;  %v2765_v23 = vshrl.u32 %v5650_v36, 16  ;;  %v2768_v43 = vshll.u32 %v5650_v36, 16  ;;  %5837 = vmatpush3.bf16.msra.mxu1 %v4858_v25  ;;  %v5545_v13 = vcombine.low %v6024_v48, %v6025_v22  ;;  %5796 = vmatprep.mubr.msk.bf16.mxu0 %vm8923_vm3, %v5544_v39 }
 0x205   : > { %v2742_v38 = vrot.slane %v2740_v54, 7  ;;  %v2748_v20 = vshrl.u32 %v5648_v45, 16  ;;  %4316 = vrot.lane.b32.xlu1 %v7813_v0, %s6055_s11  ;;  %4398 = vrot.lane.b32.xlu0 %v5526_v32, %s6054_s28  ;;  %v2751_v63 = vshll.u32 %v5648_v45, 16  ;;  %v3402_v47 = vor.u32 %v7846_v35, %v7856_v61 }
 0x206   : > { %v2762_v26 = vor.u32 %v2760_v15, %v2759_v46  ;;  %v2767_v50 = vrot.slane %v2765_v23, 7  ;;  %v2763_v58 = vrot.slane %v2759_v46, 4  ;;  %v3373_v24 = vrot.slane %v3371_v6, 5  ;;  %5797 = vmatmul.mubr.msk.bf16.vlgmr.msra.gmra.mrb[32].mxu0 %vm8924_vm4, %v5545_v13 }
 0x207   : > { %v2745_v12 = vor.u32 %v2743_v27, %v2742_v38  ;;  %v2750_v42 = vrot.slane %v2748_v20, 7  ;;  %v2746_v17 = vrot.slane %v2742_v38, 4  ;;  %v3377_v36 = vrot.slane %v3375_v1, 4 }
 0x208   : > { %v3012_v29 = vsel %vm7526_vm1, %v2762_v26, %v3011_v18  ;;  %v2770_v16 = vor.u32 %v2768_v43, %v2767_v50  ;;  %v2772_v7 = vrot.slane %v2767_v50, 4  ;;  %v3392_v54 = vor.u32 %v7844_v37, %v7839_v11 }
 0x209   : > { %3013 = vst [vmem:[#allocation3 + $0x60] sm:$0xf] %v3012_v29  ;;  %v3005_v52 = vsel %vm7526_vm1, %v2745_v12, %v3004_v51  ;;  %v2753_v2 = vor.u32 %v2751_v63, %v2750_v42  ;;  %v2755_v30 = vrot.slane %v2750_v42, 4  ;;  %3679 = vrot.lane.b32.xlu1 %v7813_v0, %s6044_s30  ;;  %3926 = vrot.lane.b32.xlu0 %v5526_v32, %s6050_s17  ;;  %v3364_v45 = vrot.slane %v3362_v33, 4 }
 0x20a   : > { %3006 = vst [vmem:[#allocation3 + $0x54] sm:$0xf] %v3005_v52  ;;  %v2771_v14 = vsel %vm6262_vm12, %v2763_v58, %v2770_v16  ;;  %v3016_v56 = vsel %vm7533_vm2, %v2772_v7, %v3015_v55  ;;  %v3367_v35 = vrot.slane %v3365_v59, 5  ;;  %v3403_v44 = vrot.slane %v3402_v47, 4  ;;  %v7942_v16 = vld [vmem:[%s8889_s2] ss:$0 sm:$0xff] }
 0x20b   : > { %3014 = vst.msk [vmem:[#allocation3 + $0x64] sm:$0xf] %vm2485_vm14, %v2771_v14  ;;  %3017 = vst [vmem:[#allocation3 + $0x68] sm:$0x1] %v3016_v56  ;;  %v2754_v0 = vsel %vm6262_vm12, %v2746_v17, %v2753_v2  ;;  %v3009_v53 = vsel %vm7533_vm2, %v2755_v30, %v3008_v31  ;;  %v3378_v1 = vor.u32 %v3377_v36, %v3373_v24  ;;  %v3393_v11 = vrot.slane %v3392_v54, 4 }
 0x20c   : > { %3007 = vst.msk [vmem:[#allocation3 + $0x58] sm:$0xf] %vm2485_vm14, %v2754_v0  ;;  %3010 = vst [vmem:[#allocation3 + $0x5c] sm:$0x1] %v3009_v53  ;;  %v3368_v37 = vor.u32 %v3367_v35, %v3364_v45  ;;  %v3381_v33 = vshll.u32 %v7818_v10, 16  ;;  %vm4124_vm3 = vcmask 326912  }
 0x20d   : > { %4162 = vrot.lane.b32.xlu1 %v5526_v32, %s6053_s27  ;;  %4396 = vrot.lane.b32.xlu0 %v5525_v19, %s6054_s28  ;;  %v3407_v32 = vrot.slane %v3405_v57, 5  ;;  %v3379_v34 = vrot.slane %v3378_v1, 4  ;;  %v3398_v10 = vsel %vm6247_vm10, %v3393_v11, %v7856_v61  ;;  %v6028_v36 = vld [vmem:[%s6224_s29 + $0x14] sm:$0xf]  ;;  %v6029_v54 = vld [vmem:[%s6224_s29 + $0x18] sm:$0xf] }
 0x20e   : > { %v3369_v18 = vrot.slane %v3368_v37, 4  ;;  %v3383_v38 = vrot.slane %v3381_v33, 5  ;;  %v6030_v45 = vld [vmem:[%s6224_s29 + $0x1c] sm:$0xf]  ;;  %vm4200_vm4 = vcmask 392512  }
 0x20f   : > { %v3408_v23 = vsel %vm6247_vm10, %v3403_v44, %v3407_v32  ;;  %v5547_v35 = vcombine.low %v6029_v54, %v6030_v45 }
 0x210   : > { %v7900_v46 = vld [vmem:[#allocation3 + $0x60] sm:$0xf]  ;;  %v5494_v27 = vcombine.low %v3398_v10, %v3408_v23  ;;  %v3384_v20 = vsel %vm6247_vm10, %v3379_v34, %v3383_v38  ;;  %v3374_v51 = vsel %vm6247_vm10, %v3369_v18, %v3373_v24  ;;  %v6027_v24 = vld [vmem:[%s6224_s29 + $0x10] sm:$0xf] }
 0x211   : > { %3924 = vrot.lane.b32.xlu1 %v5525_v19, %s6050_s17  ;;  %4160 = vrot.lane.b32.xlu0 %v5525_v19, %s6053_s27  ;;  %v7907_v59 = vld [vmem:[#allocation3 + $0x54] sm:$0xf]  ;;  %v3434_v50 = vshrl.u32 %v7900_v46, 16  ;;  %v3437_v61 = vshll.u32 %v7900_v46, 16  ;;  %v7931_v6 = vcombine.low %v3374_v51, %v3384_v20  ;;  %v5512_v42 = vrot.slane %v7900_v46, 9 }
 0x212   : > { %v7902_v49 = vld [vmem:[#allocation3 + $0x64] sm:$0xf]  ;;  %v7933_v58 = vld [vmem:[#allocation3 + $0x68] sm:$0x1]  ;;  %v3410_v4 = vshrl.u32 %v7907_v59, 16  ;;  %v5511_v0 = vrot.slane %v7907_v59, 9  ;;  %v5546_v57 = vcombine.low %v6027_v24, %v6028_v36 }
 0x213   : > { %v5480_v41 = vcombine.low %v7900_v46, %v7902_v49  ;;  %v7909_v15 = vld [vmem:[#allocation3 + $0x58] sm:$0xf]  ;;  %v3812_v26 = vrot.slane %v7902_v49, 5  ;;  %v3447_v17 = vshrl.u32 %v7902_v49, 16  ;;  %v3815_v56 = vrot.slane %v7933_v58, 5 }
 0x214   : > { %v5479_v21 = vcombine.low %v7907_v59, %v7909_v15  ;;  %v3805_v29 = vrot.slane %v7909_v15, 5  ;;  %v3423_v30 = vshrl.u32 %v7909_v15, 16  ;;  %v7955_v25 = vld [vmem:[#allocation3 + $0x5c] sm:$0x1]  ;;  %v3443_v11 = vshll.u32 %v7902_v49, 16  ;;  %5800 = vmatprep.mubr.msk.bf16.mxu0 %vm8925_vm5, %v5546_v57 }
 0x215   : > { %3998 = vrot.lane.b32.xlu1 %v5480_v41, %s6047_s10  ;;  %4234 = vrot.lane.b32.xlu0 %v5480_v41, %s6052_s23  ;;  %3233 = vst.msk [vmem:[#allocation5 + $0x40] sm:$0xff] %vm3224_vm6, %v5480_v41  ;;  %v3814_v63 = vrot.slane %v3812_v26, 4  ;;  %v3813_v39 = vsel %vm6234_vm9, %v5512_v42, %v3812_v26  ;;  %v3808_v32 = vrot.slane %v7955_v25, 5  ;;  %v7971_v23 = vrot.slane %v3434_v50, 4  ;;  %v3025_v38 = vld [vmem:[#allocation3 + $0x78] sm:$0xf] }
 0x216   : > { %3232 = vst.msk [vmem:[#allocation5 + $0x38] sm:$0xff] %vm3224_vm6, %v5479_v21  ;;  %v3807_v22 = vrot.slane %v3805_v29, 4  ;;  %v3449_v18 = vrot.slane %v3447_v17, 4  ;;  %5801 = vmatmul.mubr.msk.bf16.gmra.mrb[36].mxu0 %vm8926_vm7, %v5547_v35  ;;  %v3018_v50 = vld [vmem:[#allocation3 + $0x6c] sm:$0xf]  ;;  %v3425_v46 = vrot.slane %v3423_v30, 4 }
 0x217   : > { %v3816_v48 = vsel %vm6234_vm9, %v3814_v63, %v3815_v56  ;;  %v3029_v63 = vld [vmem:[#allocation3 + $0x80] sm:$0x1]  ;;  %v3412_v35 = vrot.slane %v3410_v4, 4  ;;  %v3429_v4 = vshll.u32 %v7955_v25, 16  ;;  %vm4270_vm5 = vcmask 458112  }
 0x218   : > { %v5528_v41 = vcombine.low %v3813_v39, %v3816_v48  ;;  %v3809_v49 = vsel %vm6234_vm9, %v3807_v22, %v3808_v32  ;;  %vm4362_vm7 = vcmask 523712  }
 0x219   : > { %4086 = vrot.lane.b32.xlu1 %v5494_v27, %s6049_s12  ;;  %4322 = vrot.lane.b32.xlu0 %v5494_v27, %s6055_s11 }
 0x21b   : > { %v5780_v43 = vpop.f32.mrb[16].mxu0 }
 0x21c   : > { %v2399_v12 = vadd.f32 %v5780_v43, %v7516_v62  ;;  %v2390_v55 = vpop.f32.mrb[17].mxu0  ;;  %v3413_v62 = vshll.u32 %v7907_v59, 16 }
 0x21d   : > { %v2391_v7 = vadd.f32 %v7942_v16, %v2390_v55  ;;  %v5781_v31 = vpop.f32.mrb[18].mxu0  ;;  %4232 = vrot.lane.b32.xlu1 %v5479_v21, %s6052_s23  ;;  %3996 = vrot.lane.b32.xlu0 %v5479_v21, %s6047_s10  ;;  %v7980_v55 = vrot.slane %v3443_v11, 5 }
 0x21e   : > { %v2471_v52 = vmax.f32 %v2399_v12, 0.0  ;;  %v2402_v2 = vadd.f32 %v7942_v16, %v5781_v31  ;;  %v2393_v14 = vpop.f32.mrb[19].mxu0  ;;  %v3419_v31 = vshll.u32 %v7909_v15, 16 }
 0x21f   : > { %v2469_v60 = vmax.f32 %v2391_v7, 0.0  ;;  %v2394_v5 = vadd.f32 %v7942_v16, %v2393_v14  ;;  %v3450_v54 = vor.u32 %v3449_v18, %v7980_v55  ;;  %v3431_v18 = vrot.slane %v3429_v4, 5 }
 0x220   : > { %v5653_v53 = vpack.c.bf16 %v2471_v52, %v2471_v52  ;;  %v2472_v19 = vmax.f32 %v2402_v2, 0.0 }
 0x221   : > { %v5651_v13 = vpack.c.bf16 %v2469_v60, %v2469_v60  ;;  %v2470_v47 = vmax.f32 %v2394_v5, 0.0  ;;  %3685 = vrot.lane.b32.xlu1 %v5494_v27, %s6044_s30  ;;  %4084 = vrot.lane.b32.xlu0 %v7931_v6, %s6049_s12  ;;  %v3022_v60 = vld [vmem:[#allocation3 + $0x74] sm:$0x1] }
 0x222   : > { %v2791_v44 = vshrl.u32 %v5653_v53, 16  ;;  %v5654_v1 = vpack.c.bf16 %v2472_v19, %v2472_v19  ;;  %v2794_v34 = vshll.u32 %v5653_v53, 16 }
 0x223   : > { %v2774_v37 = vshrl.u32 %v5651_v13, 16  ;;  %v5652_v33 = vpack.c.bf16 %v2470_v47, %v2470_v47  ;;  %v2777_v20 = vshll.u32 %v5651_v13, 16  ;;  %v3806_v47 = vsel %vm6234_vm9, %v5511_v0, %v3805_v29 }
 0x224   : > { %v2793_v21 = vrot.slane %v2791_v44, 7  ;;  %v2799_v10 = vshrl.u32 %v5654_v1, 16  ;;  %v2802_v12 = vshll.u32 %v5654_v1, 16  ;;  %v5527_v57 = vcombine.low %v3806_v47, %v3809_v49 }
 0x225   : > { %v2776_v27 = vrot.slane %v2774_v37, 7  ;;  %v2782_v26 = vshrl.u32 %v5652_v33, 16  ;;  %4320 = vrot.lane.b32.xlu1 %v7931_v6, %s6055_s11  ;;  %4402 = vrot.lane.b32.xlu0 %v5528_v41, %s6054_s28  ;;  %v2785_v7 = vshll.u32 %v5652_v33, 16  ;;  %v3421_v29 = vrot.slane %v3419_v31, 5 }
 0x226   : > { %v2796_v51 = vor.u32 %v2794_v34, %v2793_v21  ;;  %v2801_v43 = vrot.slane %v2799_v10, 7  ;;  %v2797_v52 = vrot.slane %v2793_v21, 4  ;;  %v3415_v44 = vrot.slane %v3413_v62, 5 }
 0x227   : > { %v2779_v42 = vor.u32 %v2777_v20, %v2776_v27  ;;  %v2784_v17 = vrot.slane %v2782_v26, 7  ;;  %v2780_v5 = vrot.slane %v2776_v27, 4  ;;  %v3451_v1 = vrot.slane %v3450_v54, 4 }
 0x228   : > { %v3026_v2 = vsel %vm7526_vm1, %v2796_v51, %v3025_v38  ;;  %v2804_v14 = vor.u32 %v2802_v12, %v2801_v43  ;;  %v2806_v56 = vrot.slane %v2801_v43, 4  ;;  %v3426_v15 = vor.u32 %v3425_v46, %v3421_v29 }
 0x229   : > { %3027 = vst [vmem:[#allocation3 + $0x78] sm:$0xf] %v3026_v2  ;;  %v3019_v39 = vsel %vm7526_vm1, %v2779_v42, %v3018_v50  ;;  %v2787_v53 = vor.u32 %v2785_v7, %v2784_v17  ;;  %v2789_v19 = vrot.slane %v2784_v17, 4  ;;  %3683 = vrot.lane.b32.xlu1 %v7931_v6, %s6044_s30  ;;  %3930 = vrot.lane.b32.xlu0 %v5528_v41, %s6050_s17  ;;  %v3439_v6 = vrot.slane %v3437_v61, 5 }
 0x22a   : > { %3020 = vst [vmem:[#allocation3 + $0x6c] sm:$0xf] %v3019_v39  ;;  %v2805_v48 = vsel %vm6262_vm12, %v2797_v52, %v2804_v14  ;;  %v3030_v22 = vsel %vm7533_vm2, %v2806_v56, %v3029_v63  ;;  %v3453_v61 = vshll.u32 %v7933_v58, 16  ;;  %v3416_v37 = vor.u32 %v3415_v44, %v3412_v35  ;;  %v6031_v44 = vld [vmem:[%s6224_s29 + $0x20] sm:$0xf] }
 0x22b   : > { %3028 = vst.msk [vmem:[#allocation3 + $0x7c] sm:$0xf] %vm2485_vm14, %v2805_v48  ;;  %3031 = vst [vmem:[#allocation3 + $0x80] sm:$0x1] %v3030_v22  ;;  %v2788_v24 = vsel %vm6262_vm12, %v2780_v5, %v2787_v53  ;;  %v3023_v36 = vsel %vm7533_vm2, %v2789_v19, %v3022_v60  ;;  %v3440_v45 = vor.u32 %v3439_v6, %v7971_v23  ;;  %v3427_v21 = vrot.slane %v3426_v15, 4 }
 0x22c   : > { %v7994_v13 = vpop.permute.xlu0 %4222  ;;  %3021 = vst.msk [vmem:[#allocation3 + $0x70] sm:$0xf] %vm2485_vm14, %v2788_v24  ;;  %3024 = vst [vmem:[#allocation3 + $0x74] sm:$0x1] %v3023_v36  ;;  %v3455_v30 = vrot.slane %v3453_v61, 5  ;;  %v8042_v25 = vpop.permute.xlu1 %3986  ;;  %v3417_v10 = vrot.slane %v3416_v37, 4 }
 0x22d   : > { %4166 = vrot.lane.b32.xlu1 %v5528_v41, %s6053_s27  ;;  %4400 = vrot.lane.b32.xlu0 %v5527_v57, %s6054_s28  ;;  %v3441_v11 = vrot.slane %v3440_v45, 4  ;;  %v3432_v20 = vsel %vm6247_vm10, %v3427_v21, %v3431_v18 }
 0x22e   : > { %v3456_v41 = vsel %vm6247_vm10, %v3451_v1, %v3455_v30  ;;  %v3422_v49 = vsel %vm6247_vm10, %v3417_v10, %v3421_v29  ;;  %v6032_v1 = vld [vmem:[%s6224_s29 + $0x24] sm:$0xf]  ;;  %v6033_v30 = vld [vmem:[%s6224_s29 + $0x28] sm:$0xf] }
 0x22f   : > { %v3446_v34 = vsel %vm6247_vm10, %v3441_v11, %v7980_v55  ;;  %v8059_v12 = vcombine.low %v3422_v49, %v3432_v20  ;;  %v5548_v15 = vcombine.low %v6031_v44, %v6032_v1  ;;  %v6034_v11 = vld [vmem:[%s6224_s29 + $0x2c] sm:$0xf]  ;;  %v3036_v44 = vld [vmem:[#allocation3 + $0x8c] sm:$0x1] }
 0x230   : > { %v3985_v0 = vpop.permute.xlu0 %3984  ;;  %v8024_v32 = vld [vmem:[#allocation3 + $0x78] sm:$0xf]  ;;  %v5496_v27 = vcombine.low %v3446_v34, %v3456_v41  ;;  %v5549_v37 = vcombine.low %v6033_v30, %v6034_v11 }
 0x231   : > { %4033 = vst.msk [vmem:[#allocation5] sm:$0xff] %vm4032_vm0, %v3985_v0  ;;  %3928 = vrot.lane.b32.xlu1 %v5527_v57, %s6050_s17  ;;  %4164 = vrot.lane.b32.xlu0 %v5527_v57, %s6053_s27  ;;  %v8031_v62 = vld [vmem:[#allocation3 + $0x6c] sm:$0xf]  ;;  %v3482_v51 = vshrl.u32 %v8024_v32, 16  ;;  %v3485_v50 = vshll.u32 %v8024_v32, 16  ;;  %v8063_v42 = vpop.permute.xlu1 %4154  ;;  %v5514_v7 = vrot.slane %v8024_v32, 9 }
 0x232   : > { %v8026_v58 = vld [vmem:[#allocation3 + $0x7c] sm:$0xf]  ;;  %v8061_v55 = vld [vmem:[#allocation3 + $0x80] sm:$0x1]  ;;  %v3458_v5 = vshrl.u32 %v8031_v62, 16  ;;  %v3461_v39 = vshll.u32 %v8031_v62, 16  ;;  %5804 = vmatprep.mubr.msk.bf16.mxu0 %vm8927_vm11, %v5548_v15 }
 0x233   : > { %v5482_v59 = vcombine.low %v8024_v32, %v8026_v58  ;;  %v8033_v33 = vld [vmem:[#allocation3 + $0x70] sm:$0xf]  ;;  %v3826_v26 = vrot.slane %v8026_v58, 5  ;;  %v3495_v2 = vshrl.u32 %v8026_v58, 16  ;;  %v3829_v47 = vrot.slane %v8061_v55, 5  ;;  %5805 = vmatmul.mubr.msk.bf16.gmra.mrb[40].mxu0 %vm8928_vm13, %v5549_v37 }
 0x234   : > { %v5481_v23 = vcombine.low %v8031_v62, %v8033_v33  ;;  %v8048_v38 = vpop.permute.xlu0 %4390  ;;  %v3819_v52 = vrot.slane %v8033_v33, 5  ;;  %v3471_v48 = vshrl.u32 %v8033_v33, 16  ;;  %v8082_v57 = vld [vmem:[#allocation3 + $0x74] sm:$0x1]  ;;  %v5513_v54 = vrot.slane %v8031_v62, 9 }
 0x235   : > { %4002 = vrot.lane.b32.xlu1 %v5482_v59, %s6047_s10  ;;  %3235 = vst.msk [vmem:[#allocation5 + $0x50] sm:$0xff] %vm3224_vm6, %v5482_v59  ;;  %4238 = vrot.lane.b32.xlu0 %v5482_v59, %s6052_s23  ;;  %v3828_v31 = vrot.slane %v3826_v26, 4  ;;  %v3827_v36 = vsel %vm6234_vm9, %v5514_v7, %v3826_v26  ;;  %v3822_v41 = vrot.slane %v8082_v57, 5  ;;  %v8098_v21 = vpop.permute.xlu1 %3916  ;;  %v8102_v20 = vrot.slane %v3482_v51, 4 }
 0x236   : > { %3234 = vst.msk [vmem:[#allocation5 + $0x48] sm:$0xff] %vm3224_vm6, %v5481_v23  ;;  %v3821_v0 = vrot.slane %v3819_v52, 4  ;;  %vm4438_vm11 = vcmask 589312   ;;  %vm4807_vm13 = vcmask 588800  }
 0x237   : > { %v3830_v61 = vsel %vm6234_vm9, %v3828_v31, %v3829_v47  ;;  %v3043_v47 = vld [vmem:[#allocation3 + $0x98] sm:$0x1] }
 0x238   : > { %v8069_v14 = vpop.permute.xlu0 %3918  ;;  %v3823_v51 = vsel %vm6234_vm9, %v3821_v0, %v3822_v41  ;;  %v3487_v41 = vrot.slane %v3485_v50, 5  ;;  %v3473_v50 = vrot.slane %v3471_v48, 4 }
 0x239   : > { %4090 = vrot.lane.b32.xlu1 %v5496_v27, %s6049_s12  ;;  %4326 = vrot.lane.b32.xlu0 %v5496_v27, %s6055_s11 }
 0x23b   : > { %v5784_v43 = vpop.f32.mrb[20].mxu0 }
 0x23c   : > { %v2415_v63 = vadd.f32 %v7942_v16, %v5784_v43  ;;  %v2406_v17 = vpop.f32.mrb[21].mxu0  ;;  %v8100_v34 = vpop.permute.xlu0 %4152 }
 0x23d   : > { %v2407_v56 = vadd.f32 %v7942_v16, %v2406_v17  ;;  %v5785_v60 = vpop.f32.mrb[22].mxu0  ;;  %4236 = vrot.lane.b32.xlu1 %v5481_v23, %s6052_s23  ;;  %4000 = vrot.lane.b32.xlu0 %v5481_v23, %s6047_s10  ;;  %v3491_v23 = vshll.u32 %v8026_v58, 16  ;;  %v3039_v17 = vld [vmem:[#allocation3 + $0x90] sm:$0xf] }
 0x23e   : > { %v2475_v53 = vmax.f32 %v2415_v63, 0.0  ;;  %v2418_v19 = vadd.f32 %v7942_v16, %v5785_v60  ;;  %v2409_v22 = vpop.f32.mrb[23].mxu0  ;;  %v3497_v63 = vrot.slane %v3495_v2, 4  ;;  %v3032_v60 = vld [vmem:[#allocation3 + $0x84] sm:$0xf] }
 0x23f   : > { %v2473_v6 = vmax.f32 %v2407_v56, 0.0  ;;  %v2410_v24 = vadd.f32 %v7942_v16, %v2409_v22  ;;  %v8111_v22 = vrot.slane %v3491_v23, 5 }
 0x240   : > { %v5657_v29 = vpack.c.bf16 %v2475_v53, %v2475_v53  ;;  %v2476_v46 = vmax.f32 %v2418_v19, 0.0 }
 0x241   : > { %v5655_v45 = vpack.c.bf16 %v2473_v6, %v2473_v6  ;;  %v2474_v35 = vmax.f32 %v2410_v24, 0.0  ;;  %3689 = vrot.lane.b32.xlu1 %v5496_v27, %s6044_s30  ;;  %4088 = vrot.lane.b32.xlu0 %v8059_v12, %s6049_s12  ;;  %v5530_v27 = vcombine.low %v3827_v36, %v3830_v61 }
 0x242   : > { %v2825_v4 = vshrl.u32 %v5657_v29, 16  ;;  %v5658_v59 = vpack.c.bf16 %v2476_v46, %v2476_v46  ;;  %v2828_v49 = vshll.u32 %v5657_v29, 16  ;;  %v3467_v46 = vshll.u32 %v8033_v33, 16 }
 0x243   : > { %v2808_v10 = vshrl.u32 %v5655_v45, 16  ;;  %v5656_v18 = vpack.c.bf16 %v2474_v35, %v2474_v35  ;;  %v2811_v58 = vshll.u32 %v5655_v45, 16 }
 0x244   : > { %v2827_v26 = vrot.slane %v2825_v4, 7  ;;  %v2833_v43 = vshrl.u32 %v5658_v59, 16  ;;  %v2836_v19 = vshll.u32 %v5658_v59, 16  ;;  %v3820_v59 = vsel %vm6234_vm9, %v5513_v54, %v3819_v52 }
 0x245   : > { %v2810_v7 = vrot.slane %v2808_v10, 7  ;;  %v2816_v31 = vshrl.u32 %v5656_v18, 16  ;;  %4324 = vrot.lane.b32.xlu1 %v8059_v12, %s6055_s11  ;;  %4406 = vrot.lane.b32.xlu0 %v5530_v27, %s6054_s28  ;;  %v2819_v24 = vshll.u32 %v5656_v18, 16  ;;  %v3498_v52 = vor.u32 %v3497_v63, %v8111_v22 }
 0x246   : > { %v2830_v56 = vor.u32 %v2828_v49, %v2827_v26  ;;  %v2835_v53 = vrot.slane %v2833_v43, 7  ;;  %v2831_v61 = vrot.slane %v2827_v26, 4  ;;  %v5529_v26 = vcombine.low %v3820_v59, %v3823_v51 }
 0x247   : > { %v2813_v2 = vor.u32 %v2811_v58, %v2810_v7  ;;  %v2818_v6 = vrot.slane %v2816_v31, 7  ;;  %v8113_v36 = vpop.permute.xlu1 %3990  ;;  %v8115_v29 = vpop.permute.xlu0 %4226  ;;  %v2814_v1 = vrot.slane %v2810_v7, 4  ;;  %v8146_v32 = vrot.slane %v3467_v46, 5 }
 0x248   : > { %v3040_v0 = vsel %vm7526_vm1, %v2830_v56, %v3039_v17  ;;  %v2838_v45 = vor.u32 %v2836_v19, %v2835_v53  ;;  %v2840_v35 = vrot.slane %v2835_v53, 4  ;;  %v3501_v54 = vshll.u32 %v8061_v55, 16 }
 0x249   : > { %3041 = vst [vmem:[#allocation3 + $0x90] sm:$0xf] %v3040_v0  ;;  %v3033_v15 = vsel %vm7526_vm1, %v2813_v2, %v3032_v60  ;;  %v2821_v30 = vor.u32 %v2819_v24, %v2818_v6  ;;  %v2823_v11 = vrot.slane %v2818_v6, 4  ;;  %3687 = vrot.lane.b32.xlu1 %v8059_v12, %s6044_s30  ;;  %3934 = vrot.lane.b32.xlu0 %v5530_v27, %s6050_s17  ;;  %v3460_v49 = vrot.slane %v3458_v5, 4 }
 0x24a   : > { %3034 = vst [vmem:[#allocation3 + $0x84] sm:$0xf] %v3033_v15  ;;  %v2839_v37 = vsel %vm6262_vm12, %v2831_v61, %v2838_v45  ;;  %v3044_v4 = vsel %vm7533_vm2, %v2840_v35, %v3043_v47  ;;  %v3463_v43 = vrot.slane %v3461_v39, 5  ;;  %v3488_v17 = vor.u32 %v3487_v41, %v8102_v20 }
 0x24b   : > { %3042 = vst.msk [vmem:[#allocation3 + $0x94] sm:$0xf] %vm2485_vm14, %v2839_v37  ;;  %3045 = vst [vmem:[#allocation3 + $0x98] sm:$0x1] %v3044_v4  ;;  %v2822_v12 = vsel %vm6262_vm12, %v2814_v1, %v2821_v30  ;;  %v3037_v23 = vsel %vm7533_vm2, %v2823_v11, %v3036_v44  ;;  %v8142_v10 = vpop.permute.xlu1 %4078  ;;  %v4315_v18 = vpop.permute.xlu0 %4314  ;;  %v3499_v58 = vrot.slane %v3498_v52, 4  ;;  %v3474_v33 = vor.u32 %v3473_v50, %v8146_v32 }
 0x24c   : > { %3035 = vst.msk [vmem:[#allocation3 + $0x88] sm:$0xf] %vm2485_vm14, %v2822_v12  ;;  %3038 = vst [vmem:[#allocation3 + $0x8c] sm:$0x1] %v3037_v23  ;;  %v3503_v55 = vrot.slane %v3501_v54, 5  ;;  %v3464_v48 = vor.u32 %v3463_v43, %v3460_v49  ;;  %v3489_v39 = vrot.slane %v3488_v17, 4 }
 0x24d   : > { %4170 = vrot.lane.b32.xlu1 %v5530_v27, %s6053_s27  ;;  %4404 = vrot.lane.b32.xlu0 %v5529_v26, %s6054_s28  ;;  %v3477_v27 = vshll.u32 %v8082_v57, 16  ;;  %v3475_v19 = vrot.slane %v3474_v33, 4 }
 0x24e   : > { %v3504_v53 = vsel %vm6247_vm10, %v3499_v58, %v3503_v55  ;;  %v3465_v2 = vrot.slane %v3464_v48, 4 }
 0x24f   : > { %v8158_v63 = vpop.permute.xlu1 %4224  ;;  %v3989_v7 = vpop.permute.xlu0 %3988  ;;  %v3479_v47 = vrot.slane %v3477_v27, 5 }
 0x250   : > { %v8163_v5 = vld [vmem:[#allocation3 + $0x90] sm:$0xf] }
 0x251   : > { %3932 = vrot.lane.b32.xlu1 %v5529_v26, %s6050_s17  ;;  %4168 = vrot.lane.b32.xlu0 %v5529_v26, %s6053_s27  ;;  %v8170_v56 = vld [vmem:[#allocation3 + $0x84] sm:$0xf]  ;;  %v3530_v61 = vshrl.u32 %v8163_v5, 16  ;;  %v3533_v0 = vshll.u32 %v8163_v5, 16  ;;  %v5516_v45 = vrot.slane %v8163_v5, 9 }
 0x252   : > { %v8165_v62 = vld [vmem:[#allocation3 + $0x94] sm:$0xf]  ;;  %v3509_v1 = vshll.u32 %v8170_v56, 16  ;;  %v5515_v26 = vrot.slane %v8170_v56, 9 }
 0x253   : > { %v3678_v20 = vpop.permute.xlu1 %3677  ;;  %v4077_v31 = vpop.permute.xlu0 %4076  ;;  %v5484_v51 = vcombine.low %v8163_v5, %v8165_v62  ;;  %v8172_v60 = vld [vmem:[#allocation3 + $0x88] sm:$0xf]  ;;  %v3840_v46 = vrot.slane %v8165_v62, 5  ;;  %v3543_v35 = vshrl.u32 %v8165_v62, 16  ;;  %v8224_v30 = vld [vmem:[#allocation3 + $0x8c] sm:$0x1] }
 0x254   : > { %3724 = vst.msk [vmem:[#allocation5 + $0x10] sm:$0xff] %vm3721_vm8, %v3678_v20  ;;  %v5483_v57 = vcombine.low %v8170_v56, %v8172_v60  ;;  %v3833_v11 = vrot.slane %v8172_v60, 5  ;;  %v3519_v59 = vshrl.u32 %v8172_v60, 16  ;;  %v3539_v52 = vshll.u32 %v8165_v62, 16 }
 0x255   : > { %4125 = vst.msk [vmem:[#allocation5] sm:$0xff] %vm4124_vm3, %v4077_v31  ;;  %4006 = vrot.lane.b32.xlu1 %v5484_v51, %s6047_s10  ;;  %4242 = vrot.lane.b32.xlu0 %v5484_v51, %s6052_s23  ;;  %v3842_v41 = vrot.slane %v3840_v46, 4  ;;  %v3836_v49 = vrot.slane %v8224_v30, 5  ;;  %v8247_v43 = vrot.slane %v3530_v61, 4 }
 0x256   : > { %3965 = vst.msk [vmem:[#allocation5 + $0x10] sm:$0xff] %vm3962_vm15, %v8069_v14  ;;  %v3494_v14 = vsel %vm6247_vm10, %v3489_v39, %v8111_v22  ;;  %v3470_v22 = vsel %vm6247_vm10, %v3465_v2, %v8146_v32  ;;  %v8252_v58 = vsel %vm6234_vm9, %v5515_v26, %v3833_v11  ;;  %v3835_v33 = vrot.slane %v3833_v11, 4  ;;  %v3057_v26 = vld [vmem:[#allocation3 + $0xb0] sm:$0x1] }
 0x257   : > { %4201 = vst.msk [vmem:[#allocation5] sm:$0xff] %vm4200_vm4, %v8100_v34  ;;  %v3676_v34 = vpop.permute.xlu1 %3675  ;;  %v8195_v6 = vpop.permute.xlu0 %4394  ;;  %v5498_v24 = vcombine.low %v3494_v14, %v3504_v53  ;;  %v8259_v39 = vrot.slane %v3533_v0, 5  ;;  %v8264_v31 = vrot.slane %v3539_v52, 5 }
 0x258   : > { %3237 = vst.msk [vmem:[#allocation5 + $0x60] sm:$0xff] %vm3224_vm6, %v5484_v51  ;;  %3236 = vst.msk [vmem:[#allocation5 + $0x58] sm:$0xff] %vm3224_vm6, %v5483_v57  ;;  %v3545_v51 = vrot.slane %v3543_v35, 4 }
 0x259   : > { %4035 = vst.msk [vmem:[#allocation5 + $0x10] sm:$0xff] %vm4032_vm0, %v3989_v7  ;;  %4094 = vrot.lane.b32.xlu1 %v5498_v24, %s6049_s12  ;;  %4330 = vrot.lane.b32.xlu0 %v5498_v24, %s6055_s11 }
 0x25a   : > { %4271 = vst.msk [vmem:[#allocation5] sm:$0xff] %vm4270_vm5, %v7994_v13  ;;  %v3480_v13 = vsel %vm6247_vm10, %v3475_v19, %v3479_v47 }
 0x25b   : > { %4363 = vst.msk [vmem:[#allocation5] sm:$0xff] %vm4362_vm7, %v4315_v18  ;;  %v5788_v44 = vpop.f32.mrb[24].mxu0  ;;  %v8222_v15 = vcombine.low %v3470_v22, %v3480_v13  ;;  %v8230_v37 = vpop.permute.xlu0 %3922 }
 0x25c   : > { %4439 = vst.msk [vmem:[#allocation5] sm:$0xff] %vm4438_vm11, %v8048_v38  ;;  %v8210_v38 = vld [vmem:[#allocation3 + $0x98] sm:$0x1]  ;;  %v2422_v4 = vpop.f32.mrb[25].mxu0  ;;  %v8236_v23 = vpop.permute.xlu1 %4158 }
 0x25d   : > { %3723 = vst.msk [vmem:[#allocation5 + $0x8] sm:$0xff] %vm3721_vm8, %v3676_v34  ;;  %v3843_v12 = vrot.slane %v8210_v38, 5  ;;  %v5789_v18 = vpop.f32.mrb[26].mxu0  ;;  %4240 = vrot.lane.b32.xlu1 %v5483_v57, %s6052_s23  ;;  %4004 = vrot.lane.b32.xlu0 %v5483_v57, %s6047_s10 }
 0x25e   : > { %3964 = vst.msk [vmem:[#allocation5 + $0x8] sm:$0xff] %vm3962_vm15, %v8098_v21  ;;  %v3506_v21 = vshrl.u32 %v8170_v56, 16  ;;  %v2434_v50 = vadd.f32 %v7942_v16, %v5789_v18  ;;  %v2425_v54 = vpop.f32.mrb[27].mxu0  ;;  %v3521_v18 = vrot.slane %v3519_v59, 4 }
 0x25f   : > { %4034 = vst.msk [vmem:[#allocation5 + $0x8] sm:$0xff] %vm4032_vm0, %v8042_v25  ;;  %v2431_v25 = vadd.f32 %v7942_v16, %v5788_v44  ;;  %v8254_v5 = vpop.permute.xlu0 %4392  ;;  %v3844_v62 = vsel %vm6234_vm9, %v3842_v41, %v3843_v12  ;;  %v3053_v44 = vld [vmem:[#allocation3 + $0xa8] sm:$0xf]  ;;  %v3046_v12 = vld [vmem:[#allocation3 + $0x9c] sm:$0xf] }
 0x260   : > { %4126 = vst.msk [vmem:[#allocation5 + $0x8] sm:$0xff] %vm4124_vm3, %v8142_v10  ;;  %v2423_v10 = vadd.f32 %v7942_v16, %v2422_v4  ;;  %v2480_v48 = vmax.f32 %v2434_v50, 0.0  ;;  %v8266_v2 = vrot.slane %v3506_v21, 4  ;;  %v8268_v13 = vpop.permute.xlu1 %3920  ;;  %v3837_v21 = vsel %vm6234_vm9, %v3835_v33, %v3836_v49  ;;  %v3050_v49 = vld [vmem:[#allocation3 + $0xa4] sm:$0x1] }
 0x261   : > { %4202 = vst.msk [vmem:[#allocation5 + $0x8] sm:$0xff] %vm4200_vm4, %v8063_v42  ;;  %v3841_v42 = vsel %vm6234_vm9, %v5516_v45, %v3840_v46  ;;  %v2479_v32 = vmax.f32 %v2431_v25, 0.0  ;;  %3693 = vrot.lane.b32.xlu1 %v5498_v24, %s6044_s30  ;;  %4092 = vrot.lane.b32.xlu0 %v8222_v15, %s6049_s12  ;;  %v3515_v45 = vshll.u32 %v8172_v60, 16  ;;  %v3546_v25 = vor.u32 %v3545_v51, %v8264_v31 }
 0x262   : > { %4272 = vst.msk [vmem:[#allocation5 + $0x8] sm:$0xff] %vm4270_vm5, %v8158_v63  ;;  %v2477_v17 = vmax.f32 %v2423_v10, 0.0  ;;  %v2426_v63 = vadd.f32 %v7942_v16, %v2425_v54  ;;  %v5662_v19 = vpack.c.bf16 %v2480_v48, %v2480_v48  ;;  %v5532_v46 = vcombine.low %v3841_v42, %v3844_v62 }
 0x263   : > { %v4455_v7 = vld [vmem:[#allocation5] sm:$0xff]  ;;  %v5661_v55 = vpack.c.bf16 %v2479_v32, %v2479_v32  ;;  %v8270_v0 = vpop.permute.xlu0 %4156  ;;  %v8285_v33 = vrot.slane %v3515_v45, 5  ;;  %v3511_v62 = vrot.slane %v3509_v1, 5  ;;  %v3536_v51 = vor.u32 %v8259_v39, %v8247_v43 }
 0x264   : > { %5838 = vmatprep.mubr.msk.bf16.mxu1 %vm4807_vm13, %v4455_v7  ;;  %v5659_v27 = vpack.c.bf16 %v2477_v17, %v2477_v17  ;;  %v2478_v20 = vmax.f32 %v2426_v63, 0.0  ;;  %v2867_v61 = vshrl.u32 %v5662_v19, 16  ;;  %v2870_v24 = vshll.u32 %v5662_v19, 16 }
 0x265   : > { %v2859_v53 = vshrl.u32 %v5661_v55, 16  ;;  %v2862_v57 = vshll.u32 %v5661_v55, 16  ;;  %4328 = vrot.lane.b32.xlu1 %v8222_v15, %s6055_s11  ;;  %4410 = vrot.lane.b32.xlu0 %v5532_v46, %s6054_s28  ;;  %v3547_v43 = vrot.slane %v3546_v25, 4  ;;  %v3512_v39 = vor.u32 %v3511_v62, %v8266_v2 }
 0x266   : > { %v2842_v14 = vshrl.u32 %v5659_v27, 16  ;;  %v2845_v47 = vshll.u32 %v5659_v27, 16  ;;  %v5660_v34 = vpack.c.bf16 %v2478_v20, %v2478_v20  ;;  %v2869_v10 = vrot.slane %v2867_v61, 7 }
 0x267   : > { %v2861_v22 = vrot.slane %v2859_v53, 7  ;;  %v8279_v50 = vpop.permute.xlu1 %3994  ;;  %v8283_v7 = vpop.permute.xlu0 %4230  ;;  %v3549_v53 = vshll.u32 %v8210_v38, 16  ;;  %v3522_v38 = vor.u32 %v3521_v18, %v8285_v33  ;;  %v3513_v45 = vrot.slane %v3512_v39, 4 }
 0x268   : > { %v2844_v35 = vrot.slane %v2842_v14, 7  ;;  %v2850_v11 = vshrl.u32 %v5660_v34, 16  ;;  %v2853_v32 = vshll.u32 %v5660_v34, 16  ;;  %v2872_v17 = vor.u32 %v2870_v24, %v2869_v10 }
 0x269   : > { %v2864_v4 = vor.u32 %v2862_v57, %v2861_v22  ;;  %v2865_v41 = vrot.slane %v2861_v22, 4  ;;  %v2874_v63 = vrot.slane %v2869_v10, 4  ;;  %3691 = vrot.lane.b32.xlu1 %v8222_v15, %s6044_s30  ;;  %3938 = vrot.lane.b32.xlu0 %v5532_v46, %s6050_s17  ;;  %v5531_v57 = vcombine.low %v8252_v58, %v3837_v21 }
 0x26a   : > { %v2847_v42 = vor.u32 %v2845_v47, %v2844_v35  ;;  %v2848_v60 = vrot.slane %v2844_v35, 4  ;;  %v2852_v52 = vrot.slane %v2850_v11, 7  ;;  %v3525_v14 = vshll.u32 %v8224_v30, 16 }
 0x26b   : > { %v3054_v54 = vsel %vm7526_vm1, %v2864_v4, %v3053_v44  ;;  %v2873_v27 = vsel %vm6262_vm12, %v2865_v41, %v2872_v17  ;;  %v3058_v20 = vsel %vm7533_vm2, %v2874_v63, %v3057_v26  ;;  %v8306_v1 = vpop.permute.xlu1 %4082  ;;  %v4319_v19 = vpop.permute.xlu0 %4318  ;;  %v3537_v47 = vrot.slane %v3536_v51, 4 }
 0x26c   : > { %3055 = vst [vmem:[#allocation3 + $0xa8] sm:$0xf] %v3054_v54  ;;  %v3047_v59 = vsel %vm7526_vm1, %v2847_v42, %v3046_v12  ;;  %v2855_v55 = vor.u32 %v2853_v32, %v2852_v52  ;;  %v2857_v48 = vrot.slane %v2852_v52, 4  ;;  %3056 = vst.msk [vmem:[#allocation3 + $0xac] sm:$0xf] %vm2485_vm14, %v2873_v27  ;;  %v3551_v34 = vrot.slane %v3549_v53, 5 }
 0x26d   : > { %3048 = vst [vmem:[#allocation3 + $0x9c] sm:$0xf] %v3047_v59  ;;  %3059 = vst [vmem:[#allocation3 + $0xb0] sm:$0x1] %v3058_v20  ;;  %4174 = vrot.lane.b32.xlu1 %v5532_v46, %s6053_s27  ;;  %4408 = vrot.lane.b32.xlu0 %v5531_v57, %s6054_s28  ;;  %v3523_v24 = vrot.slane %v3522_v38, 4  ;;  %v3527_v44 = vrot.slane %v3525_v14, 5  ;;  %v3542_v30 = vsel %vm6247_vm10, %v3537_v47, %v8264_v31 }
 0x26e   : > { %v2856_v15 = vsel %vm6262_vm12, %v2848_v60, %v2855_v55  ;;  %v3051_v56 = vsel %vm7533_vm2, %v2857_v48, %v3050_v49  ;;  %v3552_v61 = vsel %vm6247_vm10, %v3547_v43, %v3551_v34  ;;  %v3518_v52 = vsel %vm6247_vm10, %v3513_v45, %v8285_v33 }
 0x26f   : > { %3049 = vst.msk [vmem:[#allocation3 + $0xa0] sm:$0xf] %vm2485_vm14, %v2856_v15  ;;  %3052 = vst [vmem:[#allocation3 + $0xa4] sm:$0x1] %v3051_v56  ;;  %v8315_v22 = vpop.permute.xlu1 %4228  ;;  %v3993_v58 = vpop.permute.xlu0 %3992  ;;  %v5500_v4 = vcombine.low %v3542_v30, %v3552_v61  ;;  %v3528_v60 = vsel %vm6247_vm10, %v3523_v24, %v3527_v44 }
 0x270   : > { %v8354_v59 = vcombine.low %v3518_v52, %v3528_v60 }
 0x271   : > { %3936 = vrot.lane.b32.xlu1 %v5531_v57, %s6050_s17  ;;  %4172 = vrot.lane.b32.xlu0 %v5531_v57, %s6053_s27 }
 0x273   : > { %v8324_v11 = vld [vmem:[#allocation3 + $0xa8] sm:$0xf]  ;;  %v8326_v21 = vld [vmem:[#allocation3 + $0xac] sm:$0xf]  ;;  %v3682_v25 = vpop.permute.xlu1 %3681  ;;  %v4081_v18 = vpop.permute.xlu0 %4080 }
 0x274   : > { %v3113_v46 = vld [vmem:[#allocation3 + $0x9c] sm:$0xf]  ;;  %v8330_v10 = vcombine.low %v8324_v11, %v8326_v21  ;;  %3726 = vst.msk [vmem:[#allocation5 + $0x20] sm:$0xff] %vm3721_vm8, %v3682_v25  ;;  %v3587_v38 = vshll.u32 %v8326_v21, 16  ;;  %v3578_v47 = vshrl.u32 %v8324_v11, 16  ;;  %v3581_v34 = vshll.u32 %v8324_v11, 16 }
 0x275   : > { %v3554_v2 = vshrl.u32 %v3113_v46, 16  ;;  %v3557_v35 = vshll.u32 %v3113_v46, 16  ;;  %3967 = vst.msk [vmem:[#allocation5 + $0x20] sm:$0xff] %vm3962_vm15, %v8230_v37  ;;  %4098 = vrot.lane.b32.xlu1 %v5500_v4, %s6049_s12  ;;  %4334 = vrot.lane.b32.xlu0 %v5500_v4, %s6055_s11  ;;  %v5517_v48 = vrot.slane %v3113_v46, 9  ;;  %v5518_v9 = vrot.slane %v8324_v11, 9 }
 0x276   : > { %v3114_v41 = vld [vmem:[#allocation3 + $0xa0] sm:$0xf]  ;;  %v3115_v12 = vld [vmem:[#allocation3 + $0xa4] sm:$0x1]  ;;  %4127 = vst.msk [vmem:[#allocation5 + $0x10] sm:$0xff] %vm4124_vm3, %v4081_v18 }
 0x277   : > { %v8333_v42 = vcombine.low %v3113_v46, %v3114_v41  ;;  %v3567_v31 = vshrl.u32 %v3114_v41, 16  ;;  %v3847_v26 = vrot.slane %v3114_v41, 5  ;;  %v3850_v32 = vrot.slane %v3115_v12, 5  ;;  %3239 = vst.msk [vmem:[#allocation5 + $0x70] sm:$0xff] %vm3224_vm6, %v8330_v10  ;;  %v4317_v33 = vpop.permute.xlu1 %4316 }
 0x278   : > { %v3563_v54 = vshll.u32 %v3114_v41, 16  ;;  %4037 = vst.msk [vmem:[#allocation5 + $0x20] sm:$0xff] %vm4032_vm0, %v3993_v58  ;;  %v3556_v17 = vrot.slane %v3554_v2, 4  ;;  %v3559_v63 = vrot.slane %v3557_v35, 5  ;;  %v3573_v51 = vshll.u32 %v3115_v12, 16 }
 0x279   : > { %4203 = vst.msk [vmem:[#allocation5 + $0x10] sm:$0xff] %vm4200_vm4, %v8270_v0  ;;  %v3849_v37 = vrot.slane %v3847_v26, 4  ;;  %v3569_v49 = vrot.slane %v3567_v31, 4  ;;  %v8360_v0 = vpop.permute.xlu0 %4398  ;;  %4244 = vrot.lane.b32.xlu1 %v8333_v42, %s6052_s23  ;;  %4096 = vrot.lane.b32.xlu0 %v8354_v59, %s6049_s12  ;;  %v3848_v27 = vsel %vm6234_vm9, %v5517_v48, %v3847_v26  ;;  %v8405_v12 = vrot.slane %v3587_v38, 5 }
 0x27a   : > { %3238 = vst.msk [vmem:[#allocation5 + $0x68] sm:$0xff] %vm3224_vm6, %v8333_v42  ;;  %v8356_v55 = vrot.slane %v3563_v54, 5  ;;  %v3560_v20 = vor.u32 %v3559_v63, %v3556_v17  ;;  %v5792_v53 = vpop.f32.mrb[28].mxu0  ;;  %v3575_v45 = vrot.slane %v3573_v51, 5  ;;  %v3118_v63 = vld [vmem:[#allocation3 + $0xb0] sm:$0x1] }
 0x27b   : > { %4273 = vst.msk [vmem:[#allocation5 + $0x10] sm:$0xff] %vm4270_vm5, %v8115_v29  ;;  %v3851_v62 = vsel %vm6234_vm9, %v3849_v37, %v3850_v32  ;;  %v3680_v15 = vpop.permute.xlu1 %3679  ;;  %v2438_v57 = vpop.f32.mrb[29].mxu0 }
 0x27c   : > { %4365 = vst.msk [vmem:[#allocation5 + $0x10] sm:$0xff] %vm4362_vm7, %v4319_v19  ;;  %4364 = vst.msk [vmem:[#allocation5 + $0x8] sm:$0xff] %vm4362_vm7, %v4317_v33  ;;  %v3570_v29 = vor.u32 %v3569_v49, %v8356_v55  ;;  %v8375_v56 = vcombine.low %v3848_v27, %v3851_v62  ;;  %v2439_v39 = vadd.f32 %v7942_v16, %v2438_v57  ;;  %v5793_v14 = vpop.f32.mrb[30].mxu0  ;;  %v3561_v46 = vrot.slane %v3560_v20, 4  ;;  %v3067_v27 = vld [vmem:[#allocation3 + $0xc0] sm:$0xf] }
 0x27d   : > { %4441 = vst.msk [vmem:[#allocation5 + $0x10] sm:$0xff] %vm4438_vm11, %v8195_v6  ;;  %4440 = vst.msk [vmem:[#allocation5 + $0x8] sm:$0xff] %vm4438_vm11, %v8254_v5  ;;  %v3591_v6 = vshrl.u32 %v8326_v21, 16  ;;  %v2447_v5 = vadd.f32 %v7942_v16, %v5792_v53  ;;  %v8380_v19 = vpop.permute.xlu0 %3926  ;;  %3697 = vrot.lane.b32.xlu1 %v5500_v4, %s6044_s30  ;;  %v2450_v61 = vadd.f32 %v7942_v16, %v5793_v14  ;;  %v2441_v24 = vpop.f32.mrb[31].mxu0  ;;  %v3071_v14 = vld [vmem:[#allocation3 + $0xc8] sm:$0x1] }
 0x27e   : > { %3725 = vst.msk [vmem:[#allocation5 + $0x18] sm:$0xff] %vm3721_vm8, %v3680_v15  ;;  %v3571_v43 = vrot.slane %v3570_v29, 4  ;;  %4412 = vrot.lane.b32.xlu0 %v8375_v56, %s6054_s28  ;;  %v2481_v44 = vmax.f32 %v2439_v39, 0.0  ;;  %v3566_v32 = vsel %vm6247_vm10, %v3561_v46, %v8356_v55  ;;  %v3064_v46 = vld [vmem:[#allocation3 + $0xbc] sm:$0x1] }
 0x27f   : > { %3966 = vst.msk [vmem:[#allocation5 + $0x18] sm:$0xff] %vm3962_vm15, %v8268_v13  ;;  %v2483_v58 = vmax.f32 %v2447_v5, 0.0  ;;  %v2442_v13 = vadd.f32 %v7942_v16, %v2441_v24  ;;  %v8397_v30 = vpop.permute.xlu1 %4162  ;;  %v3593_v2 = vrot.slane %v3591_v6, 4  ;;  %v2484_v25 = vmax.f32 %v2450_v61, 0.0  ;;  %v3060_v5 = vld [vmem:[#allocation3 + $0xb4] sm:$0xf] }
 0x280   : > { %4036 = vst.msk [vmem:[#allocation5 + $0x18] sm:$0xff] %vm4032_vm0, %v8113_v36  ;;  %v3576_v36 = vsel %vm6247_vm10, %v3571_v43, %v3575_v45  ;;  %v5663_v16 = vpack.c.bf16 %v2481_v44, %v2481_v44  ;;  %v3597_v43 = vshll.u32 %v3118_v63, 16 }
 0x281   : > { %4128 = vst.msk [vmem:[#allocation5 + $0x18] sm:$0xff] %vm4124_vm3, %v8306_v1  ;;  %v5665_v35 = vpack.c.bf16 %v2483_v58, %v2483_v58  ;;  %v8401_v4 = vpop.permute.xlu0 %4396  ;;  %v2482_v18 = vmax.f32 %v2442_v13, 0.0  ;;  %4332 = vrot.lane.b32.xlu1 %v8354_v59, %s6055_s11  ;;  %v3583_v1 = vrot.slane %v3581_v34, 5  ;;  %v5666_v26 = vpack.c.bf16 %v2484_v25, %v2484_v25 }
 0x282   : > { %4204 = vst.msk [vmem:[#allocation5 + $0x18] sm:$0xff] %vm4200_vm4, %v8236_v23  ;;  %4008 = vrot.lane.b32.xlu0 %v8333_v42, %s6047_s10  ;;  %v3580_v23 = vrot.slane %v3578_v47, 4  ;;  %v2876_v54 = vshrl.u32 %v5663_v16, 16  ;;  %v8420_v42 = vcombine.low %v3566_v32, %v3576_v36  ;;  %v3594_v29 = vor.u32 %v3593_v2, %v8405_v12 }
 0x283   : > { %4274 = vst.msk [vmem:[#allocation5 + $0x18] sm:$0xff] %vm4270_vm5, %v8315_v22  ;;  %v2893_v31 = vshrl.u32 %v5665_v35, 16  ;;  %v2896_v60 = vshll.u32 %v5665_v35, 16  ;;  %v2879_v22 = vshll.u32 %v5663_v16, 16  ;;  %v5664_v37 = vpack.c.bf16 %v2482_v18, %v2482_v18  ;;  %v8418_v17 = vpop.permute.xlu1 %3924 }
 0x284   : > { %v4456_v41 = vld [vmem:[#allocation5 + $0x8] sm:$0xff]  ;;  %v4457_v52 = vld [vmem:[#allocation5 + $0x10] sm:$0xff]  ;;  %v2901_v33 = vshrl.u32 %v5666_v26, 16  ;;  %v2904_v48 = vshll.u32 %v5666_v26, 16  ;;  %v2878_v20 = vrot.slane %v2876_v54, 7  ;;  %v3584_v53 = vor.u32 %v3583_v1, %v3580_v23 }
 0x285   : > { %5839 = vmatmul.mubr.msk.bf16.vlgmr.msra.gmra.mrb[20].mxu1 %vm4807_vm13, %v4456_v41  ;;  %v2895_v49 = vrot.slane %v2893_v31, 7  ;;  %v8422_v62 = vpop.permute.xlu0 %4160  ;;  %v2884_v55 = vshrl.u32 %v5664_v37, 16  ;;  %v2887_v51 = vshll.u32 %v5664_v37, 16  ;;  %3695 = vrot.lane.b32.xlu1 %v8354_v59, %s6044_s30  ;;  %v3854_v58 = vrot.slane %v8326_v21, 5 }
 0x286   : > { %5842 = vmatprep.mubr.msk.bf16.mxu1 %vm4807_vm13, %v4457_v52  ;;  %4100 = vrot.lane.b32.xlu0 %v8420_v42, %s6049_s12  ;;  %v2903_v57 = vrot.slane %v2901_v33, 7  ;;  %v2881_v38 = vor.u32 %v2879_v22, %v2878_v20  ;;  %v2882_v39 = vrot.slane %v2878_v20, 4  ;;  %v3595_v44 = vrot.slane %v3594_v29, 4 }
 0x287   : > { %v2898_v15 = vor.u32 %v2896_v60, %v2895_v49  ;;  %v2899_v6 = vrot.slane %v2895_v49, 4  ;;  %v2886_v47 = vrot.slane %v2884_v55, 7  ;;  %v8429_v34 = vpop.permute.xlu1 %3998  ;;  %v3585_v41 = vrot.slane %v3584_v53, 4 }
 0x288   : > { %v2906_v61 = vor.u32 %v2904_v48, %v2903_v57  ;;  %v2908_v24 = vrot.slane %v2903_v57, 4  ;;  %v3061_v13 = vsel %vm7526_vm1, %v2881_v38, %v3060_v5  ;;  %v3599_v36 = vrot.slane %v3597_v43, 5 }
 0x289   : > { %v3068_v59 = vsel %vm7526_vm1, %v2898_v15, %v3067_v27  ;;  %v8434_v45 = vpop.permute.xlu0 %4234  ;;  %v2889_v2 = vor.u32 %v2887_v51, %v2886_v47  ;;  %v2891_v35 = vrot.slane %v2886_v47, 4  ;;  %4010 = vrot.lane.b32.xlu1 %v8330_v10, %s6047_s10  ;;  %3062 = vst [vmem:[#allocation3 + $0xb4] sm:$0xf] %v3061_v13  ;;  %v3856_v31 = vrot.slane %v3854_v58, 4 }
 0x28a   : > { %3069 = vst [vmem:[#allocation3 + $0xc0] sm:$0xf] %v3068_v59  ;;  %4176 = vrot.lane.b32.xlu0 %v8375_v56, %s6053_s27  ;;  %v2907_v21 = vsel %vm6262_vm12, %v2899_v6, %v2906_v61  ;;  %v3072_v25 = vsel %vm7533_vm2, %v2908_v24, %v3071_v14  ;;  %v3600_v1 = vsel %vm6247_vm10, %v3595_v44, %v3599_v36  ;;  %v3857_v60 = vrot.slane %v3118_v63, 5 }
 0x28b   : > { %3070 = vst.msk [vmem:[#allocation3 + $0xc4] sm:$0xf] %vm2485_vm14, %v2907_v21  ;;  %3073 = vst [vmem:[#allocation3 + $0xc8] sm:$0x1] %v3072_v25  ;;  %v2890_v3 = vsel %vm6262_vm12, %v2882_v39, %v2889_v2  ;;  %v3065_v16 = vsel %vm7533_vm2, %v2891_v35, %v3064_v46  ;;  %v8451_v18 = vpop.permute.xlu1 %4086  ;;  %v3590_v40 = vsel %vm6247_vm10, %v3585_v41, %v8405_v12 }
 0x28c   : > { %3063 = vst.msk [vmem:[#allocation3 + $0xb8] sm:$0xf] %vm2485_vm14, %v2890_v3  ;;  %3066 = vst [vmem:[#allocation3 + $0xbc] sm:$0x1] %v3065_v16  ;;  %v8466_v52 = vcombine.low %v3590_v40, %v3600_v1  ;;  %v3858_v54 = vsel %vm6234_vm9, %v3856_v31, %v3857_v60 }
 0x28d   : > { %v4323_v23 = vpop.permute.xlu0 %4322  ;;  %3940 = vrot.lane.b32.xlu1 %v8375_v56, %s6050_s17  ;;  %v3855_v56 = vsel %vm6234_vm9, %v5518_v9, %v3854_v58 }
 0x28e   : > { %4246 = vrot.lane.b32.xlu0 %v8330_v10, %s6052_s23  ;;  %v5534_v63 = vcombine.low %v3855_v56, %v3858_v54  ;;  %v8552_v54 = vld [vmem:[#allocation3 + $0xcc] sm:$0xf] }
 0x28f   : > { %v8464_v26 = vpop.permute.xlu1 %4232 }
 0x290   : > { %v3119_v10 = vld [vmem:[#allocation3 + $0xb4] sm:$0xf] }
 0x291   : > { %v3997_v32 = vpop.permute.xlu0 %3996  ;;  %4336 = vrot.lane.b32.xlu1 %v8420_v42, %s6055_s11  ;;  %v5519_v12 = vrot.slane %v3119_v10, 9  ;;  %v3602_v11 = vshrl.u32 %v3119_v10, 16  ;;  %v3605_v22 = vshll.u32 %v3119_v10, 16  ;;  %v8507_v58 = vld [vmem:[#allocation3 + $0xc0] sm:$0xf] }
 0x292   : > { %4338 = vrot.lane.b32.xlu0 %v8466_v52, %s6055_s11  ;;  %v8509_v59 = vld [vmem:[#allocation3 + $0xc4] sm:$0xf]  ;;  %v4050_v46 = vshrl.u32 %v8507_v58, 16  ;;  %v4053_v44 = vshll.u32 %v8507_v58, 16  ;;  %v3124_v1 = vld [vmem:[#allocation3 + $0xc8] sm:$0x1] }
 0x293   : > { %v3686_v37 = vpop.permute.xlu1 %3685  ;;  %v3120_v49 = vld [vmem:[#allocation3 + $0xb8] sm:$0xf]  ;;  %v3121_v33 = vld [vmem:[#allocation3 + $0xbc] sm:$0x1]  ;;  %v3604_v55 = vrot.slane %v3602_v11, 4  ;;  %v3607_v51 = vrot.slane %v3605_v22, 5 }
 0x294   : > { %3728 = vst.msk [vmem:[#allocation5 + $0x30] sm:$0xff] %vm3721_vm8, %v3686_v37  ;;  %v3861_v29 = vrot.slane %v3120_v49, 5  ;;  %v3864_v27 = vrot.slane %v3121_v33, 5  ;;  %v5487_v20 = vcombine.low %v3119_v10, %v3120_v49  ;;  %v3611_v53 = vshll.u32 %v3120_v49, 16  ;;  %v8555_v22 = vld [vmem:[#allocation3 + $0xd0] sm:$0xf] }
 0x295   : > { %v4085_v48 = vpop.permute.xlu0 %4084  ;;  %3969 = vst.msk [vmem:[#allocation5 + $0x30] sm:$0xff] %vm3962_vm15, %v8380_v19  ;;  %3699 = vrot.lane.b32.xlu1 %v8420_v42, %s6044_s30  ;;  %v3615_v15 = vshrl.u32 %v3120_v49, 16  ;;  %v3608_v38 = vor.u32 %v3607_v51, %v3604_v55  ;;  %v3621_v39 = vshll.u32 %v3121_v33, 16  ;;  %v4063_v13 = vshrl.u32 %v8509_v59, 16 }
 0x296   : > { %4129 = vst.msk [vmem:[#allocation5 + $0x20] sm:$0xff] %vm4124_vm3, %v4085_v48  ;;  %4414 = vrot.lane.b32.xlu0 %v5534_v63, %s6054_s28  ;;  %v3862_v6 = vsel %vm6234_vm9, %v5519_v12, %v3861_v29  ;;  %v3863_v5 = vrot.slane %v3861_v29, 4  ;;  %v3613_v42 = vrot.slane %v3611_v53, 5  ;;  %v4059_v2 = vshll.u32 %v8509_v59, 16 }
 0x297   : > { %4039 = vst.msk [vmem:[#allocation5 + $0x30] sm:$0xff] %vm4032_vm0, %v3997_v32  ;;  %v4321_v19 = vpop.permute.xlu1 %4320  ;;  %v3617_v57 = vrot.slane %v3615_v15, 4  ;;  %v3609_v61 = vrot.slane %v3608_v38, 4  ;;  %v3623_v24 = vrot.slane %v3621_v39, 5  ;;  %v4055_v36 = vrot.slane %v4053_v44, 5 }
 0x298   : > { %4205 = vst.msk [vmem:[#allocation5 + $0x20] sm:$0xff] %vm4200_vm4, %v8422_v62  ;;  %v3865_v62 = vsel %vm6234_vm9, %v3863_v5, %v3864_v27  ;;  %v4061_v3 = vrot.slane %v4059_v2, 5  ;;  %v4065_v16 = vrot.slane %v4063_v13, 4  ;;  %v4069_v9 = vshll.u32 %v3124_v1, 16 }
 0x299   : > { %3240 = vst.msk [vmem:[#allocation5 + $0x78] sm:$0xff] %vm3224_vm6, %v5487_v20  ;;  %v8493_v43 = vpop.permute.xlu0 %4402  ;;  %4102 = vrot.lane.b32.xlu1 %v8466_v52, %s6049_s12  ;;  %v3618_v14 = vor.u32 %v3617_v57, %v3613_v42  ;;  %v3614_v21 = vsel %vm6247_vm10, %v3609_v61, %v3613_v42  ;;  %v4144_v11 = vrot.slane %v8509_v59, 5  ;;  %v4288_v49 = vshrl.u32 %v8552_v54, 16 }
 0x29a   : > { %4275 = vst.msk [vmem:[#allocation5 + $0x20] sm:$0xff] %vm4270_vm5, %v8283_v7  ;;  %v8503_v7 = vcombine.low %v3862_v6, %v3865_v62  ;;  %v4066_v40 = vor.u32 %v4065_v16, %v4061_v3  ;;  %v4071_v12 = vrot.slane %v4069_v9, 5  ;;  %v4291_v33 = vshll.u32 %v8552_v54, 16 }
 0x29b   : > { %4367 = vst.msk [vmem:[#allocation5 + $0x20] sm:$0xff] %vm4362_vm7, %v4323_v23  ;;  %4366 = vst.msk [vmem:[#allocation5 + $0x18] sm:$0xff] %vm4362_vm7, %v4321_v19  ;;  %v3684_v47 = vpop.permute.xlu1 %3683  ;;  %v5538_v48 = vrot.slane %v8507_v58, 9  ;;  %v4301_v29 = vshrl.u32 %v8555_v22, 16  ;;  %v4297_v27 = vshll.u32 %v8555_v22, 16  ;;  %v4146_v51 = vrot.slane %v4144_v11, 4 }
 0x29c   : > { %4443 = vst.msk [vmem:[#allocation5 + $0x20] sm:$0xff] %vm4438_vm11, %v8360_v0  ;;  %4442 = vst.msk [vmem:[#allocation5 + $0x18] sm:$0xff] %vm4438_vm11, %v8401_v4  ;;  %4416 = vrot.lane.b32.xlu0 %v8503_v7, %s6054_s28  ;;  %v3619_v4 = vrot.slane %v3618_v14, 4  ;;  %v4067_v56 = vrot.slane %v4066_v40, 4  ;;  %v4147_v53 = vrot.slane %v3124_v1, 5  ;;  %v4290_v19 = vrot.slane %v4288_v49, 4 }
 0x29d   : > { %3727 = vst.msk [vmem:[#allocation5 + $0x28] sm:$0xff] %vm3721_vm8, %v3684_v47  ;;  %v8512_v0 = vpop.permute.xlu0 %3930  ;;  %4178 = vrot.lane.b32.xlu1 %v5534_v63, %s6053_s27  ;;  %v4293_v42 = vrot.slane %v4291_v33, 5  ;;  %v4145_v57 = vsel %vm6234_vm9, %v5538_v48, %v4144_v11  ;;  %v4299_v38 = vrot.slane %v4297_v27, 5  ;;  %v4303_v39 = vrot.slane %v4301_v29, 4  ;;  %v3127_v47 = vld [vmem:[#allocation3 + $0xd4] sm:$0x1] }
 0x29e   : > { %3968 = vst.msk [vmem:[#allocation5 + $0x28] sm:$0xff] %vm3962_vm15, %v8418_v17  ;;  %v3624_v25 = vsel %vm6247_vm10, %v3619_v4, %v3623_v24  ;;  %v4072_v55 = vsel %vm6247_vm10, %v4067_v56, %v4071_v12  ;;  %v4148_v62 = vsel %vm6234_vm9, %v4146_v51, %v4147_v53  ;;  %v4307_v4 = vshll.u32 %v3127_v47, 16 }
 0x29f   : > { %4038 = vst.msk [vmem:[#allocation5 + $0x28] sm:$0xff] %vm4032_vm0, %v8279_v50  ;;  %v8526_v35 = vpop.permute.xlu1 %4166  ;;  %v5503_v23 = vcombine.low %v3614_v21, %v3624_v25  ;;  %v4304_v61 = vor.u32 %v4303_v39, %v4299_v38 }
 0x2a0   : > { %4130 = vst.msk [vmem:[#allocation5 + $0x28] sm:$0xff] %vm4124_vm3, %v8451_v18  ;;  %3942 = vrot.lane.b32.xlu0 %v5534_v63, %s6050_s17  ;;  %v4309_v13 = vrot.slane %v4307_v4, 5 }
 0x2a1   : > { %4206 = vst.msk [vmem:[#allocation5 + $0x28] sm:$0xff] %vm4200_vm4, %v8397_v30  ;;  %v8530_v17 = vpop.permute.xlu0 %4400  ;;  %4248 = vrot.lane.b32.xlu1 %v5487_v20, %s6052_s23  ;;  %v4052_v30 = vrot.slane %v4050_v46, 4  ;;  %v4305_v44 = vrot.slane %v4304_v61, 4 }
 0x2a2   : > { %4276 = vst.msk [vmem:[#allocation5 + $0x28] sm:$0xff] %vm4270_vm5, %v8464_v26 }
 0x2a3   : > { %v4458_v50 = vld [vmem:[#allocation5 + $0x18] sm:$0xff]  ;;  %v4459_v41 = vld [vmem:[#allocation5 + $0x20] sm:$0xff]  ;;  %v8542_v18 = vpop.permute.xlu1 %3928  ;;  %v4056_v60 = vor.u32 %v4055_v36, %v4052_v30  ;;  %v4310_v25 = vsel %vm6247_vm10, %v4305_v44, %v4309_v13  ;;  %v4385_v30 = vrot.slane %v3127_v47, 5 }
 0x2a4   : > { %5843 = vmatmul.mubr.msk.bf16.gmra.mrb[24].mxu1 %vm4807_vm13, %v4458_v50  ;;  %4012 = vrot.lane.b32.xlu0 %v5487_v20, %s6047_s10 }
 0x2a5   : > { %5846 = vmatprep.mubr.msk.bf16.mxu1 %vm4807_vm13, %v4459_v41  ;;  %v4165_v31 = vpop.permute.xlu0 %4164  ;;  %4340 = vrot.lane.b32.xlu1 %v5503_v23, %s6055_s11  ;;  %v4057_v10 = vrot.slane %v4056_v60, 4 }
 0x2a7   : > { %v8546_v26 = vpop.permute.xlu1 %4002  ;;  %v4062_v20 = vsel %vm6247_vm10, %v4057_v10, %v4061_v3 }
 0x2a8   : > { %4104 = vrot.lane.b32.xlu0 %v5503_v23, %s6049_s12  ;;  %v5537_v5 = vcombine.low %v4062_v20, %v4072_v55 }
 0x2a9   : > { %v8548_v32 = vpop.permute.xlu0 %4238  ;;  %3701 = vrot.lane.b32.xlu1 %v8466_v52, %s6044_s30  ;;  %v5536_v52 = vcombine.low %v8507_v58, %v8509_v59  ;;  %v4294_v59 = vor.u32 %v4293_v42, %v4290_v19 }
 0x2ab   : > { %v8559_v37 = vpop.permute.xlu1 %4090  ;;  %v4295_v46 = vrot.slane %v4294_v59, 4 }
 0x2ac   : > { %4180 = vrot.lane.b32.xlu0 %v8503_v7, %s6053_s27 }
 0x2ad   : > { %v4327_v63 = vpop.permute.xlu0 %4326  ;;  %3703 = vrot.lane.b32.xlu1 %v5503_v23, %s6044_s30  ;;  %v4300_v21 = vsel %vm6247_vm10, %v4295_v46, %v4299_v38 }
 0x2ae   : > { %v5541_v28 = vcombine.low %v4300_v21, %v4310_v25 }
 0x2af   : > { %v4237_v15 = vpop.permute.xlu1 %4236 }
 0x2b0   : > { %4250 = vrot.lane.b32.xlu0 %v5536_v52, %s6052_s23 }
 0x2b1   : > { %v4001_v6 = vpop.permute.xlu0 %4000  ;;  %3944 = vrot.lane.b32.xlu1 %v8503_v7, %s6050_s17  ;;  %v5539_v7 = vcombine.low %v4145_v57, %v4148_v62 }
 0x2b3   : > { %v3690_v14 = vpop.permute.xlu1 %3689 }
 0x2b4   : > { %4342 = vrot.lane.b32.xlu0 %v5537_v5, %s6055_s11  ;;  %3730 = vst.msk [vmem:[#allocation5 + $0x40] sm:$0xff] %vm3721_vm8, %v3690_v14 }
 0x2b5   : > { %v4089_v58 = vpop.permute.xlu0 %4088  ;;  %3971 = vst.msk [vmem:[#allocation5 + $0x40] sm:$0xff] %vm3962_vm15, %v8512_v0  ;;  %4014 = vrot.lane.b32.xlu1 %v5536_v52, %s6047_s10 }
 0x2b6   : > { %4131 = vst.msk [vmem:[#allocation5 + $0x30] sm:$0xff] %vm4124_vm3, %v4089_v58 }
 0x2b7   : > { %4041 = vst.msk [vmem:[#allocation5 + $0x40] sm:$0xff] %vm4032_vm0, %v4001_v6  ;;  %v4325_v24 = vpop.permute.xlu1 %4324 }
 0x2b8   : > { %4207 = vst.msk [vmem:[#allocation5 + $0x30] sm:$0xff] %vm4200_vm4, %v4165_v31  ;;  %4418 = vrot.lane.b32.xlu0 %v5539_v7, %s6054_s28 }
 0x2b9   : > { %4277 = vst.msk [vmem:[#allocation5 + $0x30] sm:$0xff] %vm4270_vm5, %v8434_v45  ;;  %v4407_v0 = vpop.permute.xlu0 %4406  ;;  %4106 = vrot.lane.b32.xlu1 %v5537_v5, %s6049_s12  ;;  %v4382_v45 = vrot.slane %v8555_v22, 5 }
 0x2ba   : > { %4369 = vst.msk [vmem:[#allocation5 + $0x30] sm:$0xff] %vm4362_vm7, %v4327_v63  ;;  %4368 = vst.msk [vmem:[#allocation5 + $0x28] sm:$0xff] %vm4362_vm7, %v4325_v24 }
 0x2bb   : > { %4445 = vst.msk [vmem:[#allocation5 + $0x30] sm:$0xff] %vm4438_vm11, %v8493_v43  ;;  %4444 = vst.msk [vmem:[#allocation5 + $0x28] sm:$0xff] %vm4438_vm11, %v8530_v17  ;;  %v3688_v2 = vpop.permute.xlu1 %3687  ;;  %v5540_v43 = vcombine.low %v8552_v54, %v8555_v22  ;;  %v5542_v17 = vrot.slane %v8552_v54, 9  ;;  %v4384_v41 = vrot.slane %v4382_v45, 4 }
 0x2bc   : > { %3729 = vst.msk [vmem:[#allocation5 + $0x38] sm:$0xff] %vm3721_vm8, %v3688_v2 }
 0x2bd   : > { %v3935_v50 = vpop.permute.xlu0 %3934  ;;  %3970 = vst.msk [vmem:[#allocation5 + $0x38] sm:$0xff] %vm3962_vm15, %v8542_v18  ;;  %4182 = vrot.lane.b32.xlu1 %v5539_v7, %s6053_s27  ;;  %v4383_v18 = vsel %vm6234_vm9, %v5542_v17, %v4382_v45  ;;  %v4386_v23 = vsel %vm6234_vm9, %v4384_v41, %v4385_v30  ;;  %s8754_s27 = scalar_lea.vmem %s8894_s7, %s5633_s26 }
 0x2be   : > { %4040 = vst.msk [vmem:[#allocation5 + $0x38] sm:$0xff] %vm4032_vm0, %v8429_v34  ;;  %v5543_v31 = vcombine.low %v4383_v18, %v4386_v23 }
 0x2bf   : > { %4132 = vst.msk [vmem:[#allocation5 + $0x38] sm:$0xff] %vm4124_vm3, %v8559_v37  ;;  %v4171_v36 = vpop.permute.xlu1 %4170 }
 0x2c0   : > { %4208 = vst.msk [vmem:[#allocation5 + $0x38] sm:$0xff] %vm4200_vm4, %v8526_v35 }
 0x2c1   : > { %v4405_v3 = vpop.permute.xlu0 %4404  ;;  %4278 = vst.msk [vmem:[#allocation5 + $0x38] sm:$0xff] %vm4270_vm5, %v4237_v15  ;;  %4252 = vrot.lane.b32.xlu1 %v5540_v43, %s6052_s23 }
 0x2c2   : > { %v4460_v16 = vld [vmem:[#allocation5 + $0x28] sm:$0xff]  ;;  %v4461_v34 = vld [vmem:[#allocation5 + $0x30] sm:$0xff] }
 0x2c3   : > { %5847 = vmatmul.mubr.msk.bf16.gmra.mrb[28].mxu1 %vm4807_vm13, %v4460_v16  ;;  %v3933_v1 = vpop.permute.xlu1 %3932 }
 0x2c4   : > { %5850 = vmatprep.mubr.msk.bf16.mxu1 %vm4807_vm13, %v4461_v34 }
 0x2c5   : > { %v4169_v35 = vpop.permute.xlu0 %4168  ;;  %4344 = vrot.lane.b32.xlu1 %v5541_v28, %s6055_s11 }
 0x2c7   : > { %v8625_v60 = vpop.permute.xlu1 %4006 }
 0x2c9   : > { %v4243_v40 = vpop.permute.xlu0 %4242  ;;  %4420 = vrot.lane.b32.xlu1 %v5543_v31, %s6054_s28 }
 0x2cb   : > { %v4095_v9 = vpop.permute.xlu1 %4094 }
 0x2cd   : > { %v4331_v54 = vpop.permute.xlu0 %4330 }
 0x2cf   : > { %v4241_v10 = vpop.permute.xlu1 %4240 }
 0x2d1   : > { %v4005_v56 = vpop.permute.xlu0 %4004 }
 0x2d3   : > { %v3694_v12 = vpop.permute.xlu1 %3693 }
 0x2d4   : > { %3732 = vst.msk [vmem:[#allocation5 + $0x50] sm:$0xff] %vm3721_vm8, %v3694_v12 }
 0x2d5   : > { %v4093_v11 = vpop.permute.xlu0 %4092  ;;  %3973 = vst.msk [vmem:[#allocation5 + $0x50] sm:$0xff] %vm3962_vm15, %v3935_v50 }
 0x2d6   : > { %4133 = vst.msk [vmem:[#allocation5 + $0x40] sm:$0xff] %vm4124_vm3, %v4093_v11 }
 0x2d7   : > { %4043 = vst.msk [vmem:[#allocation5 + $0x50] sm:$0xff] %vm4032_vm0, %v4005_v56  ;;  %v4329_v8 = vpop.permute.xlu1 %4328 }
 0x2d8   : > { %4209 = vst.msk [vmem:[#allocation5 + $0x40] sm:$0xff] %vm4200_vm4, %v4169_v35 }
 0x2d9   : > { %4279 = vst.msk [vmem:[#allocation5 + $0x40] sm:$0xff] %vm4270_vm5, %v8548_v32  ;;  %v4411_v22 = vpop.permute.xlu0 %4410  ;;  %v8647_v48 = vpop.f32.mrb[32].mxu0 }
 0x2da   : > { %4371 = vst.msk [vmem:[#allocation5 + $0x40] sm:$0xff] %vm4362_vm7, %v4331_v54  ;;  %4370 = vst.msk [vmem:[#allocation5 + $0x38] sm:$0xff] %vm4362_vm7, %v4329_v8  ;;  %v8650_v29 = vpop.f32.mrb[33].mxu0 }
 0x2db   : > { %4447 = vst.msk [vmem:[#allocation5 + $0x40] sm:$0xff] %vm4438_vm11, %v4407_v0  ;;  %4446 = vst.msk [vmem:[#allocation5 + $0x38] sm:$0xff] %vm4438_vm11, %v4405_v3  ;;  %v3692_v37 = vpop.permute.xlu1 %3691 }
 0x2dc   : > { %3731 = vst.msk [vmem:[#allocation5 + $0x48] sm:$0xff] %vm3721_vm8, %v3692_v37 }
 0x2dd   : > { %v3939_v63 = vpop.permute.xlu0 %3938  ;;  %3972 = vst.msk [vmem:[#allocation5 + $0x48] sm:$0xff] %vm3962_vm15, %v3933_v1 }
 0x2de   : > { %4042 = vst.msk [vmem:[#allocation5 + $0x48] sm:$0xff] %vm4032_vm0, %v8546_v26  ;;  %v8652_v26 = vpop.f32.mrb[34].mxu0 }
 0x2df   : > { %4134 = vst.msk [vmem:[#allocation5 + $0x48] sm:$0xff] %vm4124_vm3, %v4095_v9  ;;  %v4175_v32 = vpop.permute.xlu1 %4174  ;;  %v8654_v55 = vpop.f32.mrb[35].mxu0 }
 0x2e0   : > { %4210 = vst.msk [vmem:[#allocation5 + $0x48] sm:$0xff] %vm4200_vm4, %v4171_v36 }
 0x2e1   : > { %v4409_v49 = vpop.permute.xlu0 %4408  ;;  %4280 = vst.msk [vmem:[#allocation5 + $0x48] sm:$0xff] %vm4270_vm5, %v4241_v10 }
 0x2e2   : > { %v4462_v33 = vld [vmem:[#allocation5 + $0x38] sm:$0xff]  ;;  %v4463_v52 = vld [vmem:[#allocation5 + $0x40] sm:$0xff] }
 0x2e3   : > { %5851 = vmatmul.mubr.msk.bf16.gmra.mrb[0].mxu1 %vm4807_vm13, %v4462_v33  ;;  %v3937_v27 = vpop.permute.xlu1 %3936 }
 0x2e4   : > { %5854 = vmatprep.mubr.msk.bf16.mxu1 %vm4807_vm13, %v4463_v52 }
 0x2e5   : > { %v4173_v20 = vpop.permute.xlu0 %4172 }
 0x2e7   : > { %v4099_v51 = vpop.permute.xlu1 %4098 }
 0x2e9   : > { %v4335_v53 = vpop.permute.xlu0 %4334  ;;  %v8666_v38 = vpop.f32.mrb[36].mxu0 }
 0x2ea   : > { %v8669_v14 = vpop.f32.mrb[37].mxu0 }
 0x2eb   : > { %v4245_v15 = vpop.permute.xlu1 %4244  ;;  %v8673_v47 = vpop.f32.mrb[38].mxu0 }
 0x2ec   : > { %v8682_v4 = vpop.f32.mrb[39].mxu0 }
 0x2ed   : > { %v4097_v6 = vpop.permute.xlu0 %4096 }
 0x2ee   : > { %4135 = vst.msk [vmem:[#allocation5 + $0x50] sm:$0xff] %vm4124_vm3, %v4097_v6 }
 0x2ef   : > { %4211 = vst.msk [vmem:[#allocation5 + $0x50] sm:$0xff] %vm4200_vm4, %v4173_v20  ;;  %v3698_v5 = vpop.permute.xlu1 %3697 }
 0x2f0   : > { %4281 = vst.msk [vmem:[#allocation5 + $0x50] sm:$0xff] %vm4270_vm5, %v4243_v40 }
 0x2f1   : > { %4373 = vst.msk [vmem:[#allocation5 + $0x50] sm:$0xff] %vm4362_vm7, %v4335_v53  ;;  %v4413_v19 = vpop.permute.xlu0 %4412 }
 0x2f2   : > { %3734 = vst.msk [vmem:[#allocation5 + $0x60] sm:$0xff] %vm3721_vm8, %v3698_v5 }
 0x2f3   : > { %4449 = vst.msk [vmem:[#allocation5 + $0x50] sm:$0xff] %vm4438_vm11, %v4411_v22  ;;  %v4333_v42 = vpop.permute.xlu1 %4332 }
 0x2f4   : > { %3975 = vst.msk [vmem:[#allocation5 + $0x60] sm:$0xff] %vm3962_vm15, %v3939_v63 }
 0x2f5   : > { %4372 = vst.msk [vmem:[#allocation5 + $0x48] sm:$0xff] %vm4362_vm7, %v4333_v42  ;;  %v4009_v57 = vpop.permute.xlu0 %4008 }
 0x2f6   : > { %4448 = vst.msk [vmem:[#allocation5 + $0x48] sm:$0xff] %vm4438_vm11, %v4409_v49 }
 0x2f7   : > { %4045 = vst.msk [vmem:[#allocation5 + $0x60] sm:$0xff] %vm4032_vm0, %v4009_v57  ;;  %v3696_v62 = vpop.permute.xlu1 %3695 }
 0x2f8   : > { %3733 = vst.msk [vmem:[#allocation5 + $0x58] sm:$0xff] %vm3721_vm8, %v3696_v62 }
 0x2f9   : > { %v4101_v39 = vpop.permute.xlu0 %4100  ;;  %3974 = vst.msk [vmem:[#allocation5 + $0x58] sm:$0xff] %vm3962_vm15, %v3937_v27 }
 0x2fa   : > { %4137 = vst.msk [vmem:[#allocation5 + $0x60] sm:$0xff] %vm4124_vm3, %v4101_v39  ;;  %v4465_v61 = vld [vmem:[#allocation5 + $0x50] sm:$0xff] }
 0x2fb   : > { %4044 = vst.msk [vmem:[#allocation5 + $0x58] sm:$0xff] %vm4032_vm0, %v8625_v60  ;;  %v4011_v58 = vpop.permute.xlu1 %4010 }
 0x2fc   : > { %4136 = vst.msk [vmem:[#allocation5 + $0x58] sm:$0xff] %vm4124_vm3, %v4099_v51  ;;  %v8740_v51 = vld [vmem:[%s8893_s6] ss:$0 sm:$0xff] }
 0x2fd   : > { %4212 = vst.msk [vmem:[#allocation5 + $0x58] sm:$0xff] %vm4200_vm4, %v4175_v32  ;;  %v4177_v7 = vpop.permute.xlu0 %4176  ;;  %v4464_v59 = vld [vmem:[#allocation5 + $0x48] sm:$0xff]  ;;  %v8730_v32 = vld [vmem:[%s8891_s4] ss:$0 sm:$0xff] }
 0x2fe   : > { %4282 = vst.msk [vmem:[#allocation5 + $0x58] sm:$0xff] %vm4270_vm5, %v4245_v15  ;;  %5855 = vmatmul.mubr.msk.bf16.gmra.mrb[4].mxu1 %vm4807_vm13, %v4464_v59  ;;  %v5876_v49 = vadd.f32 %v8652_v26, %v8730_v32  ;;  %v5878_v52 = vadd.f32 %v8730_v32, %v8654_v55 }
 0x2ff   : > { %4213 = vst.msk [vmem:[#allocation5 + $0x60] sm:$0xff] %vm4200_vm4, %v4177_v7  ;;  %5858 = vmatprep.mubr.msk.bf16.mxu1 %vm4807_vm13, %v4465_v61  ;;  %v3941_v24 = vpop.permute.xlu1 %3940 }
 0x301   : > { %v4247_v0 = vpop.permute.xlu0 %4246 }
 0x302   : > { %4283 = vst.msk [vmem:[#allocation5 + $0x60] sm:$0xff] %vm4270_vm5, %v4247_v0 }
 0x303   : > { %v4337_v46 = vpop.permute.xlu1 %4336 }
 0x304   : > { %4374 = vst.msk [vmem:[#allocation5 + $0x58] sm:$0xff] %vm4362_vm7, %v4337_v46  ;;  %v5880_v46 = vadd.f32 %v8666_v38, %v8730_v32 }
 0x305   : > { %v4339_v44 = vpop.permute.xlu0 %4338  ;;  %4450 = vst.msk [vmem:[#allocation5 + $0x58] sm:$0xff] %vm4438_vm11, %v4413_v19 }
 0x306   : > { %4375 = vst.msk [vmem:[#allocation5 + $0x60] sm:$0xff] %vm4362_vm7, %v4339_v44  ;;  %v8698_v3 = vpop.f32.mrb[40].mxu0  ;;  %v5882_v44 = vadd.f32 %v8730_v32, %v8669_v14 }
 0x307   : > { %v3700_v13 = vpop.permute.xlu1 %3699  ;;  %v8701_v16 = vpop.f32.mrb[41].mxu0 }
 0x308   : > { %3735 = vst.msk [vmem:[#allocation5 + $0x68] sm:$0xff] %vm3721_vm8, %v3700_v13  ;;  %v8704_v28 = vpop.f32.mrb[42].mxu0  ;;  %v5884_v13 = vadd.f32 %v8673_v47, %v8730_v32 }
 0x309   : > { %v4415_v45 = vpop.permute.xlu0 %4414  ;;  %3976 = vst.msk [vmem:[#allocation5 + $0x68] sm:$0xff] %vm3962_vm15, %v3941_v24  ;;  %v8708_v1 = vpop.f32.mrb[43].mxu0 }
 0x30a   : > { %4451 = vst.msk [vmem:[#allocation5 + $0x60] sm:$0xff] %vm4438_vm11, %v4415_v45 }
 0x30b   : > { %4046 = vst.msk [vmem:[#allocation5 + $0x68] sm:$0xff] %vm4032_vm0, %v4011_v58  ;;  %v4103_v2 = vpop.permute.xlu1 %4102 }
 0x30c   : > { %4138 = vst.msk [vmem:[#allocation5 + $0x68] sm:$0xff] %vm4124_vm3, %v4103_v2  ;;  %v4466_v50 = vld [vmem:[#allocation5 + $0x58] sm:$0xff]  ;;  %v5886_v2 = vadd.f32 %v8730_v32, %v8682_v4 }
 0x30d   : > { %5859 = vmatmul.mubr.msk.bf16.gmra.mrb[8].mxu1 %vm4807_vm13, %v4466_v50 }
 0x30e   : > { %v4417_v43 = vpop.permute.xlu0 %4416 }
 0x30f   : > { %v4179_v17 = vpop.permute.xlu1 %4178 }
 0x310   : > { %4214 = vst.msk [vmem:[#allocation5 + $0x68] sm:$0xff] %vm4200_vm4, %v4179_v17 }
 0x311   : > { %v4467_v21 = vld [vmem:[#allocation5 + $0x60] sm:$0xff] }
 0x312   : > { %v3943_v25 = vpop.permute.xlu0 %3942  ;;  %5862 = vmatprep.mubr.msk.bf16.mxu1 %vm4807_vm13, %v4467_v21 }
 0x313   : > { %v4249_v41 = vpop.permute.xlu1 %4248 }
 0x314   : > { %4284 = vst.msk [vmem:[#allocation5 + $0x68] sm:$0xff] %vm4270_vm5, %v4249_v41 }
 0x316   : > { %v4013_v30 = vpop.permute.xlu0 %4012 }
 0x317   : > { %v4341_v36 = vpop.permute.xlu1 %4340 }
 0x318   : > { %4376 = vst.msk [vmem:[#allocation5 + $0x68] sm:$0xff] %vm4362_vm7, %v4341_v36 }
 0x319   : > { %4452 = vst.msk [vmem:[#allocation5 + $0x68] sm:$0xff] %vm4438_vm11, %v4417_v43 }
 0x31a   : > { %v4105_v34 = vpop.permute.xlu0 %4104 }
 0x31b   : > { %v3702_v18 = vpop.permute.xlu1 %3701 }
 0x31c   : > { %3736 = vst.msk [vmem:[#allocation5 + $0x70] sm:$0xff] %vm3721_vm8, %v3702_v18 }
 0x31d   : > { %3977 = vst.msk [vmem:[#allocation5 + $0x70] sm:$0xff] %vm3962_vm15, %v3943_v25 }
 0x31e   : > { %v4181_v23 = vpop.permute.xlu0 %4180  ;;  %4047 = vst.msk [vmem:[#allocation5 + $0x70] sm:$0xff] %vm4032_vm0, %v4013_v30 }
 0x31f   : > { %4139 = vst.msk [vmem:[#allocation5 + $0x70] sm:$0xff] %vm4124_vm3, %v4105_v34  ;;  %v3704_v35 = vpop.permute.xlu1 %3703 }
 0x320   : > { %4215 = vst.msk [vmem:[#allocation5 + $0x70] sm:$0xff] %vm4200_vm4, %v4181_v23  ;;  %v4468_v31 = vld [vmem:[#allocation5 + $0x68] sm:$0xff] }
 0x321   : > { %3737 = vst.msk [vmem:[#allocation5 + $0x78] sm:$0xff] %vm3721_vm8, %v3704_v35  ;;  %5863 = vmatmul.mubr.msk.bf16.gmra.mrb[12].mxu1 %vm4807_vm13, %v4468_v31 }
 0x322   : > { %v4251_v60 = vpop.permute.xlu0 %4250 }
 0x323   : > { %4285 = vst.msk [vmem:[#allocation5 + $0x70] sm:$0xff] %vm4270_vm5, %v4251_v60  ;;  %v3945_v40 = vpop.permute.xlu1 %3944 }
 0x324   : > { %3978 = vst.msk [vmem:[#allocation5 + $0x78] sm:$0xff] %vm3962_vm15, %v3945_v40 }
 0x326   : > { %v4343_v9 = vpop.permute.xlu0 %4342 }
 0x327   : > { %4377 = vst.msk [vmem:[#allocation5 + $0x70] sm:$0xff] %vm4362_vm7, %v4343_v9  ;;  %v4015_v54 = vpop.permute.xlu1 %4014  ;;  %v5888_v9 = vadd.f32 %v8698_v3, %v8730_v32 }
 0x328   : > { %4048 = vst.msk [vmem:[#allocation5 + $0x78] sm:$0xff] %vm4032_vm0, %v4015_v54  ;;  %v5890_v54 = vadd.f32 %v8730_v32, %v8701_v16 }
 0x32a   : > { %v4419_v10 = vpop.permute.xlu0 %4418 }
 0x32b   : > { %4453 = vst.msk [vmem:[#allocation5 + $0x70] sm:$0xff] %vm4438_vm11, %v4419_v10  ;;  %v4107_v56 = vpop.permute.xlu1 %4106  ;;  %v5892_v10 = vadd.f32 %v8704_v28, %v8730_v32 }
 0x32c   : > { %4140 = vst.msk [vmem:[#allocation5 + $0x78] sm:$0xff] %vm4124_vm3, %v4107_v56 }
 0x32f   : > { %v4183_v12 = vpop.permute.xlu1 %4182 }
 0x330   : > { %4216 = vst.msk [vmem:[#allocation5 + $0x78] sm:$0xff] %vm4200_vm4, %v4183_v12  ;;  %v5894_v12 = vadd.f32 %v8730_v32, %v8708_v1 }
 0x332   : > { %v4469_v11 = vld [vmem:[#allocation5 + $0x70] sm:$0xff] }
 0x333   : > { %5866 = vmatprep.mubr.msk.bf16.mxu1 %vm4807_vm13, %v4469_v11  ;;  %v4253_v8 = vpop.permute.xlu1 %4252 }
 0x334   : > { %4286 = vst.msk [vmem:[#allocation5 + $0x78] sm:$0xff] %vm4270_vm5, %v4253_v8 }
 0x337   : > { %v4345_v22 = vpop.permute.xlu1 %4344 }
 0x338   : > { %4378 = vst.msk [vmem:[#allocation5 + $0x78] sm:$0xff] %vm4362_vm7, %v4345_v22 }
 0x33b   : > { %v4421_v37 = vpop.permute.xlu1 %4420 }
 0x33c   : > { %4454 = vst.msk [vmem:[#allocation5 + $0x78] sm:$0xff] %vm4438_vm11, %v4421_v37 }
 0x343   : > { %v4470_v63 = vld [vmem:[#allocation5 + $0x78] sm:$0xff] }
 0x344   : > { %5867 = vmatmul.mubr.msk.bf16.gmra.mrb[16].mxu1 %vm4807_vm13, %v4470_v63 }
 0x358   : > { %v5840_v33 = vpop.f32.mrb[20].mxu1 }
 0x359   : > { %v5872_v27 = vadd.f32 %v5840_v33, %v8647_v48  ;;  %v4894_v20 = vpop.f32.mrb[21].mxu1 }
 0x35a   : > { %v5874_v53 = vadd.f32 %v4894_v20, %v8650_v29  ;;  %v5841_v15 = vpop.f32.mrb[22].mxu1 }
 0x35b   : > { %v5873_v6 = vadd.f32 %v5872_v27, %v8730_v32  ;;  %v5877_v5 = vadd.f32 %v5876_v49, %v5841_v15  ;;  %v4897_v26 = vpop.f32.mrb[23].mxu1 }
 0x35c   : > { %v5875_v19 = vadd.f32 %v5874_v53, %v8730_v32  ;;  %v5879_v42 = vadd.f32 %v5878_v52, %v4897_v26 }
 0x35d   : > { %v5062_v55 = vadd.f32 %v5873_v6, %v8740_v51  ;;  %v5063_v48 = vadd.f32 %v5877_v5, %v8740_v51 }
 0x35e   : > { %v5060_v57 = vadd.f32 %v5875_v19, %v8740_v51  ;;  %v5061_v62 = vadd.f32 %v5879_v42, %v8740_v51 }
 0x35f   : > { %v5094_v39 = vmax.f32 %v5062_v55, 0.0  ;;  %v5095_v58 = vmax.f32 %v5063_v48, 0.0 }
 0x360   : > { %v5092_v29 = vmax.f32 %v5060_v57, 0.0  ;;  %v5093_v7 = vmax.f32 %v5061_v62, 0.0 }
 0x361   : > { %v5669_v59 = vpack.c.bf16 %v5094_v39, %v5094_v39  ;;  %v5670_v61 = vpack.c.bf16 %v5095_v58, %v5095_v58 }
 0x362   : > { %v5667_v24 = vpack.c.bf16 %v5092_v29, %v5092_v29  ;;  %v5668_v0 = vpack.c.bf16 %v5093_v7, %v5093_v7 }
 0x363   : > { %5254 = vst.msk [vmem:[%s8754_s27 + $0x8] sm:$0xf] %vm2485_vm14, %v5669_v59  ;;  %5255 = vst.msk [vmem:[%s8754_s27 + $0xc] sm:$0xf] %vm2485_vm14, %v5670_v61 }
 0x364   : > { %5252 = vst.msk [vmem:[%s8754_s27] sm:$0xf] %vm2485_vm14, %v5667_v24  ;;  %5253 = vst.msk [vmem:[%s8754_s27 + $0x4] sm:$0xf] %vm2485_vm14, %v5668_v0 }
 0x377   : > { %v5844_v45 = vpop.f32.mrb[24].mxu1 }
 0x378   : > { %v5881_v50 = vadd.f32 %v5880_v46, %v5844_v45  ;;  %v4910_v43 = vpop.f32.mrb[25].mxu1 }
 0x379   : > { %v5883_v17 = vadd.f32 %v5882_v44, %v4910_v43  ;;  %v5845_v21 = vpop.f32.mrb[26].mxu1 }
 0x37a   : > { %v5066_v25 = vadd.f32 %v5881_v50, %v8740_v51  ;;  %v5885_v41 = vadd.f32 %v5884_v13, %v5845_v21  ;;  %v4913_v38 = vpop.f32.mrb[27].mxu1 }
 0x37b   : > { %v5064_v14 = vadd.f32 %v5883_v17, %v8740_v51  ;;  %v5887_v30 = vadd.f32 %v5886_v2, %v4913_v38 }
 0x37c   : > { %v5098_v47 = vmax.f32 %v5066_v25, 0.0  ;;  %v5067_v36 = vadd.f32 %v5885_v41, %v8740_v51 }
 0x37d   : > { %v5096_v34 = vmax.f32 %v5064_v14, 0.0  ;;  %v5065_v4 = vadd.f32 %v5887_v30, %v8740_v51 }
 0x37e   : > { %v5673_v18 = vpack.c.bf16 %v5098_v47, %v5098_v47  ;;  %v5099_v23 = vmax.f32 %v5067_v36, 0.0 }
 0x37f   : > { %v5671_v35 = vpack.c.bf16 %v5096_v34, %v5096_v34  ;;  %v5097_v31 = vmax.f32 %v5065_v4, 0.0 }
 0x380   : > { %5258 = vst.msk [vmem:[%s8754_s27 + $0x18] sm:$0xf] %vm2485_vm14, %v5673_v18  ;;  %v5674_v60 = vpack.c.bf16 %v5099_v23, %v5099_v23 }
 0x381   : > { %5256 = vst.msk [vmem:[%s8754_s27 + $0x10] sm:$0xf] %vm2485_vm14, %v5671_v35  ;;  %v5672_v40 = vpack.c.bf16 %v5097_v31, %v5097_v31 }
 0x382   : > { %5259 = vst.msk [vmem:[%s8754_s27 + $0x1c] sm:$0xf] %vm2485_vm14, %v5674_v60 }
 0x383   : > { %5257 = vst.msk [vmem:[%s8754_s27 + $0x14] sm:$0xf] %vm2485_vm14, %v5672_v40 }
 0x396   : > { %v5848_v56 = vpop.f32.mrb[28].mxu1 }
 0x397   : > { %v5889_v11 = vadd.f32 %v5888_v9, %v5848_v56  ;;  %v4926_v8 = vpop.f32.mrb[29].mxu1 }
 0x398   : > { %v5891_v22 = vadd.f32 %v5890_v54, %v4926_v8  ;;  %v5849_v37 = vpop.f32.mrb[30].mxu1 }
 0x399   : > { %v5070_v63 = vadd.f32 %v5889_v11, %v8740_v51  ;;  %v5893_v49 = vadd.f32 %v5892_v10, %v5849_v37  ;;  %v4929_v3 = vpop.f32.mrb[31].mxu1 }
 0x39a   : > { %v5068_v16 = vadd.f32 %v5891_v22, %v8740_v51  ;;  %v5895_v33 = vadd.f32 %v5894_v12, %v4929_v3 }
 0x39b   : > { %v5102_v28 = vmax.f32 %v5070_v63, 0.0  ;;  %v5071_v52 = vadd.f32 %v5893_v49, %v8740_v51 }
 0x39c   : > { %v5100_v27 = vmax.f32 %v5068_v16, 0.0  ;;  %v5069_v1 = vadd.f32 %v5895_v33, %v8740_v51 }
 0x39d   : > { %v5677_v20 = vpack.c.bf16 %v5102_v28, %v5102_v28  ;;  %v5103_v53 = vmax.f32 %v5071_v52, 0.0 }
 0x39e   : > { %v5675_v15 = vpack.c.bf16 %v5100_v27, %v5100_v27  ;;  %v5101_v6 = vmax.f32 %v5069_v1, 0.0 }
 0x39f   : > { %5262 = vst.msk [vmem:[%s8754_s27 + $0x28] sm:$0xf] %vm2485_vm14, %v5677_v20  ;;  %v5678_v5 = vpack.c.bf16 %v5103_v53, %v5103_v53 }
 0x3a0   : > { %5260 = vst.msk [vmem:[%s8754_s27 + $0x20] sm:$0xf] %vm2485_vm14, %v5675_v15  ;;  %v5676_v26 = vpack.c.bf16 %v5101_v6, %v5101_v6 }
 0x3a1   : > { %5263 = vst.msk [vmem:[%s8754_s27 + $0x2c] sm:$0xf] %vm2485_vm14, %v5678_v5 }
 0x3a2   : > { %5261 = vst.msk [vmem:[%s8754_s27 + $0x24] sm:$0xf] %vm2485_vm14, %v5676_v26 }
 0x3b6   : > { %v5852_v19 = vpop.f32.mrb[0].mxu1 }
 0x3b7   : > { %v4951_v42 = vadd.f32 %v5852_v19, %v8730_v32  ;;  %v4942_v55 = vpop.f32.mrb[1].mxu1 }
 0x3b8   : > { %v4943_v48 = vadd.f32 %v8730_v32, %v4942_v55  ;;  %v5853_v57 = vpop.f32.mrb[2].mxu1 }
 0x3b9   : > { %v5074_v62 = vadd.f32 %v8740_v51, %v4951_v42  ;;  %v4954_v39 = vadd.f32 %v5853_v57, %v8730_v32  ;;  %v4945_v58 = vpop.f32.mrb[3].mxu1 }
 0x3ba   : > { %v5072_v29 = vadd.f32 %v8740_v51, %v4943_v48  ;;  %v4946_v7 = vadd.f32 %v8730_v32, %v4945_v58 }
 0x3bb   : > { %v5106_v59 = vmax.f32 %v5074_v62, 0.0  ;;  %v5075_v61 = vadd.f32 %v8740_v51, %v4954_v39 }
 0x3bc   : > { %v5104_v24 = vmax.f32 %v5072_v29, 0.0  ;;  %v5073_v0 = vadd.f32 %v8740_v51, %v4946_v7 }
 0x3bd   : > { %v5681_v46 = vpack.c.bf16 %v5106_v59, %v5106_v59  ;;  %v5107_v44 = vmax.f32 %v5075_v61, 0.0 }
 0x3be   : > { %v5679_v13 = vpack.c.bf16 %v5104_v24, %v5104_v24  ;;  %v5105_v45 = vmax.f32 %v5073_v0, 0.0 }
 0x3bf   : > { %5266 = vst.msk [vmem:[%s8754_s27 + $0x38] sm:$0xf] %vm2485_vm14, %v5681_v46  ;;  %v5682_v2 = vpack.c.bf16 %v5107_v44, %v5107_v44 }
 0x3c0   : > { %5264 = vst.msk [vmem:[%s8754_s27 + $0x30] sm:$0xf] %vm2485_vm14, %v5679_v13  ;;  %v5680_v50 = vpack.c.bf16 %v5105_v45, %v5105_v45 }
 0x3c1   : > { %5267 = vst.msk [vmem:[%s8754_s27 + $0x3c] sm:$0xf] %vm2485_vm14, %v5682_v2 }
 0x3c2   : > { %5265 = vst.msk [vmem:[%s8754_s27 + $0x34] sm:$0xf] %vm2485_vm14, %v5680_v50 }
 0x3d1   : > { %v5856_v43 = vpop.f32.mrb[4].mxu1 }
 0x3d2   : > { %v4967_v17 = vadd.f32 %v5856_v43, %v8730_v32  ;;  %v4958_v21 = vpop.f32.mrb[5].mxu1 }
 0x3d3   : > { %v4959_v25 = vadd.f32 %v8730_v32, %v4958_v21  ;;  %v5857_v41 = vpop.f32.mrb[6].mxu1 }
 0x3d4   : > { %v5078_v38 = vadd.f32 %v8740_v51, %v4967_v17  ;;  %v4970_v14 = vadd.f32 %v5857_v41, %v8730_v32  ;;  %v4961_v30 = vpop.f32.mrb[7].mxu1 }
 0x3d5   : > { %v5076_v47 = vadd.f32 %v8740_v51, %v4959_v25  ;;  %v4962_v36 = vadd.f32 %v8730_v32, %v4961_v30 }
 0x3d6   : > { %v5110_v34 = vmax.f32 %v5078_v38, 0.0  ;;  %v5079_v4 = vadd.f32 %v8740_v51, %v4970_v14 }
 0x3d7   : > { %v5108_v18 = vmax.f32 %v5076_v47, 0.0  ;;  %v5077_v23 = vadd.f32 %v8740_v51, %v4962_v36 }
 0x3d8   : > { %v5685_v35 = vpack.c.bf16 %v5110_v34, %v5110_v34  ;;  %v5111_v31 = vmax.f32 %v5079_v4, 0.0 }
 0x3d9   : > { %v5683_v60 = vpack.c.bf16 %v5108_v18, %v5108_v18  ;;  %v5109_v40 = vmax.f32 %v5077_v23, 0.0 }
 0x3da   : > { %5270 = vst.msk [vmem:[%s8754_s27 + $0x48] sm:$0xf] %vm2485_vm14, %v5685_v35  ;;  %v5686_v9 = vpack.c.bf16 %v5111_v31, %v5111_v31 }
 0x3db   : > { %5268 = vst.msk [vmem:[%s8754_s27 + $0x40] sm:$0xf] %vm2485_vm14, %v5683_v60  ;;  %v5684_v54 = vpack.c.bf16 %v5109_v40, %v5109_v40 }
 0x3dc   : > { %5271 = vst.msk [vmem:[%s8754_s27 + $0x4c] sm:$0xf] %vm2485_vm14, %v5686_v9 }
 0x3dd   : > { %5269 = vst.msk [vmem:[%s8754_s27 + $0x44] sm:$0xf] %vm2485_vm14, %v5684_v54 }
 0x3e0   : > { %v5860_v10 = vpop.f32.mrb[8].mxu1 }
 0x3e1   : > { %v4983_v56 = vadd.f32 %v5860_v10, %v8730_v32  ;;  %v4974_v12 = vpop.f32.mrb[9].mxu1 }
 0x3e2   : > { %v4975_v11 = vadd.f32 %v8730_v32, %v4974_v12  ;;  %v5861_v8 = vpop.f32.mrb[10].mxu1 }
 0x3e3   : > { %v5082_v22 = vadd.f32 %v8740_v51, %v4983_v56  ;;  %v4986_v37 = vadd.f32 %v5861_v8, %v8730_v32  ;;  %v4977_v63 = vpop.f32.mrb[11].mxu1 }
 0x3e4   : > { %v5080_v49 = vadd.f32 %v8740_v51, %v4975_v11  ;;  %v4978_v3 = vadd.f32 %v8730_v32, %v4977_v63 }
 0x3e5   : > { %v5114_v16 = vmax.f32 %v5082_v22, 0.0  ;;  %v5083_v33 = vadd.f32 %v8740_v51, %v4986_v37 }
 0x3e6   : > { %v5112_v28 = vmax.f32 %v5080_v49, 0.0  ;;  %v5081_v52 = vadd.f32 %v8740_v51, %v4978_v3 }
 0x3e7   : > { %v5689_v27 = vpack.c.bf16 %v5114_v16, %v5114_v16  ;;  %v5115_v1 = vmax.f32 %v5083_v33, 0.0 }
 0x3e8   : > { %v5687_v20 = vpack.c.bf16 %v5112_v28, %v5112_v28  ;;  %v5113_v53 = vmax.f32 %v5081_v52, 0.0 }
 0x3e9   : > { %5274 = vst.msk [vmem:[%s8754_s27 + $0x58] sm:$0xf] %vm2485_vm14, %v5689_v27  ;;  %v5690_v15 = vpack.c.bf16 %v5115_v1, %v5115_v1 }
 0x3ea   : > { %5272 = vst.msk [vmem:[%s8754_s27 + $0x50] sm:$0xf] %vm2485_vm14, %v5687_v20  ;;  %v5688_v6 = vpack.c.bf16 %v5113_v53, %v5113_v53 }
 0x3eb   : > { %5275 = vst.msk [vmem:[%s8754_s27 + $0x5c] sm:$0xf] %vm2485_vm14, %v5690_v15 }
 0x3ec   : > { %5273 = vst.msk [vmem:[%s8754_s27 + $0x54] sm:$0xf] %vm2485_vm14, %v5688_v6 }
 0x3f4   : > { %v5864_v5 = vpop.f32.mrb[12].mxu1 }
 0x3f5   : > { %v4999_v26 = vadd.f32 %v5864_v5, %v8730_v32  ;;  %v4990_v19 = vpop.f32.mrb[13].mxu1 }
 0x3f6   : > { %v4991_v42 = vadd.f32 %v8730_v32, %v4990_v19  ;;  %v5865_v55 = vpop.f32.mrb[14].mxu1 }
 0x3f7   : > { %v5086_v48 = vadd.f32 %v8740_v51, %v4999_v26  ;;  %v5002_v57 = vadd.f32 %v5865_v55, %v8730_v32  ;;  %v4993_v62 = vpop.f32.mrb[15].mxu1 }
 0x3f8   : > { %v5084_v39 = vadd.f32 %v8740_v51, %v4991_v42  ;;  %v4994_v58 = vadd.f32 %v8730_v32, %v4993_v62 }
 0x3f9   : > { %v5118_v29 = vmax.f32 %v5086_v48, 0.0  ;;  %v5087_v7 = vadd.f32 %v8740_v51, %v5002_v57 }
 0x3fa   : > { %v5116_v59 = vmax.f32 %v5084_v39, 0.0  ;;  %v5085_v61 = vadd.f32 %v8740_v51, %v4994_v58 }
 0x3fb   : > { %v5693_v24 = vpack.c.bf16 %v5118_v29, %v5118_v29  ;;  %v5119_v0 = vmax.f32 %v5087_v7, 0.0 }
 0x3fc   : > { %v5691_v46 = vpack.c.bf16 %v5116_v59, %v5116_v59  ;;  %v5117_v44 = vmax.f32 %v5085_v61, 0.0 }
 0x3fd   : > { %5278 = vst.msk [vmem:[%s8754_s27 + $0x68] sm:$0xf] %vm2485_vm14, %v5693_v24  ;;  %v5694_v13 = vpack.c.bf16 %v5119_v0, %v5119_v0 }
 0x3fe   : > { %5276 = vst.msk [vmem:[%s8754_s27 + $0x60] sm:$0xf] %vm2485_vm14, %v5691_v46  ;;  %v5692_v45 = vpack.c.bf16 %v5117_v44, %v5117_v44 }
 0x3ff   : > { %5279 = vst.msk [vmem:[%s8754_s27 + $0x6c] sm:$0xf] %vm2485_vm14, %v5694_v13 }
 0x400   : > { %5277 = vst.msk [vmem:[%s8754_s27 + $0x64] sm:$0xf] %vm2485_vm14, %v5692_v45 }
 0x417   : > { %v5868_v2 = vpop.f32.mrb[16].mxu1 }
 0x418   : > { %v5015_v50 = vadd.f32 %v5868_v2, %v8730_v32  ;;  %v5006_v43 = vpop.f32.mrb[17].mxu1 }
 0x419   : > { %v5007_v17 = vadd.f32 %v8730_v32, %v5006_v43  ;;  %v5869_v21 = vpop.f32.mrb[18].mxu1 }
 0x41a   : > { %v5090_v25 = vadd.f32 %v8740_v51, %v5015_v50  ;;  %v5018_v41 = vadd.f32 %v5869_v21, %v8730_v32  ;;  %v5009_v38 = vpop.f32.mrb[19].mxu1 }
 0x41b   : > { %v5088_v14 = vadd.f32 %v8740_v51, %v5007_v17  ;;  %v5010_v30 = vadd.f32 %v8730_v32, %v5009_v38 }
 0x41c   : > { %v5122_v47 = vmax.f32 %v5090_v25, 0.0  ;;  %v5091_v36 = vadd.f32 %v8740_v51, %v5018_v41 }
 0x41d   : > { %v5120_v34 = vmax.f32 %v5088_v14, 0.0  ;;  %v5089_v4 = vadd.f32 %v8740_v51, %v5010_v30 }
 0x41e   : > { %v5697_v18 = vpack.c.bf16 %v5122_v47, %v5122_v47  ;;  %v5123_v23 = vmax.f32 %v5091_v36, 0.0 }
 0x41f   : > { %v5695_v35 = vpack.c.bf16 %v5120_v34, %v5120_v34  ;;  %v5121_v31 = vmax.f32 %v5089_v4, 0.0 }
 0x420   : > { %5282 = vst.msk [vmem:[%s8754_s27 + $0x78] sm:$0xf] %vm2485_vm14, %v5697_v18  ;;  %v5698_v60 = vpack.c.bf16 %v5123_v23, %v5123_v23 }
 0x421   : > { %5280 = vst.msk [vmem:[%s8754_s27 + $0x70] sm:$0xf] %vm2485_vm14, %v5695_v35  ;;  %v5696_v40 = vpack.c.bf16 %v5121_v31, %v5121_v31 }
 0x422   : > { %5283 = vst.msk [vmem:[%s8754_s27 + $0x7c] sm:$0xf] %vm2485_vm14, %v5698_v60 }
 0x423   : > { %5281 = vst.msk [vmem:[%s8754_s27 + $0x74] sm:$0xf] %vm2485_vm14, %v5696_v40 }
 0x424 PF: > { %s17_s24 = sadd.s32 1, %s6041_s24  }
 0x425   : > { %p14_p4 = scmp.ge.s32.totalorder %s17_s24, 4  }
 0x427   :  { %16 = sbr.rel (!%p14_p4) target bundleno = 1 (0x1), region = 80 }

</bundles_post_ra>
